<compile_context>
chip_gen: v6e
topology: v6e:2x2x1
jax: 0.10.0
libtpu: 0.0.40
codegen_flags: <defaults>
</compile_context>

<pallas_src>
import functools

import numpy as np
import jax
import jax.numpy as jnp
from jax.experimental import pallas as pl
from jax.experimental.pallas import tpu as pltpu

BN_EPS = 1e-3  # EfficientNet batch_norm_epsilon

# Synthetic BlockArgs, mirroring MBConvBlock semantics.
BLOCK_ARGS = dict(
    input_filters=16,
    output_filters=16,
    expand_ratio=4,
    kernel_size=3,
    stride=1,
    se_ratio=0.25,
    id_skip=True,
)


# ----------------------------- fused MBConv kernel -----------------------------
def _mbconv_kernel(x_ref, mask_ref, exp_w_ref, bn0_b_ref,
                   dw_w_ref, bn1_b_ref,
                   se_rwt_ref, se_rb_ref, se_ew_ref, se_eb_ref,
                   proj_w_ref, bn2_b_ref,
                   out_ref, *, H, W, K, n_imgs, has_expand, has_se, use_skip,
                   exp_dtype, mm_dtype=jnp.bfloat16):
    HW = H * W
    N = n_imgs * HW
    x_in = x_ref[0]                                           # (Cin, N) f32

    def mish(y):
        # mish(y) = y * tanh(softplus(y)); reformulated to 1 EUP exp + 1 approx recip.
        t = jnp.exp(jnp.minimum(y, 20.0).astype(exp_dtype)).astype(jnp.float32)
        d = (1.0 + t) * (1.0 + t)
        return y * (d - 1.0) * pl.reciprocal(d + 1.0, approx=True)

    # ---- expand 1x1 conv (BN0 scale pre-folded into the bf16 weights) + bias + mish ----
    if has_expand:
        y = jnp.dot(exp_w_ref[...], x_in.astype(mm_dtype),
                    preferred_element_type=jnp.float32)       # (Coup, N)
        x = mish(y + bn0_b_ref[...])
    else:
        x = x_in

    # ---- depthwise KxK conv (same padding, stride 1); BN1 scale pre-folded into taps ----
    pad = (K - 1) // 2
    center = pad * K + pad
    dw_w = dw_w_ref[...]                                      # (Coup, K*K) f32, folded
    masks = mask_ref[...]                                     # (K*K, N) f32 {0,1}
    taps = [dw_w[:, t:t + 1] for t in range(K * K)]           # hoisted (Coup, 1) columns
    acc = x * taps[center]                                    # center tap: always valid
    for kh in range(K):
        for kw in range(K):
            t = kh * K + kw
            if t == center:
                continue
            off = (kh - pad) * W + (kw - pad)
            # shifted[p] = x[(p + off) mod N]; XLU rotation.  Image-boundary and
            # cross-image wrap are both killed by the precomputed mask row.
            shifted = pltpu.roll(x, shift=(-off) % N, axis=1)
            acc = acc + (shifted * masks[t:t + 1, :]) * taps[t]
    x = mish(acc + bn1_b_ref[...])                            # (Coup, N)

    # ---- squeeze & excitation, off the MXU (broadcast-mul + small reductions) ----
    if has_se:
        se_rwt = se_rwt_ref[...]                              # (Coup, sq)  (W_reduce^T)
        se_rb = se_rb_ref[...]                                # (1, sq)
        se_ew = se_ew_ref[...]                                # (Coup, sq)
        se_eb = se_eb_ref[...]                                # (Coup, 1)
        inv_hw = 1.0 / HW
        parts = []
        for i in range(n_imgs):                               # pooling/gating per image
            xi = x[:, i * HW:(i + 1) * HW]
            pooled = jnp.sum(xi, axis=1, keepdims=True) * inv_hw          # (Coup, 1)
            s = jnp.sum(se_rwt * pooled, axis=0, keepdims=True) + se_rb   # (1, sq)
            s = s * jax.nn.sigmoid(s)                                     # swish
            g = jnp.sum(se_ew * s, axis=1, keepdims=True) + se_eb         # (Coup, 1)
            parts.append(xi * jax.nn.sigmoid(g))
        x = parts[0] if n_imgs == 1 else jnp.concatenate(parts, axis=1)

    # ---- project 1x1 conv (BN2 scale pre-folded) + bias (+ identity skip) ----
    y = jnp.dot(proj_w_ref[...], x.astype(mm_dtype),
                preferred_element_type=jnp.float32)           # (Cout, N)
    y = y + bn2_b_ref[...]
    if use_skip:
        y = y + x_in
    out_ref[0] = y


# ----------------------------- host-side helpers -----------------------------
def _device_kind():
    try:
        return jax.devices()[0].device_kind.lower()
    except Exception:
        return ""


def _single_tensorcore(kind):
    # v5e / v6e have one TensorCore per chip; v4 / v5p / v7x have two.
    return any(s in kind for s in ("v5e", "v5 lite", "v5lite", "v6e", "v6 lite", "trillium"))


def _has_bf16_eup(kind):
    # bf16 transcendentals only on v6e and later; default to f32 when unknown.
    return bool(kind) and not any(s in kind for s in ("v2", "v3", "v4", "v5"))


def _dw_masks(H, W, K, n_imgs):
    """Static (K*K, n_imgs*H*W) {0,1} boundary masks for the roll-based depthwise."""
    HW = H * W
    pad = (K - 1) // 2
    p = np.arange(HW)
    h, w = p // W, p % W
    rows = []
    for kh in range(K):
        for kw in range(K):
            dh, dw = kh - pad, kw - pad
            rows.append(((h + dh >= 0) & (h + dh < H) &
                         (w + dw >= 0) & (w + dw < W)).astype(np.float32))
    m = np.stack(rows, axis=0)                 # (K*K, HW)
    return np.tile(m, (1, n_imgs))             # (K*K, n_imgs*HW)


# ----------------------------- wrapper -----------------------------
def mbconv_block(x_nchw, params, *, ba, fold_batch=None, bf16_eup=None):
    B, Cin, H, W = x_nchw.shape
    HW = H * W
    kind = _device_kind()
    if fold_batch is None:
        fold_batch = _single_tensorcore(kind)   # fold batch into lanes on 1-TC chips
    if bf16_eup is None:
        bf16_eup = _has_bf16_eup(kind)

    has_expand = ba["expand_ratio"] != 1
    has_se = ba["se_ratio"] is not None and 0 < ba["se_ratio"] <= 1
    Cout = ba["output_filters"]
    use_skip = ba["id_skip"] and ba["stride"] == 1 and Cin == Cout
    K = ba["kernel_size"]
    assert ba["stride"] == 1  # TODO(synk): only stride-1 depthwise supported here

    # ---- fold the BN scales into the conv weights (epilogues become bias + act) ----
    if has_expand:
        exp_w = (params["expand_w"] * params["bn0_scale"]).astype(jnp.bfloat16)
        bn0_b = params["bn0_bias"]
    else:
        exp_w = jnp.zeros((1, 1), jnp.bfloat16)
        bn0_b = jnp.zeros((1, 1), jnp.float32)
    dw_w = params["dw_w"] * params["bn1_scale"]
    proj_w = (params["proj_w"] * params["bn2_scale"]).astype(jnp.bfloat16)
    bn2_b = params["bn2_bias"]
    if has_se:
        se_rwt, se_rb = params["se_red_w_t"], params["se_red_b"]
        se_ew, se_eb = params["se_exp_w"], params["se_exp_b"]
    else:
        se_rwt = se_rb = se_ew = se_eb = jnp.zeros((1, 1), jnp.float32)

    if fold_batch:
        G, n_imgs = 1, B        # single grid step, N = B*HW on the lane axis
        xk = jnp.transpose(x_nchw, (1, 0, 2, 3)).reshape(1, Cin, B * HW)
        sem = ("arbitrary",)
    else:
        G, n_imgs = B, 1        # one image per grid step; "parallel" -> one per TC
        xk = x_nchw.reshape(B, Cin, HW)
        sem = ("parallel",)
    xk = xk.astype(jnp.float32)
    N = n_imgs * HW
    masks = jnp.asarray(_dw_masks(H, W, K, n_imgs))            # (K*K, N) f32 constants

    kernel = functools.partial(
        _mbconv_kernel, H=H, W=W, K=K, n_imgs=n_imgs,
        has_expand=has_expand, has_se=has_se, use_skip=use_skip,
        exp_dtype=jnp.bfloat16 if bf16_eup else jnp.float32)

    def full(arr):
        nd = arr.ndim
        return pl.BlockSpec(arr.shape, lambda b, _nd=nd: (0,) * _nd)

    operands = [masks, exp_w, bn0_b, dw_w, params["bn1_bias"],
                se_rwt, se_rb, se_ew, se_eb, proj_w, bn2_b]
    in_specs = [pl.BlockSpec((1, Cin, N), lambda b: (b, 0, 0))] + [full(a) for a in operands]
    out_spec = pl.BlockSpec((1, Cout, N), lambda b: (b, 0, 0))

    out = pl.pallas_call(
        kernel,
        grid=(G,),
        in_specs=in_specs,
        out_specs=out_spec,
        out_shape=jax.ShapeDtypeStruct((G, Cout, N), jnp.float32),
        compiler_params=pltpu.CompilerParams(
            dimension_semantics=sem,
            vmem_limit_bytes=32 * 1024 * 1024),
    )(xk, *operands)

    if fold_batch:
        return jnp.transpose(out.reshape(Cout, B, H, W), (1, 0, 2, 3))
    return out.reshape(B, Cout, H, W)


# ----------------------------- parameter init (deterministic, synthetic) -----------------------------
def init_params(key, ba):
    Cin = ba["input_filters"]
    Coup = Cin * ba["expand_ratio"]
    Cout = ba["output_filters"]
    K = ba["kernel_size"]
    sq = max(1, int(Cin * ba["se_ratio"]))
    keys = iter(jax.random.split(key, 32))

    def nrm(shape, s=0.1):
        return (s * jax.random.normal(next(keys), shape)).astype(jnp.float32)

    def bn_fold(c):
        gamma = 1.0 + 0.1 * jax.random.normal(next(keys), (c, 1))
        beta = 0.1 * jax.random.normal(next(keys), (c, 1))
        mean = 0.1 * jax.random.normal(next(keys), (c, 1))
        var = 1.0 + 0.1 * jnp.abs(jax.random.normal(next(keys), (c, 1)))
        scale = gamma / jnp.sqrt(var + BN_EPS)
        bias = beta - mean * scale
        return scale.astype(jnp.float32), bias.astype(jnp.float32)

    p = {}
    p["expand_w"] = nrm((Coup, Cin))              # 1x1 conv stored (Cout_exp, Cin)
    p["bn0_scale"], p["bn0_bias"] = bn_fold(Coup)
    p["dw_w"] = nrm((Coup, K * K))                # depthwise taps per channel
    p["bn1_scale"], p["bn1_bias"] = bn_fold(Coup)
    p["se_red_w_t"] = nrm((Coup, sq))             # SE reduce weights stored transposed
    p["se_red_b"] = nrm((1, sq))
    p["se_exp_w"] = nrm((Coup, sq))
    p["se_exp_b"] = nrm((Coup, 1))
    p["proj_w"] = nrm((Cout, Coup))
    p["bn2_scale"], p["bn2_bias"] = bn_fold(Cout)
    return p


# ----------------------------- pure-JAX reference (module semantics) -----------------------------
def _mish_ref(y):
    return y * jnp.tanh(jax.nn.softplus(y))


def mbconv_ref(x_nchw, p, ba):
    B, Cin, H, W = x_nchw.shape
    HW = H * W
    x_in = x_nchw.reshape(B, Cin, HW).astype(jnp.float32)
    x = x_in
    if ba["expand_ratio"] != 1:
        y = jnp.einsum("oc,bcp->bop", p["expand_w"], x_in)
        x = _mish_ref(y * p["bn0_scale"][None] + p["bn0_bias"][None])
    Coup = x.shape[1]
    K = ba["kernel_size"]
    pad = (K - 1) // 2
    xs = x.reshape(B, Coup, H, W)
    xp = jnp.pad(xs, ((0, 0), (0, 0), (pad, pad), (pad, pad)))
    wdw = p["dw_w"].reshape(Coup, K, K)
    acc = jnp.zeros_like(xs)
    for kh in range(K):
        for kw in range(K):
            acc = acc + xp[:, :, kh:kh + H, kw:kw + W] * wdw[:, kh, kw][None, :, None, None]
    x = _mish_ref(acc.reshape(B, Coup, HW) * p["bn1_scale"][None] + p["bn1_bias"][None])
    if ba["se_ratio"] is not None and 0 < ba["se_ratio"] <= 1:
        pooled = jnp.mean(x, axis=2, keepdims=True)                              # (B,Coup,1)
        s = jnp.einsum("cs,bcx->bsx", p["se_red_w_t"], pooled) + p["se_red_b"].T[None]
        s = s * jax.nn.sigmoid(s)
        g = jnp.einsum("cs,bsx->bcx", p["se_exp_w"], s) + p["se_exp_b"][None]
        x = x * jax.nn.sigmoid(g)
    y = jnp.einsum("oc,bcp->bop", p["proj_w"], x)
    y = y * p["bn2_scale"][None] + p["bn2_bias"][None]
    if ba["id_skip"] and ba["stride"] == 1 and Cin == ba["output_filters"]:
        y = y + x_in
    return y.reshape(B, ba["output_filters"], H, W)


if __name__ == "__main__":
    key = jax.random.PRNGKey(0)
    pkey, xkey = jax.random.split(key)
    ba = BLOCK_ARGS
    params = init_params(pkey, ba)

    B, Cin, H, W = 2, ba["input_filters"], 16, 16
    x = jax.random.normal(xkey, (B, Cin, H, W), dtype=jnp.float32)

    fwd = jax.jit(functools.partial(mbconv_block, ba=ba))
    out = jax.block_until_ready(fwd(x, params))

    assert out.shape == (B, ba["output_filters"], H, W), out.shape
    assert bool(jnp.all(jnp.isfinite(out)))

    ref = mbconv_ref(x, params, ba)
    max_err = float(jnp.max(jnp.abs(out - ref)))
    # bf16 weights/activations on the MXU (with BN scale folded), bf16 EUP exp on
    # v6e+/v7x, and the approx reciprocal in mish set the tolerance.
    assert max_err < 5e-2, max_err

    print("KERNEL_OK")
</pallas_src>

<mosaic_0001>
module attributes {stable_mosaic.version = 11 : i64} {
  func.func @_mbconv_kernel(%arg0: i32, %arg1: memref<1x16x256xf32, #tpu.memory_space<vmem>>, %arg2: memref<9x256xf32, #tpu.memory_space<vmem>>, %arg3: memref<64x16xbf16, #tpu.memory_space<vmem>>, %arg4: memref<64x1xf32, #tpu.memory_space<vmem>>, %arg5: memref<64x9xf32, #tpu.memory_space<vmem>>, %arg6: memref<64x1xf32, #tpu.memory_space<vmem>>, %arg7: memref<64x4xf32, #tpu.memory_space<vmem>>, %arg8: memref<1x4xf32, #tpu.memory_space<vmem>>, %arg9: memref<64x4xf32, #tpu.memory_space<vmem>>, %arg10: memref<64x1xf32, #tpu.memory_space<vmem>>, %arg11: memref<16x64xbf16, #tpu.memory_space<vmem>>, %arg12: memref<16x1xf32, #tpu.memory_space<vmem>>, %arg13: memref<1x16x256xf32, #tpu.memory_space<vmem>>) attributes {dimension_semantics = [#tpu.dimension_semantics<parallel>], iteration_bounds = array<i64: 2>, scalar_prefetch = 0 : i64, scratch_operands = 0 : i64, tpu.core_type = #tpu.core_type<tc>, window_params = [{transform_indices = @transform_0, window_bounds = array<i64: 1, 16, 256>}, {pipeline_mode = #tpu.pipeline_mode<synchronous>, transform_indices = @transform_1, window_bounds = array<i64: 9, 256>}, {pipeline_mode = #tpu.pipeline_mode<synchronous>, transform_indices = @transform_2, window_bounds = array<i64: 64, 16>}, {pipeline_mode = #tpu.pipeline_mode<synchronous>, transform_indices = @transform_3, window_bounds = array<i64: 64, 1>}, {pipeline_mode = #tpu.pipeline_mode<synchronous>, transform_indices = @transform_4, window_bounds = array<i64: 64, 9>}, {pipeline_mode = #tpu.pipeline_mode<synchronous>, transform_indices = @transform_5, window_bounds = array<i64: 64, 1>}, {pipeline_mode = #tpu.pipeline_mode<synchronous>, transform_indices = @transform_6, window_bounds = array<i64: 64, 4>}, {pipeline_mode = #tpu.pipeline_mode<synchronous>, transform_indices = @transform_7, window_bounds = array<i64: 1, 4>}, {pipeline_mode = #tpu.pipeline_mode<synchronous>, transform_indices = @transform_8, window_bounds = array<i64: 64, 4>}, {pipeline_mode = #tpu.pipeline_mode<synchronous>, transform_indices = @transform_9, window_bounds = array<i64: 64, 1>}, {pipeline_mode = #tpu.pipeline_mode<synchronous>, transform_indices = @transform_10, window_bounds = array<i64: 16, 64>}, {pipeline_mode = #tpu.pipeline_mode<synchronous>, transform_indices = @transform_11, window_bounds = array<i64: 16, 1>}, {transform_indices = @transform_12, window_bounds = array<i64: 1, 16, 256>}]} {
    %c0 = arith.constant 0 : index
    %c0_0 = arith.constant 0 : index
    %c0_1 = arith.constant 0 : index
    %0 = vector.load %arg1[%c0, %c0_0, %c0_1] : memref<1x16x256xf32, #tpu.memory_space<vmem>>, vector<1x16x256xf32>
    %1 = vector.shape_cast %0 : vector<1x16x256xf32> to vector<16x256xf32>
    %c0_2 = arith.constant 0 : index
    %c0_3 = arith.constant 0 : index
    %2 = vector.load %arg3[%c0_2, %c0_3] : memref<64x16xbf16, #tpu.memory_space<vmem>>, vector<64x16xbf16>
    %3 = arith.truncf %1 : vector<16x256xf32> to vector<16x256xbf16>
    %cst = arith.constant dense<0.000000e+00> : vector<64x256xf32>
    %4 = tpu.matmul %2, %3, %cst {dimension_numbers = #tpu.dot_dimension_numbers<[1], [0], [0], [1], [0, 0, 1, 1], [], []>} : vector<64x16xbf16>, vector<16x256xbf16>, vector<64x256xf32> -> vector<64x256xf32>
    %c0_4 = arith.constant 0 : index
    %c0_5 = arith.constant 0 : index
    %5 = vector.load %arg4[%c0_4, %c0_5] : memref<64x1xf32, #tpu.memory_space<vmem>>, vector<64x1xf32>
    %6 = vector.broadcast %5 : vector<64x1xf32> to vector<64x256xf32>
    %7 = arith.addf %4, %6 : vector<64x256xf32>
    %cst_6 = arith.constant 2.000000e+01 : f32
    %8 = vector.broadcast %cst_6 : f32 to vector<64x256xf32>
    %9 = arith.minimumf %7, %8 : vector<64x256xf32>
    %10 = arith.truncf %9 : vector<64x256xf32> to vector<64x256xbf16>
    %11 = math.exp %10 : vector<64x256xbf16>
    %12 = arith.extf %11 : vector<64x256xbf16> to vector<64x256xf32>
    %cst_7 = arith.constant 1.000000e+00 : f32
    %13 = vector.broadcast %cst_7 : f32 to vector<64x256xf32>
    %14 = arith.addf %13, %12 : vector<64x256xf32>
    %cst_8 = arith.constant 1.000000e+00 : f32
    %15 = vector.broadcast %cst_8 : f32 to vector<64x256xf32>
    %16 = arith.addf %15, %12 : vector<64x256xf32>
    %17 = arith.mulf %14, %16 : vector<64x256xf32>
    %cst_9 = arith.constant 1.000000e+00 : f32
    %18 = vector.broadcast %cst_9 : f32 to vector<64x256xf32>
    %19 = arith.subf %17, %18 : vector<64x256xf32>
    %20 = arith.mulf %7, %19 : vector<64x256xf32>
    %cst_10 = arith.constant 1.000000e+00 : f32
    %21 = vector.broadcast %cst_10 : f32 to vector<64x256xf32>
    %22 = arith.addf %17, %21 : vector<64x256xf32>
    %23 = tpu.reciprocal %22 {approx = true} : vector<64x256xf32> -> vector<64x256xf32>
    %24 = arith.mulf %20, %23 : vector<64x256xf32>
    %c0_11 = arith.constant 0 : index
    %c0_12 = arith.constant 0 : index
    %25 = vector.load %arg5[%c0_11, %c0_12] : memref<64x9xf32, #tpu.memory_space<vmem>>, vector<64x9xf32>
    %c0_13 = arith.constant 0 : index
    %c0_14 = arith.constant 0 : index
    %26 = vector.load %arg2[%c0_13, %c0_14] : memref<9x256xf32, #tpu.memory_space<vmem>>, vector<9x256xf32>
    %27 = vector.extract_strided_slice %25 {offsets = [0, 0], sizes = [64, 1], strides = [1, 1]} : vector<64x9xf32> to vector<64x1xf32>
    %28 = vector.extract_strided_slice %25 {offsets = [0, 1], sizes = [64, 1], strides = [1, 1]} : vector<64x9xf32> to vector<64x1xf32>
    %29 = vector.extract_strided_slice %25 {offsets = [0, 2], sizes = [64, 1], strides = [1, 1]} : vector<64x9xf32> to vector<64x1xf32>
    %30 = vector.extract_strided_slice %25 {offsets = [0, 3], sizes = [64, 1], strides = [1, 1]} : vector<64x9xf32> to vector<64x1xf32>
    %31 = vector.extract_strided_slice %25 {offsets = [0, 4], sizes = [64, 1], strides = [1, 1]} : vector<64x9xf32> to vector<64x1xf32>
    %32 = vector.extract_strided_slice %25 {offsets = [0, 5], sizes = [64, 1], strides = [1, 1]} : vector<64x9xf32> to vector<64x1xf32>
    %33 = vector.extract_strided_slice %25 {offsets = [0, 6], sizes = [64, 1], strides = [1, 1]} : vector<64x9xf32> to vector<64x1xf32>
    %34 = vector.extract_strided_slice %25 {offsets = [0, 7], sizes = [64, 1], strides = [1, 1]} : vector<64x9xf32> to vector<64x1xf32>
    %35 = vector.extract_strided_slice %25 {offsets = [0, 8], sizes = [64, 1], strides = [1, 1]} : vector<64x9xf32> to vector<64x1xf32>
    %36 = vector.broadcast %31 : vector<64x1xf32> to vector<64x256xf32>
    %37 = arith.mulf %24, %36 : vector<64x256xf32>
    %c17_i32 = arith.constant 17 : i32
    %38 = tpu.dynamic_rotate %24 by %c17_i32 dim 1 : vector<64x256xf32>, i32 -> vector<64x256xf32>
    %39 = vector.extract_strided_slice %26 {offsets = [0, 0], sizes = [1, 256], strides = [1, 1]} : vector<9x256xf32> to vector<1x256xf32>
    %40 = vector.broadcast %39 : vector<1x256xf32> to vector<64x256xf32>
    %41 = arith.mulf %38, %40 : vector<64x256xf32>
    %42 = vector.broadcast %27 : vector<64x1xf32> to vector<64x256xf32>
    %43 = arith.mulf %41, %42 : vector<64x256xf32>
    %44 = arith.addf %37, %43 : vector<64x256xf32>
    %c16_i32 = arith.constant 16 : i32
    %45 = tpu.dynamic_rotate %24 by %c16_i32 dim 1 : vector<64x256xf32>, i32 -> vector<64x256xf32>
    %46 = vector.extract_strided_slice %26 {offsets = [1, 0], sizes = [1, 256], strides = [1, 1]} : vector<9x256xf32> to vector<1x256xf32>
    %47 = vector.broadcast %46 : vector<1x256xf32> to vector<64x256xf32>
    %48 = arith.mulf %45, %47 : vector<64x256xf32>
    %49 = vector.broadcast %28 : vector<64x1xf32> to vector<64x256xf32>
    %50 = arith.mulf %48, %49 : vector<64x256xf32>
    %51 = arith.addf %44, %50 : vector<64x256xf32>
    %c15_i32 = arith.constant 15 : i32
    %52 = tpu.dynamic_rotate %24 by %c15_i32 dim 1 : vector<64x256xf32>, i32 -> vector<64x256xf32>
    %53 = vector.extract_strided_slice %26 {offsets = [2, 0], sizes = [1, 256], strides = [1, 1]} : vector<9x256xf32> to vector<1x256xf32>
    %54 = vector.broadcast %53 : vector<1x256xf32> to vector<64x256xf32>
    %55 = arith.mulf %52, %54 : vector<64x256xf32>
    %56 = vector.broadcast %29 : vector<64x1xf32> to vector<64x256xf32>
    %57 = arith.mulf %55, %56 : vector<64x256xf32>
    %58 = arith.addf %51, %57 : vector<64x256xf32>
    %c1_i32 = arith.constant 1 : i32
    %59 = tpu.dynamic_rotate %24 by %c1_i32 dim 1 : vector<64x256xf32>, i32 -> vector<64x256xf32>
    %60 = vector.extract_strided_slice %26 {offsets = [3, 0], sizes = [1, 256], strides = [1, 1]} : vector<9x256xf32> to vector<1x256xf32>
    %61 = vector.broadcast %60 : vector<1x256xf32> to vector<64x256xf32>
    %62 = arith.mulf %59, %61 : vector<64x256xf32>
    %63 = vector.broadcast %30 : vector<64x1xf32> to vector<64x256xf32>
    %64 = arith.mulf %62, %63 : vector<64x256xf32>
    %65 = arith.addf %58, %64 : vector<64x256xf32>
    %c255_i32 = arith.constant 255 : i32
    %66 = tpu.dynamic_rotate %24 by %c255_i32 dim 1 : vector<64x256xf32>, i32 -> vector<64x256xf32>
    %67 = vector.extract_strided_slice %26 {offsets = [5, 0], sizes = [1, 256], strides = [1, 1]} : vector<9x256xf32> to vector<1x256xf32>
    %68 = vector.broadcast %67 : vector<1x256xf32> to vector<64x256xf32>
    %69 = arith.mulf %66, %68 : vector<64x256xf32>
    %70 = vector.broadcast %32 : vector<64x1xf32> to vector<64x256xf32>
    %71 = arith.mulf %69, %70 : vector<64x256xf32>
    %72 = arith.addf %65, %71 : vector<64x256xf32>
    %c241_i32 = arith.constant 241 : i32
    %73 = tpu.dynamic_rotate %24 by %c241_i32 dim 1 : vector<64x256xf32>, i32 -> vector<64x256xf32>
    %74 = vector.extract_strided_slice %26 {offsets = [6, 0], sizes = [1, 256], strides = [1, 1]} : vector<9x256xf32> to vector<1x256xf32>
    %75 = vector.broadcast %74 : vector<1x256xf32> to vector<64x256xf32>
    %76 = arith.mulf %73, %75 : vector<64x256xf32>
    %77 = vector.broadcast %33 : vector<64x1xf32> to vector<64x256xf32>
    %78 = arith.mulf %76, %77 : vector<64x256xf32>
    %79 = arith.addf %72, %78 : vector<64x256xf32>
    %c240_i32 = arith.constant 240 : i32
    %80 = tpu.dynamic_rotate %24 by %c240_i32 dim 1 : vector<64x256xf32>, i32 -> vector<64x256xf32>
    %81 = vector.extract_strided_slice %26 {offsets = [7, 0], sizes = [1, 256], strides = [1, 1]} : vector<9x256xf32> to vector<1x256xf32>
    %82 = vector.broadcast %81 : vector<1x256xf32> to vector<64x256xf32>
    %83 = arith.mulf %80, %82 : vector<64x256xf32>
    %84 = vector.broadcast %34 : vector<64x1xf32> to vector<64x256xf32>
    %85 = arith.mulf %83, %84 : vector<64x256xf32>
    %86 = arith.addf %79, %85 : vector<64x256xf32>
    %c239_i32 = arith.constant 239 : i32
    %87 = tpu.dynamic_rotate %24 by %c239_i32 dim 1 : vector<64x256xf32>, i32 -> vector<64x256xf32>
    %88 = vector.extract_strided_slice %26 {offsets = [8, 0], sizes = [1, 256], strides = [1, 1]} : vector<9x256xf32> to vector<1x256xf32>
    %89 = vector.broadcast %88 : vector<1x256xf32> to vector<64x256xf32>
    %90 = arith.mulf %87, %89 : vector<64x256xf32>
    %91 = vector.broadcast %35 : vector<64x1xf32> to vector<64x256xf32>
    %92 = arith.mulf %90, %91 : vector<64x256xf32>
    %93 = arith.addf %86, %92 : vector<64x256xf32>
    %c0_15 = arith.constant 0 : index
    %c0_16 = arith.constant 0 : index
    %94 = vector.load %arg6[%c0_15, %c0_16] : memref<64x1xf32, #tpu.memory_space<vmem>>, vector<64x1xf32>
    %95 = vector.broadcast %94 : vector<64x1xf32> to vector<64x256xf32>
    %96 = arith.addf %93, %95 : vector<64x256xf32>
    %cst_17 = arith.constant 2.000000e+01 : f32
    %97 = vector.broadcast %cst_17 : f32 to vector<64x256xf32>
    %98 = arith.minimumf %96, %97 : vector<64x256xf32>
    %99 = arith.truncf %98 : vector<64x256xf32> to vector<64x256xbf16>
    %100 = math.exp %99 : vector<64x256xbf16>
    %101 = arith.extf %100 : vector<64x256xbf16> to vector<64x256xf32>
    %cst_18 = arith.constant 1.000000e+00 : f32
    %102 = vector.broadcast %cst_18 : f32 to vector<64x256xf32>
    %103 = arith.addf %102, %101 : vector<64x256xf32>
    %cst_19 = arith.constant 1.000000e+00 : f32
    %104 = vector.broadcast %cst_19 : f32 to vector<64x256xf32>
    %105 = arith.addf %104, %101 : vector<64x256xf32>
    %106 = arith.mulf %103, %105 : vector<64x256xf32>
    %cst_20 = arith.constant 1.000000e+00 : f32
    %107 = vector.broadcast %cst_20 : f32 to vector<64x256xf32>
    %108 = arith.subf %106, %107 : vector<64x256xf32>
    %109 = arith.mulf %96, %108 : vector<64x256xf32>
    %cst_21 = arith.constant 1.000000e+00 : f32
    %110 = vector.broadcast %cst_21 : f32 to vector<64x256xf32>
    %111 = arith.addf %106, %110 : vector<64x256xf32>
    %112 = tpu.reciprocal %111 {approx = true} : vector<64x256xf32> -> vector<64x256xf32>
    %113 = arith.mulf %109, %112 : vector<64x256xf32>
    %c0_22 = arith.constant 0 : index
    %c0_23 = arith.constant 0 : index
    %114 = vector.load %arg7[%c0_22, %c0_23] : memref<64x4xf32, #tpu.memory_space<vmem>>, vector<64x4xf32>
    %c0_24 = arith.constant 0 : index
    %c0_25 = arith.constant 0 : index
    %115 = vector.load %arg8[%c0_24, %c0_25] : memref<1x4xf32, #tpu.memory_space<vmem>>, vector<1x4xf32>
    %c0_26 = arith.constant 0 : index
    %c0_27 = arith.constant 0 : index
    %116 = vector.load %arg9[%c0_26, %c0_27] : memref<64x4xf32, #tpu.memory_space<vmem>>, vector<64x4xf32>
    %c0_28 = arith.constant 0 : index
    %c0_29 = arith.constant 0 : index
    %117 = vector.load %arg10[%c0_28, %c0_29] : memref<64x1xf32, #tpu.memory_space<vmem>>, vector<64x1xf32>
    %cst_30 = arith.constant dense<0.000000e+00> : vector<64xf32>
    %118 = vector.multi_reduction <add>, %113, %cst_30 [1] : vector<64x256xf32> to vector<64xf32>
    %119 = vector.shape_cast %118 : vector<64xf32> to vector<64x1xf32>
    %cst_31 = arith.constant 3.906250e-03 : f32
    %120 = vector.broadcast %cst_31 : f32 to vector<64x1xf32>
    %121 = arith.mulf %119, %120 : vector<64x1xf32>
    %122 = vector.broadcast %121 : vector<64x1xf32> to vector<64x4xf32>
    %123 = arith.mulf %114, %122 : vector<64x4xf32>
    %cst_32 = arith.constant dense<0.000000e+00> : vector<4xf32>
    %124 = vector.multi_reduction <add>, %123, %cst_32 [0] : vector<64x4xf32> to vector<4xf32>
    %125 = vector.shape_cast %124 : vector<4xf32> to vector<1x4xf32>
    %126 = arith.addf %125, %115 : vector<1x4xf32>
    %127 = arith.negf %126 : vector<1x4xf32>
    %128 = math.exp %127 : vector<1x4xf32>
    %cst_33 = arith.constant 1.000000e+00 : f32
    %129 = vector.broadcast %cst_33 : f32 to vector<1x4xf32>
    %130 = arith.addf %129, %128 : vector<1x4xf32>
    %131 = arith.divf %129, %130 : vector<1x4xf32>
    %132 = arith.mulf %126, %131 : vector<1x4xf32>
    %133 = vector.broadcast %132 : vector<1x4xf32> to vector<64x4xf32>
    %134 = arith.mulf %116, %133 : vector<64x4xf32>
    %cst_34 = arith.constant dense<0.000000e+00> : vector<64xf32>
    %135 = vector.multi_reduction <add>, %134, %cst_34 [1] : vector<64x4xf32> to vector<64xf32>
    %136 = vector.shape_cast %135 : vector<64xf32> to vector<64x1xf32>
    %137 = arith.addf %136, %117 : vector<64x1xf32>
    %138 = arith.negf %137 : vector<64x1xf32>
    %139 = math.exp %138 : vector<64x1xf32>
    %cst_35 = arith.constant 1.000000e+00 : f32
    %140 = vector.broadcast %cst_35 : f32 to vector<64x1xf32>
    %141 = arith.addf %140, %139 : vector<64x1xf32>
    %142 = arith.divf %140, %141 : vector<64x1xf32>
    %143 = vector.broadcast %142 : vector<64x1xf32> to vector<64x256xf32>
    %144 = arith.mulf %113, %143 : vector<64x256xf32>
    %c0_36 = arith.constant 0 : index
    %c0_37 = arith.constant 0 : index
    %145 = vector.load %arg11[%c0_36, %c0_37] : memref<16x64xbf16, #tpu.memory_space<vmem>>, vector<16x64xbf16>
    %146 = arith.truncf %144 : vector<64x256xf32> to vector<64x256xbf16>
    %cst_38 = arith.constant dense<0.000000e+00> : vector<16x256xf32>
    %147 = tpu.matmul %145, %146, %cst_38 {dimension_numbers = #tpu.dot_dimension_numbers<[1], [0], [0], [1], [0, 0, 1, 1], [], []>} : vector<16x64xbf16>, vector<64x256xbf16>, vector<16x256xf32> -> vector<16x256xf32>
    %c0_39 = arith.constant 0 : index
    %c0_40 = arith.constant 0 : index
    %148 = vector.load %arg12[%c0_39, %c0_40] : memref<16x1xf32, #tpu.memory_space<vmem>>, vector<16x1xf32>
    %149 = vector.broadcast %148 : vector<16x1xf32> to vector<16x256xf32>
    %150 = arith.addf %147, %149 : vector<16x256xf32>
    %151 = arith.addf %150, %1 : vector<16x256xf32>
    %c0_41 = arith.constant 0 : index
    %c0_42 = arith.constant 0 : index
    %c0_43 = arith.constant 0 : index
    %152 = vector.load %arg13[%c0_41, %c0_42, %c0_43] : memref<1x16x256xf32, #tpu.memory_space<vmem>>, vector<1x16x256xf32>
    %153 = vector.shape_cast %152 : vector<1x16x256xf32> to vector<16x256xf32>
    %154 = vector.shape_cast %151 : vector<16x256xf32> to vector<1x16x256xf32>
    tpu.vector_store %arg13[%c0_41, %c0_42, %c0_43], %154 {strides = array<i32>} : memref<1x16x256xf32, #tpu.memory_space<vmem>>, vector<1x16x256xf32>,
    return
  }
  func.func @transform_0(%arg0: i32) -> (i32, i32, i32) {
    %c0_i32 = arith.constant 0 : i32
    %c0_i32_0 = arith.constant 0 : i32
    %c0_i32_1 = arith.constant 0 : i32
    return %arg0, %c0_i32, %c0_i32_0 : i32, i32, i32
  }
  func.func @transform_1(%arg0: i32) -> (i32, i32) {
    %c0_i32 = arith.constant 0 : i32
    %c0_i32_0 = arith.constant 0 : i32
    %c0_i32_1 = arith.constant 0 : i32
    return %c0_i32, %c0_i32_0 : i32, i32
  }
  func.func @transform_2(%arg0: i32) -> (i32, i32) {
    %c0_i32 = arith.constant 0 : i32
    %c0_i32_0 = arith.constant 0 : i32
    %c0_i32_1 = arith.constant 0 : i32
    return %c0_i32, %c0_i32_0 : i32, i32
  }
  func.func @transform_3(%arg0: i32) -> (i32, i32) {
    %c0_i32 = arith.constant 0 : i32
    %c0_i32_0 = arith.constant 0 : i32
    %c0_i32_1 = arith.constant 0 : i32
    return %c0_i32, %c0_i32_0 : i32, i32
  }
  func.func @transform_4(%arg0: i32) -> (i32, i32) {
    %c0_i32 = arith.constant 0 : i32
    %c0_i32_0 = arith.constant 0 : i32
    %c0_i32_1 = arith.constant 0 : i32
    return %c0_i32, %c0_i32_0 : i32, i32
  }
  func.func @transform_5(%arg0: i32) -> (i32, i32) {
    %c0_i32 = arith.constant 0 : i32
    %c0_i32_0 = arith.constant 0 : i32
    %c0_i32_1 = arith.constant 0 : i32
    return %c0_i32, %c0_i32_0 : i32, i32
  }
  func.func @transform_6(%arg0: i32) -> (i32, i32) {
    %c0_i32 = arith.constant 0 : i32
    %c0_i32_0 = arith.constant 0 : i32
    %c0_i32_1 = arith.constant 0 : i32
    return %c0_i32, %c0_i32_0 : i32, i32
  }
  func.func @transform_7(%arg0: i32) -> (i32, i32) {
    %c0_i32 = arith.constant 0 : i32
    %c0_i32_0 = arith.constant 0 : i32
    %c0_i32_1 = arith.constant 0 : i32
    return %c0_i32, %c0_i32_0 : i32, i32
  }
  func.func @transform_8(%arg0: i32) -> (i32, i32) {
    %c0_i32 = arith.constant 0 : i32
    %c0_i32_0 = arith.constant 0 : i32
    %c0_i32_1 = arith.constant 0 : i32
    return %c0_i32, %c0_i32_0 : i32, i32
  }
  func.func @transform_9(%arg0: i32) -> (i32, i32) {
    %c0_i32 = arith.constant 0 : i32
    %c0_i32_0 = arith.constant 0 : i32
    %c0_i32_1 = arith.constant 0 : i32
    return %c0_i32, %c0_i32_0 : i32, i32
  }
  func.func @transform_10(%arg0: i32) -> (i32, i32) {
    %c0_i32 = arith.constant 0 : i32
    %c0_i32_0 = arith.constant 0 : i32
    %c0_i32_1 = arith.constant 0 : i32
    return %c0_i32, %c0_i32_0 : i32, i32
  }
  func.func @transform_11(%arg0: i32) -> (i32, i32) {
    %c0_i32 = arith.constant 0 : i32
    %c0_i32_0 = arith.constant 0 : i32
    %c0_i32_1 = arith.constant 0 : i32
    return %c0_i32, %c0_i32_0 : i32, i32
  }
  func.func @transform_12(%arg0: i32) -> (i32, i32, i32) {
    %c0_i32 = arith.constant 0 : i32
    %c0_i32_0 = arith.constant 0 : i32
    %c0_i32_1 = arith.constant 0 : i32
    return %arg0, %c0_i32, %c0_i32_0 : i32, i32, i32
  }
}

</mosaic_0001>

<bundles_post_ra>
// kernel: mbconv_block.1
= control target key start
LH: loop header
LB: loop body
LE: loop exit
PB: predicated region body
PF: predicated region fallthrough
CT: control target
= control target key end

     0   :  { %s2922_s21 = smov 0   ;;  %s5085_s0 = inlined_call_operand.vmem [shape: f32[2,16,256], index: 0, kind: input, shape index: {}]   ;;  %s5086_s1 = inlined_call_operand.vmem [shape: f32[9,256], index: 1, kind: input, shape index: {}]   ;;  %s5087_s2 = inlined_call_operand.vmem [shape: bf16[64,16], index: 2, kind: input, shape index: {}]   ;;  %s5088_s3 = inlined_call_operand.vmem [shape: f32[64,1], index: 3, kind: input, shape index: {}]   ;;  %s5089_s4 = inlined_call_operand.vmem [shape: f32[64,9], index: 4, kind: input, shape index: {}]   ;;  %s5090_s5 = inlined_call_operand.vmem [shape: f32[64,1], index: 5, kind: input, shape index: {}]   ;;  %s5091_s6 = inlined_call_operand.vmem [shape: f32[64,4], index: 6, kind: input, shape index: {}]   ;;  %s5092_s7 = inlined_call_operand.vmem [shape: f32[1,4], index: 7, kind: input, shape index: {}]   ;;  %s5093_s8 = inlined_call_operand.vmem [shape: f32[64,4], index: 8, kind: input, shape index: {}]   ;;  %s5094_s9 = inlined_call_operand.vmem [shape: f32[64,1], index: 9, kind: input, shape index: {}]   ;;  %s5095_s10 = inlined_call_operand.vmem [shape: bf16[16,64], index: 10, kind: input, shape index: {}]   ;;  %s5096_s11 = inlined_call_operand.vmem [shape: f32[16,1], index: 11, kind: input, shape index: {}]   ;;  %s5097_s12 = inlined_call_operand.vmem [shape: f32[2,16,256], index: 12, kind: output, shape index: {}]  }
   0x1 LB: > { %s2545_s22 = sadd.s32 4294967295, %s2838_s21   ;;  %p2549_p0 = scmp.ge.s32.totalorder %s2838_s21, 1  ;;  %s2838_s21 = sphi %s2922_s21, %s22_s21  }
   0x2   : > { %p362_p1 = scmp.lt.s32.totalorder %s2838_s21, 3 }
   0x4   : > { %p363_p2 = pnand %p2549_p0, %p362_p1 }
   0x6   : > { %366 = sbr.rel (%p363_p2) target bundleno = 1527 (0x5f7), region = 68 }
   0xb   : > { %p404_p3 = scmp.lt.s32.totalorder %s2545_s22, 1  ;;  %v5098_v0 = vmov 0   ;;  %v2841_v1 = vmov 4   ;;  %v2940_v2 = vld [vmem:[%s5089_s4] sm:$0xff]  ;;  %v2953_v3 = vld [vmem:[%s5089_s4 + $0x18] sm:$0xff]  ;;  %v431_v9 = vld [vmem:[%s5088_s3 + $0x10] sm:$0xff] }
   0xc   : > { %542 = vmatprep.mubr.bf16.mxu0 %v5098_v0  ;;  %2636 = vset.pattern.permute.xlu1 %v5098_v0  ;;  %v2683_v11 = vld [vmem:[%s5087_s2] sm:$0xff]   ;;  %v432_v12 = vld [vmem:[%s5088_s3 + $0x18] sm:$0xff]  ;;  %vm497_vm0 = vcmask 130048   ;;  %v2972_v13 = vld [vmem:[%s5089_s4 + $0x30] sm:$0xff]  ;;  %v2842_v27 = vmov 1   ;;  %v2843_v28 = vmov 2  }
   0xd   : > { %s5536_s22 = smov (!%p404_p3, %s2545_s22), 1  ;;  %2471 = vmatprep.mubr.bf16.mxu1 %v5098_v0  ;;  %2637 = vset.pattern.permute.xlu0 %v2841_v1  ;;  %v434_v14 = vld [vmem:[%s5088_s3 + $0x28] sm:$0xff]  ;;  %v429_v15 = vld [vmem:[%s5088_s3] sm:$0xff]  ;;  %v436_v17 = vld [vmem:[%s5088_s3 + $0x38] sm:$0xff]  ;;  %v5102_v30 = vmov 3   ;;  %v5105_v31 = vmov 5  }
   0xe   : > { %s2609_s23 = sshll.u32 %s5536_s22, 5  ;;  %773 = vperm.xlu0 %2637, %v2940_v2   ;;  %449 = vperm.xlu1 %2636, %v431_v9   ;;  %v2684_v16 = vld [vmem:[%s5087_s2 + $0x8] sm:$0xff]   ;;  %v433_v20 = vld [vmem:[%s5088_s3 + $0x20] sm:$0xff]  ;;  %v2685_v21 = vld [vmem:[%s5087_s2 + $0x10] sm:$0xff]   ;;  %v5103_v32 = vmov 6   ;;  %v5100_v33 = vmov 7  }
   0xf   : > { %s2947_s28 = scalar_lea.vmem %s5085_s0, %s2609_s23  ;;  %v430_v18 = vld [vmem:[%s5088_s3 + $0x8] sm:$0xff]  ;;  %v3011_v22 = vld [vmem:[%s5089_s4 + $0x10] sm:$0xff]  ;;  %v3022_v24 = vld [vmem:[%s5089_s4 + $0x20] sm:$0xff]  ;;  %s2848_s24 = smov 17   ;;  %vm2230_vm9 = vcmask 31744   ;;  %vm2435_vm10 = vcmask 523264  }
  0x10   : > { %v416_v4 = vld [vmem:[%s2947_s28 + $0x8] sm:$0xff]  ;;  %v418_v5 = vld [vmem:[%s2947_s28 + $0x18] sm:$0xff]  ;;  %v415_v6 = vld [vmem:[%s2947_s28] sm:$0xff]  ;;  %s2849_s25 = smov 16   ;;  %s2850_s26 = smov 15  }
  0x11   : > { %v428_v7 = vpack.c.bf16 %v418_v5, %v416_v4  ;;  %v417_v8 = vld [vmem:[%s2947_s28 + $0x10] sm:$0xff]  ;;  %v2998_v19 = vld [vmem:[%s5089_s4 + $0x8] sm:$0xff]  ;;  %v2686_v25 = vld [vmem:[%s5087_s2 + $0x18] sm:$0xff]   ;;  %s2851_s27 = smov 1   ;;  %s2852_s29 = smov 127  }
  0x12   : > { %v427_v10 = vpack.c.bf16 %v417_v8, %v415_v6  ;;  %788 = vperm.xlu0 %2637, %v2953_v3   ;;  %454 = vperm.xlu1 %2636, %v432_v12   ;;  %v435_v23 = vld [vmem:[%s5088_s3 + $0x30] sm:$0xff]  ;;  %v3038_v26 = vld [vmem:[%s5089_s4 + $0x38] sm:$0xff]  ;;  %v3049_v29 = vld [vmem:[%s5089_s4 + $0x28] sm:$0xff]  ;;  %s2853_s30 = smov 113   ;;  %s2854_s13 = smov 112  }
  0x13   : > { %524 = vmatprep.subr.bf16.mxu0 %v428_v7  ;;  %s2855_s14 = smov 111  }
  0x14   : > { %525 = vmatpush1.bf16.msra.mxu0 %v427_v10 }
  0x16   : > { %803 = vperm.xlu0 %2637, %v2972_v13   ;;  %464 = vperm.xlu1 %2636, %v434_v14  }
  0x17   : > { %2558 = vmatmul.mubr.msk.bf16.vlgmr.msra.gmra.mxu0 %vm497_vm0, %v2683_v11 }
  0x18   : > { %552 = vmatprep.mubr.bf16.mxu0 %v5098_v0 }
  0x1a   : > { %2649 = vset.pattern.permute.xlu0 %v5098_v0  ;;  %474 = vperm.xlu1 %2636, %v436_v17  }
  0x1b   : > { %439 = vperm.xlu0 %2649, %v429_v15  }
  0x1e   : > { %2638 = vset.pattern.permute.xlu1 %v2841_v1 }
  0x1f   : > { %2559 = vmatmul.mubr.msk.bf16.gmra.mxu0 %vm497_vm0, %v2684_v16  ;;  %444 = vperm.xlu0 %2649, %v430_v18  }
  0x20   : > { %562 = vmatprep.mubr.bf16.mxu0 %v5098_v0  ;;  %778 = vperm.xlu1 %2638, %v2998_v19  }
  0x23   : > { %459 = vperm.xlu0 %2649, %v433_v20  }
  0x24   : > { %783 = vperm.xlu1 %2638, %v3011_v22  }
  0x27   : > { %2560 = vmatmul.mubr.msk.bf16.gmra.mxu0 %vm497_vm0, %v2685_v21  ;;  %469 = vperm.xlu0 %2649, %v435_v23  }
  0x28   : > { %572 = vmatprep.mubr.bf16.mxu0 %v5098_v0  ;;  %793 = vperm.xlu1 %2638, %v3022_v24  }
  0x2b   : > { %903 = vperm.xlu0 %2649, %v2940_v2  }
  0x2c   : > { %2639 = vset.pattern.permute.xlu1 %v5098_v0 }
  0x2d   : > { %907 = vperm.xlu1 %2639, %v2998_v19  }
  0x2f   : > { %2561 = vmatmul.mubr.msk.bf16.gmra.mxu0 %vm497_vm0, %v2686_v25  ;;  %915 = vperm.xlu0 %2649, %v2953_v3  }
  0x31   : > { %911 = vperm.xlu1 %2639, %v3011_v22  }
  0x33   : > { %919 = vperm.xlu0 %2649, %v3022_v24  }
  0x35   : > { %2640 = vset.pattern.permute.xlu1 %v2842_v27 }
  0x36   : > { %1040 = vperm.xlu1 %2640, %v2940_v2  }
  0x37   : > { %931 = vperm.xlu0 %2649, %v3038_v26  }
  0x3a   : > { %1052 = vperm.xlu1 %2640, %v2953_v3  }
  0x3b   : > { %2652 = vset.pattern.permute.xlu0 %v2842_v27 }
  0x3c   : > { %1044 = vperm.xlu0 %2652, %v2998_v19  }
  0x3e   : > { %2641 = vset.pattern.permute.xlu1 %v2843_v28 }
  0x3f   : > { %1181 = vperm.xlu1 %2641, %v2998_v19  }
  0x40   : > { %1048 = vperm.xlu0 %2652, %v3011_v22  }
  0x43   : > { %2642 = vset.pattern.permute.xlu1 %v2841_v1 }
  0x44   : > { %1056 = vperm.xlu0 %2652, %v3022_v24   ;;  %798 = vperm.xlu1 %2642, %v3049_v29  }
  0x48   : > { %1064 = vperm.xlu0 %2652, %v2972_v13   ;;  %2643 = vset.pattern.permute.xlu1 %v5098_v0 }
  0x49   : > { %923 = vperm.xlu1 %2643, %v3049_v29  }
  0x4c   : > { %2656 = vset.pattern.permute.xlu0 %v2843_v28 }
  0x4d   : > { %1177 = vperm.xlu0 %2656, %v2940_v2   ;;  %2644 = vset.pattern.permute.xlu1 %v2843_v28 }
  0x4e   : > { %1185 = vperm.xlu1 %2644, %v3011_v22  }
  0x51   : > { %1189 = vperm.xlu0 %2656, %v2953_v3  }
  0x52   : > { %2645 = vset.pattern.permute.xlu1 %v5102_v30 }
  0x53   : > { %1314 = vperm.xlu1 %2645, %v2940_v2  }
  0x55   : > { %1193 = vperm.xlu0 %2656, %v3022_v24  }
  0x57   : > { %1318 = vperm.xlu1 %2645, %v2998_v19  }
  0x59   : > { %1201 = vperm.xlu0 %2656, %v2972_v13  }
  0x5b   : > { %2646 = vset.pattern.permute.xlu1 %v2842_v27 }
  0x5c   : > { %1060 = vperm.xlu1 %2646, %v3049_v29  }
  0x5d   : > { %2661 = vset.pattern.permute.xlu0 %v5102_v30 }
  0x5e   : > { %1326 = vperm.xlu0 %2661, %v2953_v3  }
  0x60   : > { %2647 = vset.pattern.permute.xlu1 %v5102_v30 }
  0x61   : > { %1322 = vperm.xlu1 %2647, %v3011_v22  }
  0x62   : > { %1334 = vperm.xlu0 %2661, %v3049_v29  }
  0x65   : > { %2648 = vset.pattern.permute.xlu1 %v5105_v31 }
  0x66   : > { %1451 = vperm.xlu1 %2648, %v2940_v2  }
  0x6a   : > { %1455 = vperm.xlu1 %2648, %v2998_v19  }
  0x6e   : > { %2650 = vset.pattern.permute.xlu1 %v2841_v1 }
  0x6f   : > { %808 = vperm.xlu1 %2650, %v3038_v26  }
  0x73   : > { %2651 = vset.pattern.permute.xlu1 %v5098_v0 }
  0x74   : > { %927 = vperm.xlu1 %2651, %v2972_v13  }
  0x78   : > { %2653 = vset.pattern.permute.xlu1 %v2843_v28 }
  0x79   : > { %1197 = vperm.xlu1 %2653, %v3049_v29  }
  0x7d   : > { %2654 = vset.pattern.permute.xlu1 %v5105_v31 }
  0x7e   : > { %1459 = vperm.xlu1 %2654, %v3011_v22  }
  0x82   : > { %2655 = vset.pattern.permute.xlu1 %v5103_v32 }
  0x83   : > { %1588 = vperm.xlu1 %2655, %v2940_v2  }
  0x87   : > { %1592 = vperm.xlu1 %2655, %v2998_v19  }
  0x89   : > { %v3095_v34 = vpop.permute.xlu1 %449  ;;  %v3099_v36 = vpop.permute.xlu0 %773 }
  0x8b   : > { %2657 = vset.pattern.permute.xlu1 %v2842_v27 }
  0x8c   : > { %1068 = vperm.xlu1 %2657, %v3038_v26  }
  0x8d   : > { %v3097_v35 = vpop.permute.xlu1 %454  ;;  %v3103_v38 = vpop.permute.xlu0 %788 }
  0x90   : > { %2658 = vset.pattern.permute.xlu1 %v5102_v30 }
  0x91   : > { %1330 = vperm.xlu1 %2658, %v3022_v24   ;;  %v3101_v37 = vpop.permute.xlu1 %464  ;;  %v3107_v40 = vpop.permute.xlu0 %803 }
  0x95   : > { %2659 = vset.pattern.permute.xlu1 %v5103_v32  ;;  %v3105_v39 = vpop.permute.xlu1 %474 }
  0x96   : > { %1600 = vperm.xlu1 %2659, %v2953_v3   ;;  %v440_v42 = vpop.permute.xlu0 %439 }
  0x9a   : > { %2660 = vset.pattern.permute.xlu1 %v5100_v33  ;;  %v445_v47 = vpop.permute.xlu0 %444 }
  0x9b   : > { %1725 = vperm.xlu1 %2660, %v2940_v2   ;;  %v3109_v41 = vpop.permute.xlu1 %778 }
  0x9f   : > { %2662 = vset.pattern.permute.xlu1 %v2843_v28  ;;  %v3111_v44 = vpop.permute.xlu1 %783 }
  0xa0   : > { %1205 = vperm.xlu1 %2662, %v3038_v26  }
  0xa3   : > { %v3113_v51 = vpop.permute.xlu1 %793 }
  0xa4   : > { %2663 = vset.pattern.permute.xlu1 %v5105_v31  ;;  %5236 = vst [vmem:[#allocation2_spill] sm:$0xff] %v3113_v51 }
  0xa5   : > { %1467 = vperm.xlu1 %2663, %v3022_v24  }
  0xa8   : > { %v3119_v58 = vpop.permute.xlu1 %907 }
  0xa9   : > { %2664 = vset.pattern.permute.xlu1 %v5100_v33 }
  0xac   : > { %v3123_v62 = vpop.permute.xlu1 %911 }
  0xad   : > { %5237 = vst [vmem:[#allocation3_spill] sm:$0xff] %v3123_v62 }
  0xb1   : > { %v3125_v2 = vpop.permute.xlu1 %1040 }
  0xb5   : > { %v3127_v11 = vpop.permute.xlu1 %1052 }
  0xb6   : > { %5238 = vst [vmem:[#allocation4_spill] sm:$0xff] %v3127_v11 }
  0xba   : > { %v3135_v19 = vpop.permute.xlu1 %1181 }
  0xbb   : > { %5239 = vst [vmem:[#allocation5_spill] sm:$0xff] %v3135_v19 }
  0xbf   : > { %v3139_v27 = vpop.permute.xlu1 %798 }
  0xd7   : > { %v544_v43 = vpop.f32.mrf.mxu0 }
  0xd8   : > { %v545_v46 = vadd.f32 %v544_v43, %v440_v42 }
  0xd9   : > { %v546_v45 = vpop.f32.mrf.mxu0 }
  0xda   : > { %v583_v52 = vmin.f32 %v545_v46, 20.0  ;;  %v3117_v56 = vadd.f32 %v546_v45, %v440_v42 }
  0xdb   : > { %v548_v48 = vpop.f32.mrf.mxu0 }
  0xdc   : > { %v549_v49 = vadd.f32 %v548_v48, %v445_v47  ;;  %v584_v60 = vmin.f32 %v3117_v56, 20.0 }
  0xdd   : > { %v550_v50 = vpop.f32.mrf.mxu0 }
  0xde   : > { %v585_v53 = vmin.f32 %v549_v49, 20.0  ;;  %v3115_v55 = vadd.f32 %v550_v50, %v445_v47 }
  0xdf   : > { %v554_v1 = vpop.f32.mrf.mxu0 }
  0xe0   : > { %v599_v54 = vpack.c.bf16 %v585_v53, %v583_v52  ;;  %v586_v59 = vmin.f32 %v3115_v55, 20.0  ;;  %v3130_v15 = vadd.f32 %v554_v1, %v3095_v34 }
  0xe1   : > { %v556_v4 = vpop.f32.mrf.mxu0 }
  0xe2   : > { %v608_v57 = vmul.bf16 1069105081, %v599_v54  ;;  %v600_v61 = vpack.c.bf16 %v586_v59, %v584_v60  ;;  %v587_v20 = vmin.f32 %v3130_v15, 20.0  ;;  %v3142_v50 = vadd.f32 %v556_v4, %v3095_v34 }
  0xe3   : > { %v558_v10 = vpop.f32.mrf.mxu0 }
  0xe4   : > { %2688 = vpow.bf16 %v608_v57  ;;  %v611_v63 = vmul.bf16 1069105081, %v600_v61  ;;  %v3133_v16 = vadd.f32 %v558_v10, %v3097_v35  ;;  %v3147_v57 = vpop.permute.xlu1 %923 }
  0xe5   : > { %v560_v42 = vpop.f32.mrf.mxu0  ;;  %5240 = vst [vmem:[#allocation6_spill] sm:$0xff] %v3147_v57 }
  0xe6   : > { %2690 = vpow.bf16 %v611_v63  ;;  %v589_v21 = vmin.f32 %v3133_v16, 20.0  ;;  %v3145_v52 = vadd.f32 %v560_v42, %v3097_v35 }
  0xe8   : > { %v601_v24 = vpack.c.bf16 %v589_v21, %v587_v20  ;;  %v460_v20 = vpop.permute.xlu0 %459 }
  0xea   : > { %v614_v47 = vmul.bf16 1069105081, %v601_v24 }
  0xf2   : > { %v2689_v5 = vpop.eup %2688 }
  0xf3   : > { %v631_v6 = vunpack.c.l.bf16 %v2689_v5  ;;  %v633_v7 = vunpack.c.h.bf16 %v2689_v5  ;;  %v588_v5 = vmin.f32 %v3142_v50, 20.0 }
  0xf4   : > { %v2691_v23 = vpop.eup %2690 }
  0xf5   : > { %v647_v8 = vadd.f32 1.0, %v631_v6  ;;  %v649_v9 = vadd.f32 1.0, %v633_v7  ;;  %v632_v25 = vunpack.c.l.bf16 %v2691_v23  ;;  %v634_v28 = vunpack.c.h.bf16 %v2691_v23  ;;  %v3159_v7 = vpop.permute.xlu1 %1185 }
  0xf6   : > { %v590_v6 = vmin.f32 %v3145_v52, 20.0  ;;  %5241 = vst [vmem:[#allocation7_spill] sm:$0xff] %v3159_v7 }
  0xf7   : > { %v663_v12 = vmul.f32 %v647_v8, %v647_v8  ;;  %v665_v14 = vmul.f32 %v649_v9, %v649_v9  ;;  %v648_v48 = vadd.f32 1.0, %v632_v25  ;;  %v650_v53 = vadd.f32 1.0, %v634_v28 }
  0xf9   : > { %v711_v17 = vadd.f32 1.0, %v663_v12  ;;  %v713_v18 = vadd.f32 1.0, %v665_v14  ;;  %v2562_v43 = vadd.f32 -1.0, %v663_v12  ;;  %v2564_v45 = vadd.f32 -1.0, %v665_v14  ;;  %v3165_v12 = vpop.permute.xlu1 %1314 }
  0xfa   : > { %v664_v1 = vmul.f32 %v648_v48, %v648_v48  ;;  %v666_v4 = vmul.f32 %v650_v53, %v650_v53  ;;  %5242 = vst [vmem:[#allocation8_spill] sm:$0xff] %v3165_v12 }
  0xfb   : > { %2692 = vrcp.f32 %v711_v17  ;;  %v695_v54 = vmul.f32 %v2562_v43, %v545_v46  ;;  %v697_v60 = vmul.f32 %v2564_v45, %v549_v49  ;;  %v602_v46 = vpack.c.bf16 %v590_v6, %v588_v5  ;;  %v564_v49 = vpop.f32.mrf.mxu0 }
  0xfc   : > { %2694 = vrcp.f32 %v713_v18  ;;  %v712_v35 = vadd.f32 1.0, %v664_v1  ;;  %v714_v8 = vadd.f32 1.0, %v666_v4  ;;  %v3180_v25 = vadd.f32 %v564_v49, %v460_v20 }
  0xfd   : > { %2696 = vpow.bf16 %v614_v47  ;;  %v617_v9 = vmul.bf16 1069105081, %v602_v46  ;;  %v566_v10 = vpop.f32.mrf.mxu0  ;;  %v3178_v23 = vpop.permute.xlu1 %1318  ;;  %v2563_v28 = vadd.f32 -1.0, %v664_v1  ;;  %v2565_v42 = vadd.f32 -1.0, %v666_v4 }
  0xfe   : > { %2698 = vrcp.f32 %v712_v35  ;;  %5243 = vst [vmem:[#allocation9_spill] sm:$0xff] %v3178_v23  ;;  %v591_v53 = vmin.f32 %v3180_v25, 20.0 }
  0xff   : > { %2700 = vrcp.f32 %v714_v8  ;;  %v568_v14 = vpop.f32.mrf.mxu0 }
 0x100   : > { %2702 = vpow.bf16 %v617_v9  ;;  %v3174_v18 = vadd.f32 %v568_v14, %v3101_v37  ;;  %v470_v14 = vpop.permute.xlu0 %469 }
 0x101   : > { %v570_v46 = vpop.f32.mrf.mxu0 }
 0x102   : > { %v593_v43 = vmin.f32 %v3174_v18, 20.0  ;;  %v3205_v8 = vadd.f32 %v570_v46, %v3101_v37 }
 0x104   : > { %v603_v1 = vpack.c.bf16 %v593_v43, %v591_v53  ;;  %v574_v43 = vpop.f32.mrf.mxu0 }
 0x106   : > { %v620_v49 = vmul.bf16 1069105081, %v603_v1 }
 0x108   : > { %v2693_v59 = vpop.eup %2692  ;;  %2704 = vpow.bf16 %v620_v49 }
 0x109   : > { %v2695_v61 = vpop.eup %2694  ;;  %v3149_v63 = vmul.f32 %v2693_v59, %v695_v54  ;;  %v696_v59 = vmul.f32 %v2563_v28, %v3117_v56  ;;  %v594_v28 = vmin.f32 %v3205_v8, 20.0 }
 0x10a   : > { %v3153_v34 = vmul.f32 %v2695_v61, %v697_v60  ;;  %v3189_v60 = vpop.permute.xlu1 %1060  ;;  %v698_v61 = vmul.f32 %v2565_v42, %v3115_v55 }
 0x10b   : > { %827 = vrot.lane.b32.xlu1 %v3149_v63, %s2848_s24  ;;  %v2697_v17 = vpop.eup %2696  ;;  %5244 = vst [vmem:[#allocation10_spill] sm:$0xff] %v3189_v60 }
 0x10c   : > { %829 = vrot.lane.b32.xlu0 %v3153_v34, %s2848_s24  ;;  %v635_v21 = vunpack.c.l.bf16 %v2697_v17  ;;  %v637_v24 = vunpack.c.h.bf16 %v2697_v17  ;;  %v2699_v47 = vpop.eup %2698 }
 0x10d   : > { %v2701_v54 = vpop.eup %2700  ;;  %v3196_v5 = vmul.f32 %v2699_v47, %v696_v59 }
 0x10e   : > { %v651_v45 = vadd.f32 1.0, %v635_v21  ;;  %v653_v48 = vadd.f32 1.0, %v637_v24  ;;  %v3198_v4 = vmul.f32 %v2701_v54, %v698_v61  ;;  %v2703_v56 = vpop.eup %2702  ;;  %v3207_v9 = vpop.permute.xlu1 %1322  ;;  %v3209_v24 = vadd.f32 %v566_v10, %v460_v20 }
 0x10f   : > { %968 = vrot.lane.b32.xlu1 %v3153_v34, %s2849_s25  ;;  %5245 = vst [vmem:[#allocation11_spill] sm:$0xff] %v3207_v9  ;;  %v636_v21 = vunpack.c.l.bf16 %v2703_v56  ;;  %v638_v37 = vunpack.c.h.bf16 %v2703_v56  ;;  %v3221_v10 = vpop.permute.xlu0 %903  ;;  %v576_v54 = vpop.f32.mrf.mxu0 }
 0x110   : > { %966 = vrot.lane.b32.xlu0 %v3149_v63, %s2849_s25  ;;  %v667_v6 = vmul.f32 %v651_v45, %v651_v45  ;;  %v669_v35 = vmul.f32 %v653_v48, %v653_v48  ;;  %v592_v45 = vmin.f32 %v3209_v24, 20.0  ;;  %v3261_v30 = vadd.f32 %v576_v54, %v470_v14 }
 0x111   : > { %v652_v42 = vadd.f32 1.0, %v636_v21  ;;  %v654_v48 = vadd.f32 1.0, %v638_v37  ;;  %v578_v49 = vpop.f32.mrf.mxu0 }
 0x112   : > { %v715_v55 = vadd.f32 1.0, %v667_v6  ;;  %v717_v17 = vadd.f32 1.0, %v669_v35  ;;  %v3217_v47 = vpop.permute.xlu1 %1451  ;;  %v604_v20 = vpack.c.bf16 %v594_v28, %v592_v45  ;;  %v3238_v21 = vadd.f32 %v578_v49, %v3105_v39 }
 0x113   : > { %1103 = vrot.lane.b32.xlu1 %v3149_v63, %s2850_s26  ;;  %5246 = vst [vmem:[#allocation12_spill] sm:$0xff] %v3217_v47  ;;  %v668_v53 = vmul.f32 %v652_v42, %v652_v42  ;;  %v3231_v1 = vpop.permute.xlu0 %915  ;;  %v670_v46 = vmul.f32 %v654_v48, %v654_v48  ;;  %v580_v45 = vpop.f32.mrf.mxu0 }
 0x114   : > { %1105 = vrot.lane.b32.xlu0 %v3153_v34, %s2850_s26  ;;  %2706 = vrcp.f32 %v715_v55  ;;  %v623_v59 = vmul.bf16 1069105081, %v604_v20  ;;  %5248 = vst [vmem:[#allocation14_spill] sm:$0xff] %v3231_v1  ;;  %v2566_v55 = vadd.f32 -1.0, %v667_v6  ;;  %v3241_v6 = vadd.f32 %v574_v43, %v470_v14 }
 0x115   : > { %2708 = vrcp.f32 %v717_v17  ;;  %v716_v56 = vadd.f32 1.0, %v668_v53  ;;  %v2568_v17 = vadd.f32 -1.0, %v669_v35  ;;  %v718_v42 = vadd.f32 1.0, %v670_v46 }
 0x116   : > { %v3229_v61 = vpop.permute.xlu1 %1455  ;;  %2710 = vpow.bf16 %v623_v59  ;;  %v2705_v28 = vpop.eup %2704  ;;  %v699_v48 = vmul.f32 %v2566_v55, %v3130_v15  ;;  %v3256_v15 = vadd.f32 %v580_v45, %v3105_v39  ;;  %v595_v33 = vmin.f32 %v3241_v6, 20.0 }
 0x117   : > { %1240 = vrot.lane.b32.xlu1 %v3149_v63, %s2851_s27  ;;  %5247 = vst [vmem:[#allocation13_spill] sm:$0xff] %v3229_v61  ;;  %2712 = vrcp.f32 %v716_v56  ;;  %v3247_v35 = vpop.permute.xlu0 %919  ;;  %v701_v59 = vmul.f32 %v2568_v17, %v3133_v16  ;;  %v597_v56 = vmin.f32 %v3238_v21, 20.0  ;;  %v639_v55 = vunpack.c.l.bf16 %v2705_v28 }
 0x118   : > { %1242 = vrot.lane.b32.xlu0 %v3153_v34, %s2851_s27  ;;  %5249 = vst [vmem:[#allocation15_spill] sm:$0xff] %v3247_v35  ;;  %2714 = vrcp.f32 %v718_v42  ;;  %v598_v39 = vmin.f32 %v3256_v15, 20.0  ;;  %v641_v45 = vunpack.c.h.bf16 %v2705_v28  ;;  %v2567_v14 = vadd.f32 -1.0, %v668_v53 }
 0x119   : > { %v605_v17 = vpack.c.bf16 %v597_v56, %v595_v33  ;;  %v655_v42 = vadd.f32 1.0, %v639_v55  ;;  %v2569_v55 = vadd.f32 -1.0, %v670_v46  ;;  %v5294_v1 = vmov 6  }
 0x11a   : > { %v3243_v0 = vpop.permute.xlu1 %808  ;;  %v657_v33 = vadd.f32 1.0, %v641_v45  ;;  %v700_v35 = vmul.f32 %v2567_v14, %v3142_v50 }
 0x11b   : > { %1377 = vrot.lane.b32.xlu1 %v3149_v63, %s2852_s29  ;;  %v626_v54 = vmul.bf16 1069105081, %v605_v17  ;;  %v671_v56 = vmul.f32 %v655_v42, %v655_v42  ;;  %v702_v46 = vmul.f32 %v2569_v55, %v3145_v52 }
 0x11c   : > { %1379 = vrot.lane.b32.xlu0 %v3153_v34, %s2852_s29 }
 0x11d   : > { %2716 = vpow.bf16 %v626_v54  ;;  %v719_v45 = vadd.f32 1.0, %v671_v56 }
 0x11e   : > { %v3265_v16 = vpop.permute.xlu1 %927 }
 0x11f   : > { %1516 = vrot.lane.b32.xlu1 %v3153_v34, %s2853_s30  ;;  %5250 = vst [vmem:[#allocation16_spill] sm:$0xff] %v3265_v16 }
 0x120   : > { %1514 = vrot.lane.b32.xlu0 %v3149_v63, %s2853_s30 }
 0x121   : > { %v2707_v37 = vpop.eup %2706 }
 0x122   : > { %v2709_v20 = vpop.eup %2708  ;;  %v3252_v49 = vmul.f32 %v2707_v37, %v699_v48  ;;  %v3270_v37 = vpop.permute.xlu0 %931 }
 0x123   : > { %843 = vrot.lane.b32.xlu1 %v3196_v5, %s2848_s24  ;;  %v3258_v43 = vmul.f32 %v2709_v20, %v701_v59  ;;  %5251 = vst [vmem:[#allocation17_spill] sm:$0xff] %v3270_v37  ;;  %v596_v20 = vmin.f32 %v3261_v30, 20.0  ;;  %v3277_v59 = vpop.permute.xlu1 %1197 }
 0x124   : > { %845 = vrot.lane.b32.xlu0 %v3198_v4, %s2848_s24  ;;  %5252 = vst [vmem:[#allocation18_spill] sm:$0xff] %v3277_v59  ;;  %v2711_v31 = vpop.eup %2710 }
 0x125   : > { %v606_v48 = vpack.c.bf16 %v598_v39, %v596_v20  ;;  %v2713_v28 = vpop.eup %2712  ;;  %v673_v39 = vmul.f32 %v657_v33, %v657_v33  ;;  %v640_v42 = vunpack.c.l.bf16 %v2711_v31  ;;  %v642_v52 = vunpack.c.h.bf16 %v2711_v31 }
 0x126   : > { %v3279_v32 = vpop.permute.xlu0 %1044  ;;  %v3286_v17 = vmul.f32 %v2713_v28, %v700_v35  ;;  %v2715_v20 = vpop.eup %2714 }
 0x127   : > { %984 = vrot.lane.b32.xlu1 %v3198_v4, %s2849_s25  ;;  %v629_v53 = vmul.bf16 1069105081, %v606_v48  ;;  %v3290_v51 = vpop.permute.xlu1 %1459  ;;  %v3297_v14 = vmul.f32 %v2715_v20, %v702_v46  ;;  %v721_v35 = vadd.f32 1.0, %v673_v39  ;;  %v656_v54 = vadd.f32 1.0, %v640_v42 }
 0x128   : > { %982 = vrot.lane.b32.xlu0 %v3196_v5, %s2849_s25  ;;  %5253 = vst [vmem:[#allocation19_spill] sm:$0xff] %v3290_v51  ;;  %v658_v55 = vadd.f32 1.0, %v642_v52  ;;  %v2570_v20 = vadd.f32 -1.0, %v671_v56  ;;  %v2572_v52 = vadd.f32 -1.0, %v673_v39  ;;  %v5149_v51 = vmov 8  }
 0x129   : > { %2718 = vpow.bf16 %v629_v53  ;;  %v672_v33 = vmul.f32 %v656_v54, %v656_v54 }
 0x12a   : > { %v3295_v50 = vpop.permute.xlu0 %1048  ;;  %2720 = vrcp.f32 %v719_v45  ;;  %v674_v46 = vmul.f32 %v658_v55, %v658_v55  ;;  %v703_v37 = vmul.f32 %v2570_v20, %v3180_v25  ;;  %v705_v39 = vmul.f32 %v2572_v52, %v3174_v18 }
 0x12b   : > { %1119 = vrot.lane.b32.xlu1 %v3196_v5, %s2850_s26  ;;  %5254 = vst [vmem:[#allocation20_spill] sm:$0xff] %v3295_v50  ;;  %v3303_v48 = vpop.permute.xlu1 %1588  ;;  %2722 = vrcp.f32 %v721_v35  ;;  %v720_v53 = vadd.f32 1.0, %v672_v33  ;;  %v2717_v45 = vpop.eup %2716 }
 0x12c   : > { %1121 = vrot.lane.b32.xlu0 %v3198_v4, %s2850_s26  ;;  %5255 = vst [vmem:[#allocation21_spill] sm:$0xff] %v3303_v48  ;;  %v643_v35 = vunpack.c.l.bf16 %v2717_v45 }
 0x12d   : > { %2724 = vrcp.f32 %v720_v53 }
 0x12e   : > { %v3305_v28 = vpop.permute.xlu0 %1056  ;;  %v659_v55 = vadd.f32 1.0, %v643_v35  ;;  %v2571_v35 = vadd.f32 -1.0, %v672_v33 }
 0x12f   : > { %1256 = vrot.lane.b32.xlu1 %v3196_v5, %s2851_s27  ;;  %5256 = vst [vmem:[#allocation22_spill] sm:$0xff] %v3305_v28  ;;  %v3313_v42 = vpop.permute.xlu1 %1592 }
 0x130   : > { %1258 = vrot.lane.b32.xlu0 %v3198_v4, %s2851_s27  ;;  %5257 = vst [vmem:[#allocation23_spill] sm:$0xff] %v3313_v42 }
 0x132   : > { %v3317_v31 = vpop.permute.xlu0 %1064 }
 0x133   : > { %1393 = vrot.lane.b32.xlu1 %v3196_v5, %s2852_s29  ;;  %5258 = vst [vmem:[#allocation24_spill] sm:$0xff] %v3317_v31  ;;  %v3326_v56 = vpop.permute.xlu1 %1068  ;;  %v722_v31 = vadd.f32 1.0, %v674_v46 }
 0x134   : > { %1395 = vrot.lane.b32.xlu0 %v3198_v4, %s2852_s29  ;;  %5259 = vst [vmem:[#allocation25_spill] sm:$0xff] %v3326_v56 }
 0x135   : > { %2726 = vrcp.f32 %v722_v31 }
 0x136   : > { %v3331_v59 = vpop.permute.xlu0 %1177 }
 0x137   : > { %1532 = vrot.lane.b32.xlu1 %v3198_v4, %s2853_s30  ;;  %v3319_v54 = vpop.eup %2718  ;;  %5261 = vst [vmem:[#allocation27_spill] sm:$0xff] %v3331_v59  ;;  %v3342_v20 = vpop.permute.xlu1 %1330  ;;  %v5312_v59 = vmov 8  }
 0x138   : > { %1530 = vrot.lane.b32.xlu0 %v3196_v5, %s2853_s30  ;;  %v2721_v28 = vpop.eup %2720  ;;  %v644_v53 = vunpack.c.l.bf16 %v3319_v54  ;;  %5262 = vst [vmem:[#allocation28_spill] sm:$0xff] %v3342_v20 }
 0x139   : > { %v3328_v16 = vmul.f32 %v2721_v28, %v703_v37  ;;  %v2723_v42 = vpop.eup %2722  ;;  %v675_v37 = vmul.f32 %v659_v55, %v659_v55 }
 0x13a   : > { %v3338_v25 = vmul.f32 %v2723_v42, %v705_v39  ;;  %v660_v28 = vadd.f32 1.0, %v644_v53  ;;  %v3346_v56 = vpop.permute.xlu0 %1189  ;;  %v2725_v48 = vpop.eup %2724  ;;  %v704_v42 = vmul.f32 %v2571_v35, %v3209_v24  ;;  %v2573_v39 = vadd.f32 -1.0, %v674_v46 }
 0x13b   : > { %831 = vrot.lane.b32.xlu1 %v3252_v49, %s2848_s24  ;;  %5260 = vst [vmem:[#allocation26_spill] sm:$0xff] %v3328_v16  ;;  %5263 = vst [vmem:[#allocation29_spill] sm:$0xff] %v3346_v56  ;;  %v723_v18 = vadd.f32 1.0, %v675_v37  ;;  %v3353_v31 = vpop.permute.xlu1 %1600  ;;  %v2574_v46 = vadd.f32 -1.0, %v675_v37  ;;  %v2821_v56 = vld [vmem:[%s5089_s4] sm:$0xff] }
 0x13c   : > { %972 = vrot.lane.b32.xlu0 %v3258_v43, %s2849_s25  ;;  %v676_v52 = vmul.f32 %v660_v28, %v660_v28  ;;  %5264 = vst [vmem:[#allocation30_spill] sm:$0xff] %v3353_v31  ;;  %v3355_v55 = vmul.f32 %v2725_v48, %v704_v42  ;;  %v706_v48 = vmul.f32 %v2573_v39, %v3205_v8 }
 0x13d   : > { %2728 = vrcp.f32 %v723_v18  ;;  %v645_v18 = vunpack.c.h.bf16 %v2717_v45  ;;  %v707_v45 = vmul.f32 %v2574_v46, %v3241_v6 }
 0x13e   : > { %5265 = vst [vmem:[#allocation31_spill] sm:$0xff] %v3355_v55  ;;  %v724_v33 = vadd.f32 1.0, %v676_v52  ;;  %v3357_v53 = vpop.permute.xlu0 %1193  ;;  %v2575_v39 = vadd.f32 -1.0, %v676_v52  ;;  %v646_v52 = vunpack.c.h.bf16 %v3319_v54 }
 0x13f   : > { %833 = vrot.lane.b32.xlu1 %v3258_v43, %s2848_s24  ;;  %5266 = vst [vmem:[#allocation32_spill] sm:$0xff] %v3357_v53  ;;  %v3365_v28 = vpop.permute.xlu1 %1725 }
 0x140   : > { %1109 = vrot.lane.b32.xlu0 %v3258_v43, %s2850_s26  ;;  %2730 = vrcp.f32 %v724_v33  ;;  %5267 = vst [vmem:[#allocation33_spill] sm:$0xff] %v3365_v28  ;;  %v661_v33 = vadd.f32 1.0, %v645_v18 }
 0x142   : > { %v2727_v24 = vpop.eup %2726  ;;  %v3370_v35 = vpop.permute.xlu0 %1201 }
 0x143   : > { %970 = vrot.lane.b32.xlu1 %v3252_v49, %s2849_s25  ;;  %5268 = vst [vmem:[#allocation34_spill] sm:$0xff] %v3370_v35  ;;  %v3372_v42 = vmul.f32 %v2727_v24, %v706_v48  ;;  %v3378_v20 = vpop.permute.xlu1 %1205  ;;  %v677_v24 = vmul.f32 %v661_v33, %v661_v33  ;;  %v662_v33 = vadd.f32 1.0, %v646_v52 }
 0x144   : > { %1246 = vrot.lane.b32.xlu0 %v3258_v43, %s2851_s27  ;;  %5269 = vst [vmem:[#allocation35_spill] sm:$0xff] %v3378_v20  ;;  %v708_v20 = vmul.f32 %v2575_v39, %v3261_v30 }
 0x145   : > { %v725_v6 = vadd.f32 1.0, %v677_v24  ;;  %v678_v54 = vmul.f32 %v662_v33, %v662_v33  ;;  %v2576_v52 = vadd.f32 -1.0, %v677_v24 }
 0x146   : > { %v3380_v53 = vpop.permute.xlu0 %1326 }
 0x147   : > { %1107 = vrot.lane.b32.xlu1 %v3252_v49, %s2850_s26  ;;  %5270 = vst [vmem:[#allocation36_spill] sm:$0xff] %v3380_v53  ;;  %v3391_v18 = vpop.permute.xlu1 %1467  ;;  %2732 = vrcp.f32 %v725_v6  ;;  %v726_v39 = vadd.f32 1.0, %v678_v54  ;;  %v3528_v53 = vld [vmem:[%s5089_s4 + $0x18] sm:$0xff] }
 0x148   : > { %847 = vrot.lane.b32.xlu0 %v3286_v17, %s2848_s24  ;;  %5271 = vst [vmem:[#allocation37_spill] sm:$0xff] %v3391_v18 }
 0x149   : > { %2734 = vrcp.f32 %v726_v39 }
 0x14a   : > { %v2729_v8 = vpop.eup %2728  ;;  %v3396_v35 = vpop.permute.xlu0 %1334 }
 0x14b   : > { %1244 = vrot.lane.b32.xlu1 %v3252_v49, %s2851_s27  ;;  %v3387_v37 = vmul.f32 %v2729_v8, %v707_v45  ;;  %5272 = vst [vmem:[#allocation38_spill] sm:$0xff] %v3396_v35  ;;  %v709_v35 = vmul.f32 %v2576_v52, %v3238_v21  ;;  %v2577_v52 = vadd.f32 -1.0, %v678_v54 }
 0x14c   : > { %988 = vrot.lane.b32.xlu0 %v3297_v14, %s2849_s25 }
 0x14d   : > { %v2731_v48 = vpop.eup %2730  ;;  %v710_v61 = vmul.f32 %v2577_v52, %v3256_v15 }
 0x14e   : > { %v3399_v46 = vmul.f32 %v2731_v48, %v708_v20 }
 0x14f   : > { %1381 = vrot.lane.b32.xlu1 %v3252_v49, %s2852_s29 }
 0x150   : > { %1125 = vrot.lane.b32.xlu0 %v3297_v14, %s2850_s26 }
 0x153   : > { %1383 = vrot.lane.b32.xlu1 %v3258_v43, %s2852_s29 }
 0x154   : > { %1262 = vrot.lane.b32.xlu0 %v3297_v14, %s2851_s27  ;;  %v2733_v18 = vpop.eup %2732 }
 0x155   : > { %v3438_v24 = vmul.f32 %v2733_v18, %v709_v35 }
 0x156   : > { %v2735_v18 = vpop.eup %2734 }
 0x157   : > { %849 = vrot.lane.b32.xlu1 %v3297_v14, %s2848_s24 }
 0x158   : > { %1397 = vrot.lane.b32.xlu0 %v3286_v17, %s2852_s29 }
 0x15b   : > { %986 = vrot.lane.b32.xlu1 %v3286_v17, %s2849_s25 }
 0x15c   : > { %835 = vrot.lane.b32.xlu0 %v3328_v16, %s2848_s24 }
 0x15f   : > { %1123 = vrot.lane.b32.xlu1 %v3286_v17, %s2850_s26 }
 0x160   : > { %1113 = vrot.lane.b32.xlu0 %v3338_v25, %s2850_s26 }
 0x163   : > { %1260 = vrot.lane.b32.xlu1 %v3286_v17, %s2851_s27 }
 0x164   : > { %1250 = vrot.lane.b32.xlu0 %v3338_v25, %s2851_s27 }
 0x167   : > { %1399 = vrot.lane.b32.xlu1 %v3297_v14, %s2852_s29 }
 0x168   : > { %851 = vrot.lane.b32.xlu0 %v3355_v55, %s2848_s24 }
 0x16b   : > { %837 = vrot.lane.b32.xlu1 %v3338_v25, %s2848_s24 }
 0x16c   : > { %990 = vrot.lane.b32.xlu0 %v3355_v55, %s2849_s25 }
 0x16f   : > { %974 = vrot.lane.b32.xlu1 %v3328_v16, %s2849_s25 }
 0x170   : > { %1129 = vrot.lane.b32.xlu0 %v3372_v42, %s2850_s26 }
 0x173   : > { %976 = vrot.lane.b32.xlu1 %v3338_v25, %s2849_s25 }
 0x174   : > { %1266 = vrot.lane.b32.xlu0 %v3372_v42, %s2851_s27 }
 0x177   : > { %1111 = vrot.lane.b32.xlu1 %v3328_v16, %s2850_s26 }
 0x178   : > { %839 = vrot.lane.b32.xlu0 %v3387_v37, %s2848_s24 }
 0x17b   : > { %1248 = vrot.lane.b32.xlu1 %v3328_v16, %s2851_s27 }
 0x17c   : > { %855 = vrot.lane.b32.xlu0 %v3399_v46, %s2848_s24 }
 0x17d   : > { %v3405_v8 = vpop.permute.xlu1 %827 }
 0x17e   : > { %v3407_v30 = vpop.permute.xlu0 %829 }
 0x17f   : > { %853 = vrot.lane.b32.xlu1 %v3372_v42, %s2848_s24 }
 0x180   : > { %994 = vrot.lane.b32.xlu0 %v3399_v46, %s2849_s25 }
 0x181   : > { %v3413_v20 = vpop.permute.xlu1 %968 }
 0x182   : > { %v3415_v45 = vpop.permute.xlu0 %966 }
 0x183   : > { %992 = vrot.lane.b32.xlu1 %v3372_v42, %s2849_s25 }
 0x184   : > { %1534 = vrot.lane.b32.xlu0 %v3286_v17, %s2853_s30 }
 0x185   : > { %v3421_v48 = vpop.permute.xlu1 %1103 }
 0x186   : > { %v3423_v6 = vpop.permute.xlu0 %1105 }
 0x187   : > { %1127 = vrot.lane.b32.xlu1 %v3355_v55, %s2850_s26 }
 0x188   : > { %1651 = vrot.lane.b32.xlu0 %v3149_v63, %s2854_s13 }
 0x189   : > { %v3429_v33 = vpop.permute.xlu1 %1240 }
 0x18a   : > { %5273 = vst [vmem:[#allocation39_spill] sm:$0xff] %v3429_v33  ;;  %v3431_v28 = vpop.permute.xlu0 %1242  ;;  %v5313_v33 = vmov 7  }
 0x18b   : > { %5274 = vst [vmem:[#allocation40_spill] sm:$0xff] %v3431_v28  ;;  %1264 = vrot.lane.b32.xlu1 %v3355_v55, %s2851_s27 }
 0x18c   : > { %1667 = vrot.lane.b32.xlu0 %v3196_v5, %s2854_s13 }
 0x18d   : > { %v3440_v60 = vpop.permute.xlu1 %1377 }
 0x18e   : > { %5275 = vst [vmem:[#allocation41_spill] sm:$0xff] %v3440_v60  ;;  %v3442_v57 = vpop.permute.xlu0 %1379  ;;  %v5279_v60 = vmov 5  }
 0x18f   : > { %5276 = vst [vmem:[#allocation42_spill] sm:$0xff] %v3442_v57  ;;  %841 = vrot.lane.b32.xlu1 %v3438_v24, %s2848_s24 }
 0x190   : > { %1131 = vrot.lane.b32.xlu0 %v3399_v46, %s2850_s26 }
 0x191   : > { %v3448_v39 = vpop.permute.xlu1 %1516 }
 0x192   : > { %5277 = vst [vmem:[#allocation43_spill] sm:$0xff] %v3448_v39  ;;  %v3450_v21 = vpop.permute.xlu0 %1514  ;;  %v3463_v39 = vmul.f32 %v2735_v18, %v710_v61 }
 0x193   : > { %5278 = vst [vmem:[#allocation44_spill] sm:$0xff] %v3450_v21  ;;  %978 = vrot.lane.b32.xlu1 %v3387_v37, %s2849_s25 }
 0x194   : > { %1338 = vperm.xlu0 %2661, %v2972_v13  }
 0x195   : > { %v3455_v35 = vpop.permute.xlu1 %843 }
 0x196   : > { %v3457_v47 = vpop.permute.xlu0 %845 }
 0x197   : > { %980 = vrot.lane.b32.xlu1 %v3438_v24, %s2849_s25 }
 0x198   : > { %2666 = vset.pattern.permute.xlu0 %v5279_v60 }
 0x199   : > { %1463 = vperm.xlu0 %2666, %v2953_v3   ;;  %v3466_v54 = vpop.permute.xlu1 %984 }
 0x19a   : > { %v3468_v21 = vpop.permute.xlu0 %982 }
 0x19b   : > { %857 = vrot.lane.b32.xlu1 %v3463_v39, %s2848_s24 }
 0x19d   : > { %1471 = vperm.xlu0 %2666, %v3049_v29   ;;  %v3473_v13 = vpop.permute.xlu1 %1119 }
 0x19e   : > { %v3475_v15 = vpop.permute.xlu0 %1121 }
 0x19f   : > { %996 = vrot.lane.b32.xlu1 %v3463_v39, %s2849_s25  ;;  %s413_s25 = scalar_lea.vmem %s5097_s12, %s2609_s23 }
 0x1a1   : > { %1387 = vrot.lane.b32.xlu0 %v3338_v25, %s2852_s29  ;;  %v3481_v3 = vpop.permute.xlu1 %1256 }
 0x1a2   : > { %5280 = vst [vmem:[#allocation45_spill] sm:$0xff] %v3481_v3  ;;  %v3483_v61 = vpop.permute.xlu0 %1258 }
 0x1a3   : > { %5281 = vst [vmem:[#allocation46_spill] sm:$0xff] %v3483_v61  ;;  %1518 = vrot.lane.b32.xlu1 %v3252_v49, %s2853_s30 }
 0x1a5   : > { %1403 = vrot.lane.b32.xlu0 %v3372_v42, %s2852_s29  ;;  %v3489_v52 = vpop.permute.xlu1 %1393 }
 0x1a6   : > { %5282 = vst [vmem:[#allocation47_spill] sm:$0xff] %v3489_v52  ;;  %v3491_v18 = vpop.permute.xlu0 %1395 }
 0x1a7   : > { %5283 = vst [vmem:[#allocation48_spill] sm:$0xff] %v3491_v18  ;;  %1520 = vrot.lane.b32.xlu1 %v3258_v43, %s2853_s30 }
 0x1a9   : > { %1671 = vrot.lane.b32.xlu0 %v3286_v17, %s2854_s13  ;;  %v3497_v12 = vpop.permute.xlu1 %1532 }
 0x1aa   : > { %5284 = vst [vmem:[#allocation49_spill] sm:$0xff] %v3497_v12  ;;  %v3499_v57 = vpop.permute.xlu0 %1530 }
 0x1ab   : > { %5285 = vst [vmem:[#allocation50_spill] sm:$0xff] %v3499_v57  ;;  %1536 = vrot.lane.b32.xlu1 %v3297_v14, %s2853_s30 }
 0x1ad   : > { %1788 = vrot.lane.b32.xlu0 %v3149_v63, %s2855_s14  ;;  %v3505_v52 = vpop.permute.xlu1 %831 }
 0x1ae   : > { %v3507_v18 = vpop.permute.xlu0 %972 }
 0x1af   : > { %5286 = vst [vmem:[#allocation51_spill] sm:$0xff] %v3507_v18  ;;  %1653 = vrot.lane.b32.xlu1 %v3153_v34, %s2854_s13 }
 0x1b1   : > { %1804 = vrot.lane.b32.xlu0 %v3196_v5, %s2855_s14  ;;  %v3513_v12 = vpop.permute.xlu1 %833 }
 0x1b2   : > { %5287 = vst [vmem:[#allocation52_spill] sm:$0xff] %v3513_v12  ;;  %v3515_v57 = vpop.permute.xlu0 %1109 }
 0x1b3   : > { %5288 = vst [vmem:[#allocation53_spill] sm:$0xff] %v3515_v57  ;;  %1669 = vrot.lane.b32.xlu1 %v3198_v4, %s2854_s13  ;;  %v5296_v57 = vmov 3  }
 0x1b5   : > { %1254 = vrot.lane.b32.xlu0 %v3438_v24, %s2851_s27  ;;  %v3521_v23 = vpop.permute.xlu1 %970 }
 0x1b6   : > { %5289 = vst [vmem:[#allocation54_spill] sm:$0xff] %v3521_v23  ;;  %v3523_v31 = vpop.permute.xlu0 %1246 }
 0x1b7   : > { %5290 = vst [vmem:[#allocation55_spill] sm:$0xff] %v3523_v31  ;;  %1737 = vperm.xlu1 %2664, %v3528_v53  }
 0x1b9   : > { %1270 = vrot.lane.b32.xlu0 %v3463_v39, %s2851_s27  ;;  %v3533_v28 = vpop.permute.xlu1 %1107 }
 0x1ba   : > { %5291 = vst [vmem:[#allocation56_spill] sm:$0xff] %v3533_v28  ;;  %v3535_v61 = vpop.permute.xlu0 %847 }
 0x1bb   : > { %2665 = vset.pattern.permute.xlu1 %v5149_v51 }
 0x1bc   : > { %1862 = vperm.xlu1 %2665, %v2821_v56  }
 0x1bd   : > { %1479 = vperm.xlu0 %2666, %v3038_v26   ;;  %v3542_v31 = vpop.permute.xlu1 %1244 }
 0x1be   : > { %5292 = vst [vmem:[#allocation57_spill] sm:$0xff] %v3542_v31  ;;  %v3544_v9 = vpop.permute.xlu0 %988 }
 0x1bf   : > { %5293 = vst [vmem:[#allocation58_spill] sm:$0xff] %v3544_v9 }
 0x1c0   : > { %1115 = vrot.lane.b32.xlu1 %v3387_v37, %s2850_s26 }
 0x1c1   : > { %2671 = vset.pattern.permute.xlu0 %v5294_v1  ;;  %v3549_v7 = vpop.permute.xlu1 %1381  ;;  %2667 = vset.pattern.permute.xlu1 %v5296_v57 }
 0x1c2   : > { %5295 = vst [vmem:[#allocation59_spill] sm:$0xff] %v3549_v7  ;;  %1596 = vperm.xlu0 %2671, %v3011_v22   ;;  %v3553_v51 = vpop.permute.xlu0 %1125  ;;  %v3597_v7 = vld [vmem:[%s5089_s4 + $0x20] sm:$0xff] }
 0x1c3   : > { %5297 = vst [vmem:[#allocation60_spill] sm:$0xff] %v3553_v51 }
 0x1c4   : > { %1117 = vrot.lane.b32.xlu1 %v3438_v24, %s2850_s26 }
 0x1c5   : > { %v3557_v56 = vpop.permute.xlu1 %1383 }
 0x1c6   : > { %5298 = vst [vmem:[#allocation61_spill] sm:$0xff] %v3557_v56  ;;  %1608 = vperm.xlu0 %2671, %v3049_v29   ;;  %v3560_v11 = vpop.permute.xlu0 %1262 }
 0x1c7   : > { %5299 = vst [vmem:[#allocation62_spill] sm:$0xff] %v3560_v11 }
 0x1c8   : > { %1133 = vrot.lane.b32.xlu1 %v3463_v39, %s2850_s26 }
 0x1c9   : > { %v3564_v50 = vpop.permute.xlu1 %849 }
 0x1ca   : > { %5300 = vst [vmem:[#allocation63_spill] sm:$0xff] %v3564_v50  ;;  %1538 = vrot.lane.b32.xlu0 %v3355_v55, %s2853_s30  ;;  %v3568_v22 = vpop.permute.xlu0 %1397  ;;  %v3753_v50 = vld [vmem:[%s5086_s1 + $0x8] sm:$0xff] }
 0x1cb   : > { %5301 = vst [vmem:[#allocation64_spill] sm:$0xff] %v3568_v22 }
 0x1cc   : > { %1342 = vperm.xlu1 %2667, %v3038_v26  }
 0x1cd   : > { %v3571_v57 = vpop.permute.xlu1 %986 }
 0x1ce   : > { %5302 = vst [vmem:[#allocation65_spill] sm:$0xff] %v3571_v57  ;;  %1794 = vrot.lane.b32.xlu0 %v3258_v43, %s2855_s14  ;;  %v3575_v29 = vpop.permute.xlu0 %835 }
 0x1cf   : > { %5303 = vst [vmem:[#allocation66_spill] sm:$0xff] %v3575_v29 }
 0x1d0   : > { %1385 = vrot.lane.b32.xlu1 %v3328_v16, %s2852_s29 }
 0x1d1   : > { %v3579_v56 = vpop.permute.xlu1 %1123  ;;  %2668 = vset.pattern.permute.xlu1 %v5294_v1 }
 0x1d2   : > { %5304 = vst [vmem:[#allocation67_spill] sm:$0xff] %v3579_v56  ;;  %1810 = vrot.lane.b32.xlu0 %v3297_v14, %s2855_s14  ;;  %v3584_v11 = vpop.permute.xlu0 %1113 }
 0x1d3   : > { %5305 = vst [vmem:[#allocation68_spill] sm:$0xff] %v3584_v11  ;;  %v3605_v11 = vld [vmem:[%s5089_s4 + $0x30] sm:$0xff] }
 0x1d4   : > { %1401 = vrot.lane.b32.xlu1 %v3355_v55, %s2852_s29  ;;  %5309 = vst [vmem:[#allocation72_spill] sm:$0xff] %v3605_v11 }
 0x1d5   : > { %v3588_v26 = vpop.permute.xlu1 %1260 }
 0x1d6   : > { %5306 = vst [vmem:[#allocation69_spill] sm:$0xff] %v3588_v26  ;;  %1405 = vrot.lane.b32.xlu0 %v3399_v46, %s2852_s29  ;;  %v3592_v29 = vpop.permute.xlu0 %1250 }
 0x1d7   : > { %5307 = vst [vmem:[#allocation70_spill] sm:$0xff] %v3592_v29 }
 0x1d8   : > { %1604 = vperm.xlu1 %2668, %v3597_v7  }
 0x1d9   : > { %v3600_v22 = vpop.permute.xlu1 %1399 }
 0x1da   : > { %5308 = vst [vmem:[#allocation71_spill] sm:$0xff] %v3600_v22  ;;  %1612 = vperm.xlu0 %2671, %v3605_v11   ;;  %v3608_v51 = vpop.permute.xlu0 %851  ;;  %v2824_v22 = vld [vmem:[%s5089_s4 + $0x8] sm:$0xff] }
 0x1db   : > { %5310 = vst [vmem:[#allocation73_spill] sm:$0xff] %v3608_v51 }
 0x1dc   : > { %1655 = vrot.lane.b32.xlu1 %v3252_v49, %s2854_s13 }
 0x1dd   : > { %v3612_v29 = vpop.permute.xlu1 %837  ;;  %2669 = vset.pattern.permute.xlu1 %v5312_v59 }
 0x1de   : > { %5311 = vst [vmem:[#allocation74_spill] sm:$0xff] %v3612_v29  ;;  %2674 = vset.pattern.permute.xlu0 %v5313_v33  ;;  %v3616_v3 = vpop.permute.xlu0 %990  ;;  %v2825_v29 = vld [vmem:[%s5089_s4 + $0x10] sm:$0xff] }
 0x1df   : > { %5314 = vst [vmem:[#allocation75_spill] sm:$0xff] %v3616_v3  ;;  %1729 = vperm.xlu0 %2674, %v2824_v22  }
 0x1e0   : > { %1657 = vrot.lane.b32.xlu1 %v3258_v43, %s2854_s13 }
 0x1e1   : > { %v3623_v51 = vpop.permute.xlu1 %974 }
 0x1e2   : > { %5315 = vst [vmem:[#allocation76_spill] sm:$0xff] %v3623_v51  ;;  %v3625_v31 = vpop.permute.xlu0 %1129 }
 0x1e3   : > { %5316 = vst [vmem:[#allocation77_spill] sm:$0xff] %v3625_v31  ;;  %1733 = vperm.xlu0 %2674, %v2825_v29  }
 0x1e4   : > { %1673 = vrot.lane.b32.xlu1 %v3297_v14, %s2854_s13 }
 0x1e5   : > { %v3632_v3 = vpop.permute.xlu1 %976 }
 0x1e6   : > { %5317 = vst [vmem:[#allocation78_spill] sm:$0xff] %v3632_v3  ;;  %v3634_v26 = vpop.permute.xlu0 %1266 }
 0x1e7   : > { %5318 = vst [vmem:[#allocation79_spill] sm:$0xff] %v3634_v26  ;;  %1741 = vperm.xlu0 %2674, %v3597_v7  }
 0x1e8   : > { %1790 = vrot.lane.b32.xlu1 %v3153_v34, %s2855_s14 }
 0x1e9   : > { %v3639_v51 = vpop.permute.xlu1 %1111 }
 0x1ea   : > { %5319 = vst [vmem:[#allocation80_spill] sm:$0xff] %v3639_v51  ;;  %v3641_v31 = vpop.permute.xlu0 %839 }
 0x1eb   : > { %5320 = vst [vmem:[#allocation81_spill] sm:$0xff] %v3641_v31  ;;  %1661 = vrot.lane.b32.xlu0 %v3338_v25, %s2854_s13 }
 0x1ec   : > { %1806 = vrot.lane.b32.xlu1 %v3198_v4, %s2855_s14 }
 0x1ed   : > { %v3647_v12 = vpop.permute.xlu1 %1248 }
 0x1ee   : > { %5321 = vst [vmem:[#allocation82_spill] sm:$0xff] %v3647_v12  ;;  %v3649_v3 = vpop.permute.xlu0 %855 }
 0x1ef   : > { %5322 = vst [vmem:[#allocation83_spill] sm:$0xff] %v3649_v3  ;;  %1677 = vrot.lane.b32.xlu0 %v3372_v42, %s2854_s13 }
 0x1f0   : > { %1874 = vperm.xlu1 %2669, %v3528_v53  }
 0x1f1   : > { %v3654_v26 = vpop.permute.xlu1 %853 }
 0x1f2   : > { %5323 = vst [vmem:[#allocation84_spill] sm:$0xff] %v3654_v26  ;;  %v3656_v51 = vpop.permute.xlu0 %994 }
 0x1f3   : > { %5324 = vst [vmem:[#allocation85_spill] sm:$0xff] %v3656_v51  ;;  %1526 = vrot.lane.b32.xlu0 %v3387_v37, %s2853_s30 }
 0x1f4   : > { %1252 = vrot.lane.b32.xlu1 %v3387_v37, %s2851_s27 }
 0x1f5   : > { %v3662_v31 = vpop.permute.xlu1 %992  ;;  %2670 = vset.pattern.permute.xlu1 %v5279_v60 }
 0x1f6   : > { %5325 = vst [vmem:[#allocation86_spill] sm:$0xff] %v3662_v31  ;;  %v3669_v53 = vpop.permute.xlu0 %1534 }
 0x1f7   : > { %1542 = vrot.lane.b32.xlu0 %v3399_v46, %s2853_s30  ;;  %5326 = vst [vmem:[#allocation87_spill] sm:$0xff] %v3669_v53 }
 0x1f8   : > { %1268 = vrot.lane.b32.xlu1 %v3399_v46, %s2851_s27 }
 0x1f9   : > { %v3671_v12 = vpop.permute.xlu1 %1127 }
 0x1fa   : > { %5327 = vst [vmem:[#allocation88_spill] sm:$0xff] %v3671_v12  ;;  %v3677_v3 = vpop.permute.xlu0 %1651 }
 0x1fb   : > { %1749 = vperm.xlu0 %2674, %v3605_v11   ;;  %5329 = vst [vmem:[#allocation90_spill] sm:$0xff] %v3677_v3 }
 0x1fc   : > { %1475 = vperm.xlu1 %2670, %v3605_v11   ;;  %v3734_v11 = vld [vmem:[%s5089_s4 + $0x38] sm:$0xff] }
 0x1fd   : > { %v3675_v51 = vpop.permute.xlu1 %1264 }
 0x1fe   : > { %5328 = vst [vmem:[#allocation89_spill] sm:$0xff] %v3675_v51  ;;  %v3685_v12 = vpop.permute.xlu0 %1667  ;;  %v2826_v51 = vld [vmem:[%s5089_s4 + $0x28] sm:$0xff] }
 0x1ff   : > { %2678 = vset.pattern.permute.xlu0 %v5312_v59  ;;  %5331 = vst [vmem:[#allocation92_spill] sm:$0xff] %v3685_v12  ;;  %v5338_v12 = vmov 0  }
 0x200   : > { %1866 = vperm.xlu0 %2678, %v2824_v22   ;;  %1522 = vrot.lane.b32.xlu1 %v3328_v16, %s2853_s30 }
 0x201   : > { %v3682_v60 = vpop.permute.xlu1 %841  ;;  %2672 = vset.pattern.permute.xlu1 %v5313_v33 }
 0x202   : > { %5330 = vst [vmem:[#allocation91_spill] sm:$0xff] %v3682_v60  ;;  %v3698_v60 = vpop.permute.xlu0 %1131 }
 0x203   : > { %5334 = vst [vmem:[#allocation95_spill] sm:$0xff] %v3698_v60 }
 0x204   : > { %1870 = vperm.xlu0 %2678, %v2825_v29   ;;  %1524 = vrot.lane.b32.xlu1 %v3338_v25, %s2853_s30 }
 0x205   : > { %v3689_v31 = vpop.permute.xlu1 %978 }
 0x206   : > { %5332 = vst [vmem:[#allocation93_spill] sm:$0xff] %v3689_v31 }
 0x208   : > { %1882 = vperm.xlu0 %2678, %v2826_v51   ;;  %1540 = vrot.lane.b32.xlu1 %v3372_v42, %s2853_s30 }
 0x209   : > { %v3696_v22 = vpop.permute.xlu1 %980 }
 0x20a   : > { %5333 = vst [vmem:[#allocation94_spill] sm:$0xff] %v3696_v22  ;;  %v1925_v22 = vld [vmem:[%s5090_s5] sm:$0xff] }
 0x20c   : > { %1798 = vrot.lane.b32.xlu0 %v3338_v25, %s2855_s14  ;;  %1745 = vperm.xlu1 %2672, %v2826_v51   ;;  %v859_v51 = vlaneseq }
 0x20d   : > { %v3702_v29 = vpop.permute.xlu1 %857 }
 0x20e   : > { %5335 = vst [vmem:[#allocation96_spill] sm:$0xff] %v3702_v29  ;;  %v3726_v29 = vshrl.u32 %v859_v51, 7  ;;  %v3739_v53 = vand.u32 127, %v859_v51 }
 0x20f   : > { %v3704_v3 = vpop.permute.xlu0 %1338 }
 0x210   : > { %5336 = vst [vmem:[#allocation97_spill] sm:$0xff] %v3704_v3  ;;  %1814 = vrot.lane.b32.xlu0 %v3372_v42, %s2855_s14  ;;  %1792 = vrot.lane.b32.xlu1 %v3252_v49, %s2855_s14  ;;  %v1428_v26 = vsub.s32 5, %v3726_v29  ;;  %vm1409_vm1 = vcmp.lt.s32.totalorder %v3739_v53, 127  ;;  %vm1820_vm2 = vcmp.lt.s32.totalorder %v3739_v53, 111  ;;  %vm1272_vm3 = vcmp.lt.s32.totalorder %v3739_v53, 1 }
 0x211   : > { %v3710_v31 = vpop.permute.xlu1 %996  ;;  %2673 = vset.pattern.permute.xlu1 %v5338_v12  ;;  %vm861_vm4 = vcmp.lt.s32.totalorder %v3739_v53, 17  ;;  %vm998_vm5 = vcmp.lt.s32.totalorder %v3739_v53, 16  ;;  %vm1135_vm6 = vcmp.lt.s32.totalorder %v3739_v53, 15  ;;  %vm1546_vm7 = vcmp.lt.s32.totalorder %v3739_v53, 113 }
 0x212   : > { %5337 = vst [vmem:[#allocation98_spill] sm:$0xff] %v3710_v31  ;;  %v3760_v28 = vrot.slane %v3753_v50, %v1428_v26  ;;  %vm1683_vm8 = vcmp.lt.s32.totalorder %v3739_v53, 112 }
 0x214   : > { %1665 = vrot.lane.b32.xlu0 %v3438_v24, %s2854_s13  ;;  %v3715_v60 = vpop.permute.xlu0 %1463  ;;  %1808 = vrot.lane.b32.xlu1 %v3286_v17, %s2855_s14 }
 0x215   : > { %5339 = vst [vmem:[#allocation99_spill] sm:$0xff] %v3715_v60  ;;  %v3719_v3 = vpop.permute.xlu1 %1518 }
 0x216   : > { %5340 = vst [vmem:[#allocation100_spill] sm:$0xff] %v3719_v3 }
 0x218   : > { %1681 = vrot.lane.b32.xlu0 %v3463_v39, %s2854_s13  ;;  %v1472_v31 = vpop.permute.xlu0 %1471  ;;  %1935 = vperm.xlu1 %2673, %v1925_v22   ;;  %v1926_v22 = vld [vmem:[%s5090_s5 + $0x8] sm:$0xff] }
 0x219   : > { %v3729_v60 = vpop.permute.xlu1 %1520 }
 0x21a   : > { %5341 = vst [vmem:[#allocation101_spill] sm:$0xff] %v3729_v60  ;;  %v3748_v60 = vld [vmem:[%s5086_s1] sm:$0xff] }
 0x21b   : > { %v3757_v51 = vrot.slane %v3748_v60, %v1428_v26 }
 0x21c   : > { %1890 = vperm.xlu0 %2678, %v3734_v11   ;;  %v1388_v3 = vpop.permute.xlu0 %1387  ;;  %1389 = vrot.lane.b32.xlu1 %v3387_v37, %s2852_s29 }
 0x21d   : > { %2675 = vset.pattern.permute.xlu1 %v5294_v1  ;;  %v3767_v19 = vpop.permute.xlu1 %1536 }
 0x220   : > { %2681 = vset.pattern.permute.xlu0 %v5338_v12  ;;  %v1404_v1 = vpop.permute.xlu0 %1403  ;;  %1391 = vrot.lane.b32.xlu1 %v3438_v24, %s2852_s29 }
 0x221   : > { %v1415_v56 = vsel %vm1409_vm1, %v1388_v3, %v1404_v1  ;;  %v1423_v62 = vsel %vm1409_vm1, %v1404_v1, %v1388_v3  ;;  %1940 = vperm.xlu0 %2681, %v1926_v22   ;;  %v3783_v3 = vpop.permute.xlu1 %1653 }
 0x222   : > { %v1444_v23 = vmul.f32 %v3757_v51, %v1415_v56  ;;  %v1445_v57 = vmul.f32 %v3760_v28, %v1423_v62  ;;  %5344 = vst [vmem:[#allocation104_spill] sm:$0xff] %v3783_v3  ;;  %v1931_v62 = vld [vmem:[%s5090_s5 + $0x30] sm:$0xff] }
 0x224   : > { %v3773_v26 = vmul.f32 %v1472_v31, %v1444_v23  ;;  %v3775_v18 = vmul.f32 %v1472_v31, %v1445_v57  ;;  %v3777_v9 = vpop.permute.xlu0 %1671  ;;  %1407 = vrot.lane.b32.xlu1 %v3463_v39, %s2852_s29 }
 0x225   : > { %1800 = vrot.lane.b32.xlu0 %v3387_v37, %s2855_s14  ;;  %v3800_v22 = vpop.permute.xlu1 %1669 }
 0x226   : > { %5342 = vst [vmem:[#allocation102_spill] sm:$0xff] %v3773_v26  ;;  %5343 = vst [vmem:[#allocation103_spill] sm:$0xff] %v3775_v18  ;;  %v3829_v18 = vmul.f32 %v3109_v41, %v3198_v4 }
 0x227   : > { %5347 = vst [vmem:[#allocation107_spill] sm:$0xff] %v3800_v22  ;;  %v1017_v22 = vsub.s32 1, %v3726_v29 }
 0x228   : > { %v1789_v56 = vpop.permute.xlu0 %1788  ;;  %1616 = vperm.xlu1 %2675, %v3734_v11  }
 0x229   : > { %1816 = vrot.lane.b32.xlu0 %v3399_v46, %s2855_s14 }
 0x22c   : > { %v1805_v23 = vpop.permute.xlu0 %1804  ;;  %1659 = vrot.lane.b32.xlu1 %v3328_v16, %s2854_s13 }
 0x22d   : > { %v3794_v31 = vsel %vm1820_vm2, %v1789_v56, %v1805_v23  ;;  %v3798_v57 = vsel %vm1820_vm2, %v1805_v23, %v1789_v56  ;;  %1965 = vperm.xlu0 %2681, %v1931_v62   ;;  %2676 = vset.pattern.permute.xlu1 %v5312_v59 }
 0x22e   : > { %5345 = vst [vmem:[#allocation105_spill] sm:$0xff] %v3794_v31  ;;  %5346 = vst [vmem:[#allocation106_spill] sm:$0xff] %v3798_v57  ;;  %v3810_v31 = vsub.s32 0, %v3726_v29  ;;  %v3823_v57 = vmul.f32 %v3109_v41, %v3153_v34  ;;  %v3848_v41 = vmul.f32 %v3111_v44, %v3252_v49  ;;  %v1154_v49 = vsub.s32 2, %v3726_v29 }
 0x230   : > { %v1255_v1 = vpop.permute.xlu0 %1254  ;;  %1675 = vrot.lane.b32.xlu1 %v3355_v55, %s2854_s13  ;;  %5349 = vst [vmem:[#allocation109_spill] sm:$0xff] %v3810_v31  ;;  %v3865_v4 = vrot.slane %v3753_v50, %v3810_v31 }
 0x232   : > { %v3807_v3 = vpop.permute.xlu1 %1737  ;;  %5354 = vst [vmem:[#allocation114_spill] sm:$0xff] %v3865_v4 }
 0x233   : > { %5348 = vst [vmem:[#allocation108_spill] sm:$0xff] %v3807_v3  ;;  %v3949_v3 = vmul.f32 %v3243_v0, %v3438_v24 }
 0x234   : > { %v1271_v56 = vpop.permute.xlu0 %1270  ;;  %1878 = vperm.xlu1 %2676, %v3597_v7   ;;  %v3852_v7 = vmul.f32 %v3111_v44, %v3286_v17  ;;  %v3871_v44 = vmul.f32 %v3103_v38, %v3297_v14  ;;  %v862_v17 = vsel %vm861_vm4, %v3405_v8, %v3455_v35  ;;  %v871_v14 = vsel %vm861_vm4, %v3457_v47, %v3407_v30 }
 0x235   : > { %v3815_v62 = vsel %vm1272_vm3, %v1255_v1, %v1271_v56  ;;  %v3819_v23 = vsel %vm1272_vm3, %v1271_v56, %v1255_v1  ;;  %v3838_v1 = vmul.f32 %v3099_v36, %v3149_v63  ;;  %v3844_v56 = vrot.slane %v3748_v60, %v3810_v31  ;;  %v1927_v63 = vld [vmem:[%s5090_s5 + $0x10] sm:$0xff]  ;;  %5361 = vst [vmem:[#allocation121_spill] sm:$0xff] %v3949_v3 }
 0x236   : > { %5350 = vst [vmem:[#allocation110_spill] sm:$0xff] %v3815_v62  ;;  %5351 = vst [vmem:[#allocation111_spill] sm:$0xff] %v3819_v23  ;;  %v3834_v62 = vmul.f32 %v3099_v36, %v3196_v5  ;;  %v3856_v5 = vmul.f32 %v3103_v38, %v3258_v43  ;;  %v3875_v43 = vmul.f32 %v3139_v27, %v3338_v25 }
 0x237   : > { %v3840_v34 = vpop.permute.xlu1 %1862  ;;  %v870_v31 = vsel %vm861_vm4, %v3455_v35, %v3405_v8  ;;  %v863_v38 = vsel %vm861_vm4, %v3407_v30, %v3457_v47  ;;  %v3898_v25 = vrot.slane %v3753_v50, %v1017_v22  ;;  %v1291_v8 = vsub.s32 3, %v3726_v29  ;;  %v1928_v30 = vld [vmem:[%s5090_s5 + $0x18] sm:$0xff] }
 0x238   : > { %5352 = vst [vmem:[#allocation112_spill] sm:$0xff] %v3840_v34  ;;  %v3858_v36 = vpop.permute.xlu0 %1479  ;;  %5355 = vst [vmem:[#allocation115_spill] sm:$0xff] %v3875_v43  ;;  %2677 = vset.pattern.permute.xlu1 %v5338_v12  ;;  %v3905_v23 = vmul.f32 %v3139_v27, %v3372_v42  ;;  %v999_v34 = vsel %vm998_vm5, %v3415_v45, %v3468_v21  ;;  %v1007_v47 = vsel %vm998_vm5, %v3468_v21, %v3415_v45 }
 0x239   : > { %5353 = vst [vmem:[#allocation113_spill] sm:$0xff] %v3858_v36  ;;  %v3886_v36 = vrot.slane %v3748_v60, %v1017_v22  ;;  %5357 = vst [vmem:[#allocation117_spill] sm:$0xff] %v3898_v25  ;;  %1945 = vperm.xlu1 %2677, %v1927_v63   ;;  %v886_v22 = vmul.f32 %v3844_v56, %v870_v31  ;;  %v887_v27 = vmul.f32 %v3865_v4, %v862_v17 }
 0x23a   : > { %5359 = vst [vmem:[#allocation119_spill] sm:$0xff] %v3905_v23  ;;  %v3922_v42 = vrot.slane %v3748_v60, %v1154_v49  ;;  %v1565_v63 = vsub.s32 6, %v3726_v29  ;;  %v888_v26 = vmul.f32 %v3844_v56, %v871_v14  ;;  %v889_v45 = vmul.f32 %v3865_v4, %v863_v38 }
 0x23b   : > { %5356 = vst [vmem:[#allocation116_spill] sm:$0xff] %v3886_v36  ;;  %v3901_v35 = vpop.permute.xlu1 %1115  ;;  %v1000_v21 = vsel %vm998_vm5, %v3413_v20, %v3466_v54  ;;  %v1008_v31 = vsel %vm998_vm5, %v3466_v54, %v3413_v20  ;;  %v1023_v17 = vmul.f32 %v3886_v36, %v1007_v47  ;;  %v1024_v23 = vmul.f32 %v3898_v25, %v999_v34 }
 0x23c   : > { %5358 = vst [vmem:[#allocation118_spill] sm:$0xff] %v3901_v35  ;;  %v3940_v43 = vrot.slane %v3753_v50, %v1154_v49  ;;  %v3943_v14 = vrot.slane %v3748_v60, %v1291_v8  ;;  %v3952_v12 = vrot.slane %v3753_v50, %v1291_v8  ;;  %v3956_v20 = vmul.f32 %v3107_v40, %v3387_v37 }
 0x23d   : > { %v3925_v35 = vpop.permute.xlu0 %1596  ;;  %1950 = vperm.xlu1 %2677, %v1928_v30   ;;  %v3960_v54 = vmul.f32 %v3107_v40, %v3399_v46  ;;  %v934_v34 = vmul.f32 %v3221_v10, %v886_v22  ;;  %v935_v49 = vmul.f32 %v3221_v10, %v887_v27  ;;  %v1025_v47 = vmul.f32 %v3886_v36, %v1008_v31 }
 0x23e   : > { %5362 = vst [vmem:[#allocation122_spill] sm:$0xff] %v3956_v20  ;;  %v1026_v30 = vmul.f32 %v3898_v25, %v1000_v21  ;;  %v3970_v8 = vmul.f32 %v3243_v0, %v3463_v39  ;;  %v936_v3 = vmul.f32 %v3119_v58, %v888_v26  ;;  %v937_v20 = vmul.f32 %v3119_v58, %v889_v45 }
 0x23f   : > { %v3945_v38 = vpop.permute.xlu1 %1117  ;;  %5363 = vst [vmem:[#allocation123_spill] sm:$0xff] %v3960_v54  ;;  %v3975_v40 = vrot.slane %v3748_v60, %v1565_v63  ;;  %v1071_v22 = vmul.f32 %v3125_v2, %v1023_v17  ;;  %v1072_v10 = vmul.f32 %v3125_v2, %v1024_v23  ;;  %v3980_v27 = vrot.slane %v3753_v50, %v1565_v63  ;;  %v5389_v54 = vld [vmem:[#allocation60_spill] sm:$0xff] }
 0x240   : > { %5360 = vst [vmem:[#allocation120_spill] sm:$0xff] %v3945_v38  ;;  %5365 = vst [vmem:[#allocation125_spill] sm:$0xff] %v3970_v8  ;;  %v1702_v21 = vsub.s32 7, %v3726_v29  ;;  %v1137_v58 = vsel %vm1135_vm6, %v3423_v6, %v3475_v15  ;;  %v1145_v2 = vsel %vm1135_vm6, %v3475_v15, %v3423_v6  ;;  %v864_v29 = vsel %vm861_vm4, %v3505_v52, %v3535_v61 }
 0x241   : > { %v3966_v38 = vpop.permute.xlu0 %1608  ;;  %1528 = vrot.lane.b32.xlu1 %v3438_v24, %s2853_s30  ;;  %v872_v26 = vsel %vm861_vm4, %v3535_v61, %v3505_v52  ;;  %v950_v23 = vadd.f32 %v934_v34, %v3838_v1  ;;  %v951_v63 = vadd.f32 %v935_v49, %v3834_v62  ;;  %v1073_v45 = vmul.f32 %v3279_v32, %v1025_v47  ;;  %v5369_v49 = vld [vmem:[#allocation58_spill] sm:$0xff]  ;;  %v5370_v47 = vld [vmem:[#allocation51_spill] sm:$0xff] }
 0x242   : > { %5364 = vst [vmem:[#allocation124_spill] sm:$0xff] %v3966_v38  ;;  %2679 = vset.pattern.permute.xlu1 %v5313_v33  ;;  %v1074_v6 = vmul.f32 %v3279_v32, %v1026_v30  ;;  %v952_v31 = vadd.f32 %v936_v3, %v3823_v57  ;;  %v953_v17 = vadd.f32 %v937_v20, %v3829_v18 }
 0x243   : > { %v3985_v0 = vpop.permute.xlu1 %1133  ;;  %v1136_v61 = vsel %vm1135_vm6, %v3421_v48, %v3473_v13  ;;  %v1144_v33 = vsel %vm1135_vm6, %v3473_v13, %v3421_v48  ;;  %v1162_v52 = vmul.f32 %v3922_v42, %v1145_v2  ;;  %v1163_v32 = vmul.f32 %v3940_v43, %v1137_v58  ;;  %v5372_v58 = vld [vmem:[#allocation54_spill] sm:$0xff] }
 0x244   : > { %5366 = vst [vmem:[#allocation126_spill] sm:$0xff] %v3985_v0  ;;  %v890_v62 = vmul.f32 %v3844_v56, %v872_v26  ;;  %v891_v3 = vmul.f32 %v3865_v4, %v864_v29  ;;  %v4028_v57 = vadd.f32 %v1071_v22, %v950_v23  ;;  %v4030_v1 = vadd.f32 %v1072_v10, %v951_v63  ;;  %v5373_v26 = vld [vmem:[#allocation5_spill] sm:$0xff] }
 0x245   : > { %v4008_v15 = vpop.permute.xlu0 %1538  ;;  %1544 = vrot.lane.b32.xlu1 %v3463_v39, %s2853_s30  ;;  %v4033_v20 = vrot.slane %v3748_v60, %v1702_v21  ;;  %v4036_v48 = vrot.slane %v3753_v50, %v1702_v21  ;;  %v4038_v13 = vadd.f32 %v1073_v45, %v952_v31  ;;  %v4040_v34 = vadd.f32 %v1074_v6, %v953_v17  ;;  %v5371_v21 = vld [vmem:[#allocation65_spill] sm:$0xff]  ;;  %v5374_v45 = vld [vmem:[#allocation3_spill] sm:$0xff] }
 0x246   : > { %5367 = vst [vmem:[#allocation127_spill] sm:$0xff] %v4008_v15  ;;  %v1002_v30 = vsel %vm998_vm5, %v5370_v47, %v5369_v49  ;;  %v1010_v22 = vsel %vm998_vm5, %v5369_v49, %v5370_v47  ;;  %v1160_v60 = vmul.f32 %v3922_v42, %v1144_v33  ;;  %v1161_v50 = vmul.f32 %v3940_v43, %v1136_v61  ;;  %v5376_v49 = vld [vmem:[#allocation67_spill] sm:$0xff]  ;;  %v5377_v47 = vld [vmem:[#allocation56_spill] sm:$0xff] }
 0x247   : > { %v4026_v18 = vpop.permute.xlu1 %1342  ;;  %v1001_v2 = vsel %vm998_vm5, %v5372_v58, %v5371_v21  ;;  %v1009_v29 = vsel %vm998_vm5, %v5371_v21, %v5372_v58  ;;  %v4061_v23 = vmul.f32 %v5373_v26, %v1162_v52  ;;  %v4064_v63 = vmul.f32 %v5373_v26, %v1163_v32  ;;  %v5380_v26 = vld [vmem:[#allocation69_spill] sm:$0xff] }
 0x248   : > { %5368 = vst [vmem:[#allocation128_spill] sm:$0xff] %v4026_v18  ;;  %v938_v6 = vmul.f32 %v5374_v45, %v890_v62  ;;  %v939_v31 = vmul.f32 %v5374_v45, %v891_v3  ;;  %v1029_v61 = vmul.f32 %v3886_v36, %v1010_v22  ;;  %v1030_v33 = vmul.f32 %v3898_v25, %v1002_v30  ;;  %v5378_v62 = vld [vmem:[#allocation63_spill] sm:$0xff]  ;;  %v5381_v45 = vld [vmem:[#allocation57_spill] sm:$0xff] }
 0x249   : > { %v1795_v10 = vpop.permute.xlu0 %1794  ;;  %1753 = vperm.xlu1 %2679, %v3734_v11   ;;  %v1138_v52 = vsel %vm1135_vm6, %v5377_v47, %v5376_v49  ;;  %v1146_v32 = vsel %vm1135_vm6, %v5376_v49, %v5377_v47  ;;  %v5379_v11 = vld [vmem:[#allocation52_spill] sm:$0xff]  ;;  %v1027_v22 = vmul.f32 %v3886_v36, %v1009_v29  ;;  %v1028_v21 = vmul.f32 %v3898_v25, %v1001_v2  ;;  %v5382_v2 = vld [vmem:[#allocation45_spill] sm:$0xff]  ;;  %v5397_v36 = vld [vmem:[#allocation87_spill] sm:$0xff] }
 0x24a   : > { %v865_v3 = vsel %vm861_vm4, %v5379_v11, %v5378_v62  ;;  %v873_v30 = vsel %vm861_vm4, %v5378_v62, %v5379_v11  ;;  %v1275_v49 = vsel %vm1272_vm3, %v5381_v45, %v5380_v26  ;;  %v1283_v47 = vsel %vm1272_vm3, %v5380_v26, %v5381_v45  ;;  %v5383_v62 = vld [vmem:[#allocation39_spill] sm:$0xff] }
 0x24b   : > { %v4069_v17 = vpop.permute.xlu1 %1385  ;;  %v4112_v11 = vsel %vm1272_vm3, %v5383_v62, %v5382_v2  ;;  %v4118_v18 = vsel %vm1272_vm3, %v5382_v2, %v5383_v62  ;;  %v1164_v26 = vmul.f32 %v3922_v42, %v1146_v32  ;;  %v1165_v45 = vmul.f32 %v3940_v43, %v1138_v52  ;;  %v5386_v32 = vld [vmem:[#allocation20_spill] sm:$0xff] }
 0x24c   : > { %5375 = vst [vmem:[#allocation58_spill] sm:$0xff] %v4069_v17  ;;  %v892_v38 = vmul.f32 %v3844_v56, %v873_v30  ;;  %v893_v2 = vmul.f32 %v3865_v4, %v865_v3  ;;  %v1075_v62 = vmul.f32 %v5386_v32, %v1027_v22  ;;  %v1076_v52 = vmul.f32 %v5386_v32, %v1028_v21  ;;  %v5390_v22 = vld [vmem:[#allocation53_spill] sm:$0xff]  ;;  %v5398_v4 = vld [vmem:[#allocation100_spill] sm:$0xff] }
 0x24d   : > { %v1811_v58 = vpop.permute.xlu0 %1810  ;;  %1796 = vrot.lane.b32.xlu1 %v3328_v16, %s2855_s14  ;;  %v1301_v16 = vmul.f32 %v3943_v14, %v1283_v47  ;;  %v955_v30 = vadd.f32 %v939_v31, %v3852_v7  ;;  %v1139_v21 = vsel %vm1135_vm6, %v5390_v22, %v5389_v54  ;;  %v5391_v47 = vld [vmem:[#allocation7_spill] sm:$0xff] }
 0x24e   : > { %v4102_v17 = vsel %vm1820_vm2, %v1795_v10, %v1811_v58  ;;  %v4106_v29 = vsel %vm1820_vm2, %v1811_v58, %v1795_v10  ;;  %v5385_v58 = vld [vmem:[#allocation27_spill] sm:$0xff]  ;;  %2680 = vset.pattern.permute.xlu1 %v5312_v59  ;;  %v1212_v32 = vmul.f32 %v5391_v47, %v1164_v26  ;;  %v1167_v25 = vmul.f32 %v3940_v43, %v1139_v21 }
 0x24f   : > { %v4124_v10 = vpop.permute.xlu1 %1401  ;;  %v4127_v0 = vmul.f32 %v5385_v58, %v1160_v60  ;;  %v4130_v8 = vmul.f32 %v5385_v58, %v1161_v50  ;;  %v954_v50 = vadd.f32 %v938_v6, %v3848_v41  ;;  %v5388_v58 = vld [vmem:[#allocation4_spill] sm:$0xff]  ;;  %v1213_v41 = vmul.f32 %v5391_v47, %v1165_v45  ;;  %v5394_v31 = vld [vmem:[#allocation59_spill] sm:$0xff] }
 0x250   : > { %5384 = vst [vmem:[#allocation51_spill] sm:$0xff] %v4124_v10  ;;  %v1302_v10 = vmul.f32 %v3952_v12, %v1275_v49  ;;  %v1077_v3 = vmul.f32 %v5388_v58, %v1029_v61  ;;  %v1078_v59 = vmul.f32 %v5388_v58, %v1030_v33  ;;  %v1147_v49 = vsel %vm1135_vm6, %v5389_v54, %v5390_v22  ;;  %v5393_v6 = vld [vmem:[#allocation64_spill] sm:$0xff]  ;;  %v5395_v54 = vld [vmem:[#allocation14_spill] sm:$0xff]  ;;  %v5396_v47 = vld [vmem:[#allocation11_spill] sm:$0xff] }
 0x251   : > { %v4140_v60 = vpop.permute.xlu0 %1405  ;;  %1812 = vrot.lane.b32.xlu1 %v3355_v55, %s2855_s14  ;;  %v1412_v61 = vsel %vm1409_vm1, %v5394_v31, %v5393_v6  ;;  %v1420_v33 = vsel %vm1409_vm1, %v5393_v6, %v5394_v31  ;;  %v940_v58 = vmul.f32 %v5395_v54, %v892_v38  ;;  %v941_v26 = vmul.f32 %v5395_v54, %v893_v2 }
 0x252   : > { %5387 = vst [vmem:[#allocation65_spill] sm:$0xff] %v4140_v60  ;;  %v1091_v45 = vadd.f32 %v1075_v62, %v954_v50  ;;  %v1092_v22 = vadd.f32 %v1076_v52, %v955_v30  ;;  %v1349_v55 = vmul.f32 %v5396_v47, %v1301_v16  ;;  %v1166_v15 = vmul.f32 %v3922_v42, %v1147_v49  ;;  %v5399_v50 = vld [vmem:[#allocation62_spill] sm:$0xff]  ;;  %v5400_v30 = vld [vmem:[#allocation55_spill] sm:$0xff] }
 0x253   : > { %v4158_v7 = vpop.permute.xlu1 %1604  ;;  %v1549_v6 = vsel %vm1546_vm7, %v5398_v4, %v5397_v36  ;;  %v1557_v38 = vsel %vm1546_vm7, %v5397_v36, %v5398_v4  ;;  %v1438_v16 = vmul.f32 %v3757_v51, %v1412_v61  ;;  %v1276_v21 = vsel %vm1272_vm3, %v5400_v30, %v5399_v50  ;;  %v5401_v61 = vld [vmem:[#allocation29_spill] sm:$0xff] }
 0x254   : > { %5392 = vst [vmem:[#allocation54_spill] sm:$0xff] %v4158_v7  ;;  %v1350_v7 = vmul.f32 %v5396_v47, %v1302_v10  ;;  %v1439_v10 = vmul.f32 %v3760_v28, %v1420_v33  ;;  %v1228_v2 = vadd.f32 %v1212_v32, %v1091_v45  ;;  %v1229_v62 = vadd.f32 %v1213_v41, %v1092_v22 }
 0x255   : > { %v4172_v60 = vpop.permute.xlu0 %1612  ;;  %1663 = vrot.lane.b32.xlu1 %v3387_v37, %s2854_s13  ;;  %v1284_v36 = vsel %vm1272_vm3, %v5399_v50, %v5400_v30  ;;  %v956_v4 = vadd.f32 %v940_v58, %v3856_v5  ;;  %v957_v49 = vadd.f32 %v941_v26, %v3871_v44  ;;  %v1575_v31 = vmul.f32 %v3975_v40, %v1549_v6  ;;  %v5405_v50 = vld [vmem:[#allocation101_spill] sm:$0xff] }
 0x256   : > { %v1365_v32 = vadd.f32 %v1349_v55, %v1228_v2  ;;  %v1366_v41 = vadd.f32 %v1350_v7, %v1229_v62  ;;  %v1576_v37 = vmul.f32 %v3980_v27, %v1557_v38  ;;  %v1214_v33 = vmul.f32 %v5401_v61, %v1166_v15  ;;  %v5402_v55 = vld [vmem:[#allocation19_spill] sm:$0xff] }
 0x257   : > { %v1656_v52 = vpop.permute.xlu1 %1655  ;;  %v1215_v54 = vmul.f32 %v5401_v61, %v1167_v25  ;;  %v1486_v44 = vmul.f32 %v5402_v55, %v1438_v16  ;;  %v1487_v7 = vmul.f32 %v5402_v55, %v1439_v10  ;;  %v1623_v26 = vmul.f32 %v3925_v35, %v1575_v31  ;;  %v5403_v62 = vld [vmem:[#allocation71_spill] sm:$0xff]  ;;  %v5407_v31 = vld [vmem:[#allocation46_spill] sm:$0xff] }
 0x258   : > { %v1686_v45 = vsel %vm1683_vm8, %v1656_v52, %v3777_v9  ;;  %v1694_v5 = vsel %vm1683_vm8, %v3777_v9, %v1656_v52  ;;  %v1624_v15 = vmul.f32 %v3925_v35, %v1576_v37  ;;  %v1303_v22 = vmul.f32 %v3943_v14, %v1284_v36  ;;  %v5404_v52 = vld [vmem:[#allocation61_spill] sm:$0xff]  ;;  %v5408_v37 = vld [vmem:[#allocation40_spill] sm:$0xff] }
 0x259   : > { %1679 = vrot.lane.b32.xlu1 %v3399_v46, %s2854_s13  ;;  %v1304_v47 = vmul.f32 %v3952_v12, %v1276_v21  ;;  %v1093_v6 = vadd.f32 %v1077_v3, %v956_v4  ;;  %v1094_v9 = vadd.f32 %v1078_v59, %v957_v49  ;;  %v1502_v38 = vadd.f32 %v1486_v44, %v1365_v32  ;;  %v5406_v32 = vld [vmem:[#allocation72_spill] sm:$0xff] }
 0x25a   : > { %v4208_v58 = vpop.permute.xlu0 %1729  ;;  %v1503_v2 = vadd.f32 %v1487_v7, %v1366_v41  ;;  %v1712_v16 = vmul.f32 %v4033_v20, %v1686_v45  ;;  %v1713_v10 = vmul.f32 %v4036_v48, %v1694_v5  ;;  %v1413_v35 = vsel %vm1409_vm1, %v5404_v52, %v5403_v62 }
 0x25b   : > { %v1658_v25 = vpop.permute.xlu1 %1657  ;;  %v1421_v46 = vsel %vm1409_vm1, %v5403_v62, %v5404_v52  ;;  %v1550_v3 = vsel %vm1546_vm7, %v5405_v50, %v3767_v19  ;;  %v1558_v59 = vsel %vm1546_vm7, %v3767_v19, %v5405_v50  ;;  %v1639_v21 = vadd.f32 %v1623_v26, %v1502_v38 }
 0x25c   : > { %v1640_v36 = vadd.f32 %v1624_v15, %v1503_v2  ;;  %v1274_v61 = vsel %vm1272_vm3, %v5408_v37, %v5407_v31  ;;  %v1282_v45 = vsel %vm1272_vm3, %v5407_v31, %v5408_v37  ;;  %v1230_v5 = vadd.f32 %v1214_v33, %v1093_v6  ;;  %v1929_v15 = vld [vmem:[%s5090_s5 + $0x20] sm:$0xff] }
 0x25d   : > { %1886 = vperm.xlu1 %2680, %v5406_v32   ;;  %v1231_v19 = vadd.f32 %v1215_v54, %v1094_v9  ;;  %v1440_v38 = vmul.f32 %v3757_v51, %v1413_v35  ;;  %v1441_v2 = vmul.f32 %v3760_v28, %v1421_v46  ;;  %v1577_v33 = vmul.f32 %v3975_v40, %v1550_v3  ;;  %v5414_v35 = vld [vmem:[#allocation99_spill] sm:$0xff] }
 0x25e   : > { %v1734_v30 = vpop.permute.xlu0 %1733  ;;  %v1578_v54 = vmul.f32 %v3980_v27, %v1558_v59  ;;  %v1299_v9 = vmul.f32 %v3943_v14, %v1282_v45  ;;  %v5413_v52 = vmov 0  }
 0x25f   : > { %v1760_v4 = vmul.f32 %v1734_v30, %v1712_v16  ;;  %v1761_v49 = vmul.f32 %v1734_v30, %v1713_v10  ;;  %v1674_v41 = vpop.permute.xlu1 %1673  ;;  %v1300_v16 = vmul.f32 %v3952_v12, %v1274_v61  ;;  %v5412_v10 = vld [vmem:[#allocation36_spill] sm:$0xff]  ;;  %v1488_v46 = vmul.f32 %v5414_v35, %v1440_v38 }
 0x260   : > { %v1687_v7 = vsel %vm1683_vm8, %v1658_v25, %v1674_v41  ;;  %v1695_v26 = vsel %vm1683_vm8, %v1674_v41, %v1658_v25  ;;  %v1351_v25 = vmul.f32 %v5412_v10, %v1303_v22  ;;  %v1352_v62 = vmul.f32 %v5412_v10, %v1304_v47  ;;  %v5415_v41 = vld [vmem:[#allocation30_spill] sm:$0xff] }
 0x261   : > { %v4245_v55 = vadd.f32 %v1760_v4, %v1639_v21  ;;  %v4247_v44 = vadd.f32 %v1761_v49, %v1640_v36  ;;  %2682 = vset.pattern.permute.xlu1 %v5413_v52  ;;  %v1489_v3 = vmul.f32 %v5414_v35, %v1441_v2  ;;  %v1714_v59 = vmul.f32 %v4033_v20, %v1687_v7  ;;  %v1930_v4 = vld [vmem:[%s5090_s5 + $0x28] sm:$0xff]  ;;  %v5420_v2 = vld [vmem:[#allocation8_spill] sm:$0xff]  ;;  %v4318_v52 = vld [vmem:[%s5086_s1 + $0x18] ss:$0 sm:$0xff] }
 0x262   : > { %v4260_v6 = vpop.permute.xlu0 %1741  ;;  %v1715_v30 = vmul.f32 %v4036_v48, %v1695_v26  ;;  %1955 = vperm.xlu1 %2682, %v1929_v15   ;;  %v1226_v21 = vadd.f32 %v4061_v23, %v4038_v13  ;;  %v1227_v22 = vadd.f32 %v4064_v63, %v4040_v34  ;;  %v1297_v47 = vmul.f32 %v3943_v14, %v4118_v18  ;;  %v5416_v23 = vld [vmem:[#allocation9_spill] sm:$0xff]  ;;  %v5417_v63 = vld [vmem:[#allocation48_spill] sm:$0xff]  ;;  %v5418_v18 = vld [vmem:[#allocation42_spill] sm:$0xff] }
 0x263   : > { %5409 = vst [vmem:[#allocation5_spill] sm:$0xff] %v4245_v55  ;;  %5410 = vst [vmem:[#allocation3_spill] sm:$0xff] %v4247_v44  ;;  %v4267_v50 = vpop.permute.xlu1 %1790  ;;  %v1298_v36 = vmul.f32 %v3952_v12, %v4112_v11  ;;  %v1367_v49 = vadd.f32 %v1351_v25, %v1230_v5  ;;  %v1368_v32 = vadd.f32 %v1352_v62, %v1231_v19  ;;  %v5419_v26 = vld [vmem:[#allocation108_spill] sm:$0xff] }
 0x264   : > { %5411 = vst [vmem:[#allocation67_spill] sm:$0xff] %v4260_v6  ;;  %v1625_v31 = vmul.f32 %v5415_v41, %v1577_v33  ;;  %v1626_v37 = vmul.f32 %v5415_v41, %v1578_v54  ;;  %v1347_v61 = vmul.f32 %v5416_v23, %v1299_v9  ;;  %v1348_v34 = vmul.f32 %v5416_v23, %v1300_v16  ;;  %v5421_v9 = vld [vmem:[#allocation47_spill] sm:$0xff]  ;;  %v5422_v16 = vld [vmem:[#allocation41_spill] sm:$0xff]  ;;  %v4313_v62 = vld [vmem:[%s5086_s1 + $0x10] ss:$0 sm:$0xff] }
 0x265   : > { %v1411_v11 = vsel %vm1409_vm1, %v5418_v18, %v5417_v63  ;;  %v1419_v45 = vsel %vm1409_vm1, %v5417_v63, %v5418_v18  ;;  %v1504_v19 = vadd.f32 %v1488_v46, %v1367_v49  ;;  %v1505_v7 = vadd.f32 %v1489_v3, %v1368_v32  ;;  %v5452_v6 = vld [vmem:[#allocation21_spill] sm:$0xff] }
 0x266   : > { %v1662_v13 = vpop.permute.xlu0 %1661  ;;  %v1762_v15 = vmul.f32 %v5419_v26, %v1714_v59  ;;  %v1763_v38 = vmul.f32 %v5419_v26, %v1715_v30  ;;  %1960 = vperm.xlu1 %2682, %v1930_v4   ;;  %v1345_v33 = vmul.f32 %v5420_v2, %v1297_v47  ;;  %v1346_v54 = vmul.f32 %v5420_v2, %v1298_v36 }
 0x267   : > { %v4296_v5 = vpop.permute.xlu1 %1806  ;;  %v1410_v10 = vsel %vm1409_vm1, %v5422_v16, %v5421_v9  ;;  %v1418_v25 = vsel %vm1409_vm1, %v5421_v9, %v5422_v16  ;;  %v1851_v35 = vmul.f32 %v4313_v62, %v4102_v17  ;;  %v1852_v46 = vmul.f32 %v4318_v52, %v4106_v29  ;;  %v5428_v16 = vld [vmem:[#allocation86_spill] sm:$0xff] }
 0x268   : > { %v1641_v59 = vadd.f32 %v1625_v31, %v1504_v19  ;;  %v1642_v30 = vadd.f32 %v1626_v37, %v1505_v7  ;;  %v1436_v47 = vmul.f32 %v3757_v51, %v1411_v11  ;;  %v1437_v36 = vmul.f32 %v3760_v28, %v1419_v45  ;;  %v5424_v11 = vld [vmem:[#allocation74_spill] sm:$0xff] }
 0x269   : > { %v1224_v37 = vadd.f32 %v4127_v0, %v4028_v57  ;;  %v1225_v23 = vadd.f32 %v4130_v8, %v4030_v1  ;;  %v1434_v63 = vmul.f32 %v3757_v51, %v1410_v10  ;;  %v1435_v18 = vmul.f32 %v3760_v28, %v1418_v25  ;;  %v5429_v10 = vld [vmem:[#allocation78_spill] sm:$0xff] }
 0x26a   : > { %v1678_v3 = vpop.permute.xlu0 %1677  ;;  %1802 = vrot.lane.b32.xlu1 %v3438_v24, %s2855_s14  ;;  %v1778_v41 = vadd.f32 %v1762_v15, %v1641_v59  ;;  %v1779_v31 = vadd.f32 %v1763_v38, %v1642_v30  ;;  %v1363_v8 = vadd.f32 %v1347_v61, %v1226_v21  ;;  %v4354_v57 = vadd.f32 %v1348_v34, %v1227_v22  ;;  %v5427_v38 = vld [vmem:[#allocation13_spill] sm:$0xff]  ;;  %v5431_v61 = vld [vmem:[#allocation43_spill] sm:$0xff]  ;;  %v5433_v59 = vld [vmem:[#allocation12_spill] sm:$0xff] }
 0x26b   : > { %v4328_v4 = vsel %vm1683_vm8, %v1662_v13, %v1678_v3  ;;  %v4332_v49 = vsel %vm1683_vm8, %v1678_v3, %v1662_v13  ;;  %v1875_v32 = vpop.permute.xlu1 %1874  ;;  %v5423_v13 = vld [vmem:[#allocation84_spill] sm:$0xff]  ;;  %v4356_v1 = vadd.f32 %v1345_v33, %v1224_v37  ;;  %v1362_v26 = vadd.f32 %v1346_v54, %v1225_v23  ;;  %v5430_v22 = vld [vmem:[#allocation49_spill] sm:$0xff] }
 0x26c   : > { %v1899_v17 = vmul.f32 %v1875_v32, %v1851_v35  ;;  %v1900_v29 = vmul.f32 %v1875_v32, %v1852_v46  ;;  %v867_v45 = vsel %vm861_vm4, %v5424_v11, %v5423_v13  ;;  %v875_v24 = vsel %vm861_vm4, %v5423_v13, %v5424_v11  ;;  %v5432_v35 = vld [vmem:[#allocation114_spill] sm:$0xff]  ;;  %v1932_v3 = vld [vmem:[%s5090_s5 + $0x38] sm:$0xff] }
 0x26d   : > { %v1484_v2 = vmul.f32 %v5427_v38, %v1436_v47  ;;  %v4360_v9 = vmul.f32 %v5427_v38, %v1437_v36  ;;  %v1004_v25 = vsel %vm998_vm5, %v5429_v10, %v5428_v16  ;;  %v1012_v21 = vsel %vm998_vm5, %v5428_v16, %v5429_v10  ;;  %v5434_v47 = vld [vmem:[#allocation50_spill] sm:$0xff]  ;;  %v5435_v36 = vld [vmem:[#allocation44_spill] sm:$0xff]  ;;  %v5437_v37 = vld [vmem:[#allocation117_spill] sm:$0xff] }
 0x26e   : > { %v1527_v19 = vpop.permute.xlu0 %1526  ;;  %v4350_v7 = vadd.f32 %v1899_v17, %v1778_v41  ;;  %v4352_v0 = vadd.f32 %v1900_v29, %v1779_v31  ;;  %1818 = vrot.lane.b32.xlu1 %v3463_v39, %s2855_s14  ;;  %v1548_v34 = vsel %vm1546_vm7, %v5431_v61, %v5430_v22  ;;  %v1556_v33 = vsel %vm1546_vm7, %v5430_v22, %v5431_v61  ;;  %v5436_v41 = vld [vmem:[#allocation116_spill] sm:$0xff]  ;;  %v5438_v16 = vld [vmem:[#allocation77_spill] sm:$0xff] }
 0x26f   : > { %v1253_v15 = vpop.permute.xlu1 %1252  ;;  %v896_v54 = vmul.f32 %v3844_v56, %v875_v24  ;;  %v897_v46 = vmul.f32 %v5432_v35, %v867_v45  ;;  %v1482_v39 = vmul.f32 %v5433_v59, %v1434_v63  ;;  %v1483_v30 = vmul.f32 %v5433_v59, %v1435_v18  ;;  %v5439_v10 = vld [vmem:[#allocation68_spill] sm:$0xff] }
 0x270   : > { %5425 = vst [vmem:[#allocation56_spill] sm:$0xff] %v4350_v7  ;;  %5426 = vst [vmem:[#allocation63_spill] sm:$0xff] %v4352_v0  ;;  %v1547_v32 = vsel %vm1546_vm7, %v5435_v36, %v5434_v47  ;;  %v1555_v17 = vsel %vm1546_vm7, %v5434_v47, %v5435_v36  ;;  %v1033_v31 = vmul.f32 %v5436_v41, %v1012_v21  ;;  %v5440_v21 = vld [vmem:[#allocation6_spill] sm:$0xff]  ;;  %v5453_v7 = vld [vmem:[#allocation23_spill] sm:$0xff] }
 0x271   : > { %v1034_v23 = vmul.f32 %v5437_v37, %v1004_v25  ;;  %v1141_v25 = vsel %vm1135_vm6, %v5439_v10, %v5438_v16  ;;  %v944_v22 = vmul.f32 %v5440_v21, %v896_v54  ;;  %v945_v61 = vmul.f32 %v5440_v21, %v897_v46  ;;  %v5446_v46 = vld [vmem:[#allocation10_spill] sm:$0xff] }
 0x272   : > { %v1543_v29 = vpop.permute.xlu0 %1542  ;;  %1970 = vperm.xlu1 %2682, %v1932_v3   ;;  %v1572_v3 = vmul.f32 %v3980_v27, %v1555_v17  ;;  %v1573_v59 = vmul.f32 %v3975_v40, %v1548_v34  ;;  %v1081_v34 = vmul.f32 %v5446_v46, %v1033_v31  ;;  %v5449_v21 = vld [vmem:[#allocation70_spill] sm:$0xff] }
 0x273   : > { %v1553_v63 = vsel %vm1546_vm7, %v1527_v19, %v1543_v29  ;;  %v1561_v18 = vsel %vm1546_vm7, %v1543_v29, %v1527_v19  ;;  %v1269_v13 = vpop.permute.xlu1 %1268  ;;  %v1149_v19 = vsel %vm1135_vm6, %v5438_v16, %v5439_v10  ;;  %v5444_v29 = vld [vmem:[#allocation83_spill] sm:$0xff]  ;;  %v1082_v17 = vmul.f32 %v5446_v46, %v1034_v23 }
 0x274   : > { %v1583_v11 = vmul.f32 %v3975_v40, %v1553_v63  ;;  %v1584_v45 = vmul.f32 %v3980_v27, %v1561_v18  ;;  %v4405_v24 = vsel %vm1272_vm3, %v1253_v15, %v1269_v13  ;;  %v4409_v38 = vsel %vm1272_vm3, %v1269_v13, %v1253_v15  ;;  %v5445_v63 = vld [vmem:[#allocation81_spill] sm:$0xff]  ;;  %v5448_v10 = vld [vmem:[#allocation79_spill] sm:$0xff] }
 0x275   : > { %v868_v18 = vsel %vm861_vm4, %v5445_v63, %v5444_v29  ;;  %v876_v54 = vsel %vm861_vm4, %v5444_v29, %v5445_v63  ;;  %v1171_v16 = vmul.f32 %v3940_v43, %v1141_v25  ;;  %v1286_v31 = vsel %vm1272_vm3, %v5448_v10, %v5449_v21  ;;  %v5450_v23 = vld [vmem:[#allocation115_spill] sm:$0xff] }
 0x276   : > { %v4424_v15 = vmul.f32 %v4172_v60, %v1583_v11  ;;  %v4427_v47 = vmul.f32 %v4172_v60, %v1584_v45  ;;  %v4429_v36 = vpop.permute.xlu0 %1749  ;;  %v1571_v60 = vmul.f32 %v3975_v40, %v1547_v32  ;;  %v1574_v11 = vmul.f32 %v3980_v27, %v1556_v33  ;;  %v5451_v63 = vld [vmem:[#allocation119_spill] sm:$0xff] }
 0x277   : > { %5443 = vst [vmem:[#allocation57_spill] sm:$0xff] %v4429_v36  ;;  %v4441_v13 = vpop.permute.xlu1 %1475  ;;  %v1170_v45 = vmul.f32 %v3922_v42, %v1149_v19  ;;  %v1278_v36 = vsel %vm1272_vm3, %v5449_v21, %v5448_v10  ;;  %v960_v29 = vadd.f32 %v944_v22, %v5450_v23  ;;  %v961_v32 = vadd.f32 %v945_v61, %v5451_v63  ;;  %v5454_v61 = vld [vmem:[#allocation127_spill] sm:$0xff]  ;;  %v5460_v21 = vld [vmem:[#allocation90_spill] sm:$0xff] }
 0x278   : > { %5441 = vst [vmem:[#allocation52_spill] sm:$0xff] %v4424_v15  ;;  %5442 = vst [vmem:[#allocation69_spill] sm:$0xff] %v4427_v47  ;;  %v1499_v46 = vadd.f32 %v1483_v30, %v1362_v26  ;;  %v898_v33 = vmul.f32 %v3844_v56, %v876_v54  ;;  %v899_v19 = vmul.f32 %v5432_v35, %v868_v18  ;;  %v5458_v54 = vld [vmem:[#allocation16_spill] sm:$0xff]  ;;  %v5461_v23 = vld [vmem:[#allocation38_spill] sm:$0xff] }
 0x279   : > { %5447 = vst [vmem:[#allocation45_spill] sm:$0xff] %v4441_v13  ;;  %v1500_v25 = vadd.f32 %v1484_v2, %v1363_v8  ;;  %v1620_v0 = vmul.f32 %v5452_v6, %v1572_v3  ;;  %v1621_v44 = vmul.f32 %v5453_v7, %v1573_v59  ;;  %v1097_v55 = vadd.f32 %v1081_v34, %v960_v29  ;;  %v5457_v3 = vld [vmem:[#allocation18_spill] sm:$0xff] }
 0x27a   : > { %v1098_v47 = vadd.f32 %v1082_v17, %v961_v32  ;;  %v1307_v10 = vmul.f32 %v3943_v14, %v1286_v31  ;;  %v1308_v22 = vmul.f32 %v3952_v12, %v1278_v36  ;;  %v1619_v2 = vmul.f32 %v5452_v6, %v1571_v60  ;;  %v5459_v17 = vld [vmem:[#allocation92_spill] sm:$0xff] }
 0x27b   : > { %v4461_v15 = vpop.permute.xlu0 %1866  ;;  %v1523_v13 = vpop.permute.xlu1 %1522  ;;  %v1622_v30 = vmul.f32 %v5453_v7, %v1574_v11  ;;  %v1218_v59 = vmul.f32 %v5457_v3, %v1170_v45  ;;  %v1219_v18 = vmul.f32 %v5457_v3, %v1171_v16  ;;  %v946_v36 = vmul.f32 %v5458_v54, %v898_v33 }
 0x27c   : > { %v4468_v26 = vsel %vm1546_vm7, %v1523_v13, %v5454_v61  ;;  %v4473_v8 = vsel %vm1546_vm7, %v5454_v61, %v1523_v13  ;;  %v947_v34 = vmul.f32 %v5458_v54, %v899_v19  ;;  %v1684_v31 = vsel %vm1683_vm8, %v5460_v21, %v5459_v17 }
 0x27d   : > { %5455 = vst [vmem:[#allocation39_spill] sm:$0xff] %v4468_v26  ;;  %5456 = vst [vmem:[#allocation27_spill] sm:$0xff] %v4473_v8  ;;  %v1692_v6 = vsel %vm1683_vm8, %v5459_v17, %v5460_v21  ;;  %v1498_v7 = vadd.f32 %v1482_v39, %v4356_v1  ;;  %v1234_v13 = vadd.f32 %v1218_v59, %v1097_v55  ;;  %v5462_v1 = vld [vmem:[#allocation85_spill] sm:$0xff]  ;;  %v5476_v26 = vld [vmem:[#allocation95_spill] sm:$0xff] }
 0x27e   : > { %v1235_v60 = vadd.f32 %v1219_v18, %v1098_v47  ;;  %v1501_v11 = vadd.f32 %v4360_v9, %v4354_v57  ;;  %v1355_v29 = vmul.f32 %v5461_v23, %v1307_v10  ;;  %v1356_v63 = vmul.f32 %v5461_v23, %v1308_v22  ;;  %v5463_v55 = vld [vmem:[#allocation93_spill] sm:$0xff]  ;;  %v5464_v9 = vld [vmem:[#allocation122_spill] sm:$0xff]  ;;  %v5465_v10 = vld [vmem:[#allocation123_spill] sm:$0xff] }
 0x27f   : > { %v4492_v45 = vpop.permute.xlu0 %1870  ;;  %v1525_v16 = vpop.permute.xlu1 %1524  ;;  %v4496_v32 = vadd.f32 %v1621_v44, %v1500_v25  ;;  %v1636_v33 = vadd.f32 %v1620_v0, %v1499_v46  ;;  %v1708_v19 = vmul.f32 %v4033_v20, %v1684_v31  ;;  %v1709_v61 = vmul.f32 %v4036_v48, %v1692_v6  ;;  %v5466_v46 = vld [vmem:[#allocation96_spill] sm:$0xff]  ;;  %v5467_v22 = vld [vmem:[#allocation91_spill] sm:$0xff]  ;;  %v5468_v31 = vld [vmem:[#allocation33_spill] sm:$0xff] }
 0x280   : > { %v1005_v39 = vsel %vm998_vm5, %v5463_v55, %v5462_v1  ;;  %v1013_v57 = vsel %vm998_vm5, %v5462_v1, %v5463_v55  ;;  %v962_v47 = vadd.f32 %v946_v36, %v5464_v9  ;;  %v963_v44 = vadd.f32 %v947_v34, %v5465_v10  ;;  %v5470_v1 = vld [vmem:[#allocation103_spill] sm:$0xff]  ;;  %v5472_v10 = vld [vmem:[#allocation24_spill] sm:$0xff] }
 0x281   : > { %v4510_v25 = vadd.f32 %v1622_v30, %v1501_v11  ;;  %v1635_v0 = vadd.f32 %v1619_v2, %v1498_v7  ;;  %v869_v3 = vsel %vm861_vm4, %v5467_v22, %v5466_v46  ;;  %v877_v59 = vsel %vm861_vm4, %v5466_v46, %v5467_v22 }
 0x282   : > { %v1371_v18 = vadd.f32 %v1355_v29, %v1234_v13  ;;  %v1372_v54 = vadd.f32 %v1356_v63, %v1235_v60  ;;  %v1035_v36 = vmul.f32 %v5436_v41, %v1013_v57  ;;  %v1036_v30 = vmul.f32 %v5437_v37, %v1005_v39  ;;  %v5469_v29 = vld [vmem:[#allocation102_spill] sm:$0xff] }
 0x283   : > { %v1883_v17 = vpop.permute.xlu0 %1882  ;;  %v1541_v21 = vpop.permute.xlu1 %1540  ;;  %v1756_v6 = vmul.f32 %v5468_v31, %v1708_v19  ;;  %v1757_v7 = vmul.f32 %v5468_v31, %v1709_v61  ;;  %v900_v60 = vmul.f32 %v3844_v56, %v877_v59  ;;  %v901_v23 = vmul.f32 %v5432_v35, %v869_v3  ;;  %v5471_v19 = vld [vmem:[#allocation124_spill] sm:$0xff]  ;;  %v5473_v3 = vld [vmem:[#allocation98_spill] sm:$0xff]  ;;  %v5475_v31 = vld [vmem:[#allocation17_spill] sm:$0xff] }
 0x284   : > { %v1552_v2 = vsel %vm1546_vm7, %v1525_v16, %v1541_v21  ;;  %v1560_v34 = vsel %vm1546_vm7, %v1541_v21, %v1525_v16  ;;  %v1508_v63 = vadd.f32 %v5469_v29, %v1371_v18  ;;  %v1509_v55 = vadd.f32 %v5470_v1, %v1372_v54  ;;  %v5474_v59 = vld [vmem:[#allocation94_spill] sm:$0xff] }
 0x285   : > { %v1581_v11 = vmul.f32 %v3975_v40, %v1552_v2  ;;  %v1582_v13 = vmul.f32 %v3980_v27, %v1560_v34  ;;  %v1718_v39 = vmul.f32 %v4033_v20, %v4328_v4  ;;  %v1719_v16 = vmul.f32 %v4036_v48, %v4332_v49 }
 0x286   : > { %v1083_v46 = vmul.f32 %v5472_v10, %v1035_v36  ;;  %v1084_v22 = vmul.f32 %v5472_v10, %v1036_v30  ;;  %v1006_v18 = vsel %vm998_vm5, %v5474_v59, %v5473_v3  ;;  %v1014_v4 = vsel %vm998_vm5, %v5473_v3, %v5474_v59  ;;  %v5477_v3 = vld [vmem:[#allocation118_spill] sm:$0xff] }
 0x287   : > { %v1629_v61 = vmul.f32 %v5471_v19, %v1581_v11  ;;  %v1630_v57 = vmul.f32 %v5471_v19, %v1582_v13  ;;  %v1799_v9 = vpop.permute.xlu0 %1798  ;;  %v1746_v49 = vpop.permute.xlu1 %1745  ;;  %v948_v11 = vmul.f32 %v5475_v31, %v900_v60  ;;  %v949_v36 = vmul.f32 %v5475_v31, %v901_v23  ;;  %v5484_v31 = vld [vmem:[#allocation106_spill] sm:$0xff] }
 0x288   : > { %v1766_v2 = vmul.f32 %v1746_v49, %v1718_v39  ;;  %v1767_v34 = vmul.f32 %v1746_v49, %v1719_v16  ;;  %v1773_v30 = vadd.f32 %v1757_v7, %v1636_v33  ;;  %v1772_v13 = vadd.f32 %v1756_v6, %v1635_v0  ;;  %v5478_v16 = vld [vmem:[#allocation121_spill] sm:$0xff] }
 0x289   : > { %v1645_v54 = vadd.f32 %v1629_v61, %v1508_v63  ;;  %v1646_v21 = vadd.f32 %v1630_v57, %v1509_v55  ;;  %v1037_v29 = vmul.f32 %v5436_v41, %v1014_v4  ;;  %v1038_v1 = vmul.f32 %v5437_v37, %v1006_v18  ;;  %v5479_v57 = vld [vmem:[#allocation125_spill] sm:$0xff]  ;;  %v5481_v18 = vld [vmem:[#allocation104_spill] sm:$0xff] }
 0x28a   : > { %v1142_v63 = vsel %vm1135_vm6, %v5477_v3, %v5476_v26  ;;  %v1150_v60 = vsel %vm1135_vm6, %v5476_v26, %v5477_v3  ;;  %v1099_v7 = vadd.f32 %v1083_v46, %v962_v47  ;;  %v1100_v23 = vadd.f32 %v1084_v22, %v963_v44  ;;  %v5480_v26 = vld [vmem:[#allocation107_spill] sm:$0xff]  ;;  %v5482_v49 = vld [vmem:[#allocation25_spill] sm:$0xff] }
 0x28b   : > { %v1782_v19 = vadd.f32 %v1766_v2, %v1645_v54  ;;  %v1783_v10 = vadd.f32 %v1767_v34, %v1646_v21  ;;  %v1815_v8 = vpop.permute.xlu0 %1814  ;;  %v4566_v6 = vpop.permute.xlu1 %1792  ;;  %v4571_v61 = vadd.f32 %v948_v11, %v5478_v16  ;;  %v4574_v59 = vadd.f32 %v949_v36, %v5479_v57  ;;  %v5483_v2 = vld [vmem:[#allocation105_spill] sm:$0xff]  ;;  %v5489_v57 = vld [vmem:[#allocation120_spill] sm:$0xff] }
 0x28c   : > { %v1826_v33 = vsel %vm1820_vm2, %v1799_v9, %v1815_v8  ;;  %v1834_v0 = vsel %vm1820_vm2, %v1815_v8, %v1799_v9  ;;  %v1685_v4 = vsel %vm1683_vm8, %v5481_v18, %v5480_v26  ;;  %v1693_v8 = vsel %vm1683_vm8, %v5480_v26, %v5481_v18 }
 0x28d   : > { %v1855_v55 = vmul.f32 %v4313_v62, %v1826_v33  ;;  %v1856_v39 = vmul.f32 %v4318_v52, %v1834_v0  ;;  %v1172_v47 = vmul.f32 %v3922_v42, %v1150_v60  ;;  %v1173_v44 = vmul.f32 %v3940_v43, %v1142_v63  ;;  %v5486_v33 = vld [vmem:[#allocation112_spill] sm:$0xff] }
 0x28e   : > { %v1085_v54 = vmul.f32 %v5482_v49, %v1037_v29  ;;  %v1086_v21 = vmul.f32 %v5482_v49, %v1038_v1  ;;  %v1845_v34 = vmul.f32 %v4313_v62, %v5483_v2  ;;  %v1846_v11 = vmul.f32 %v4318_v52, %v5484_v31  ;;  %v5490_v2 = vld [vmem:[#allocation111_spill] sm:$0xff] }
 0x28f   : > { %v1903_v9 = vmul.f32 %v1883_v17, %v1855_v55  ;;  %v1904_v46 = vmul.f32 %v1883_v17, %v1856_v39  ;;  %v1666_v22 = vpop.permute.xlu0 %1665  ;;  %v4592_v36 = vpop.permute.xlu1 %1808  ;;  %v1710_v3 = vmul.f32 %v4033_v20, %v1685_v4  ;;  %v1711_v60 = vmul.f32 %v4036_v48, %v1693_v8  ;;  %v5487_v39 = vld [vmem:[#allocation34_spill] sm:$0xff] }
 0x290   : > { %v1893_v29 = vmul.f32 %v5486_v33, %v1845_v34  ;;  %v1894_v1 = vmul.f32 %v5486_v33, %v1846_v11  ;;  %v1822_v0 = vsel %vm1820_vm2, %v4267_v50, %v4296_v5  ;;  %v1830_v55 = vsel %vm1820_vm2, %v4296_v5, %v4267_v50  ;;  %v5491_v34 = vld [vmem:[#allocation110_spill] sm:$0xff] }
 0x291   : > { %v4596_v63 = vadd.f32 %v1903_v9, %v1782_v19  ;;  %v4598_v17 = vadd.f32 %v1904_v46, %v1783_v10  ;;  %v1220_v16 = vmul.f32 %v5487_v39, %v1172_v47  ;;  %v1221_v19 = vmul.f32 %v5487_v39, %v1173_v44  ;;  %v5488_v10 = vld [vmem:[#allocation126_spill] sm:$0xff] }
 0x292   : > { %v1143_v26 = vsel %vm1135_vm6, %v5489_v57, %v5488_v10  ;;  %v1151_v18 = vsel %vm1135_vm6, %v5488_v10, %v5489_v57  ;;  %v1309_v8 = vmul.f32 %v3943_v14, %v4409_v38  ;;  %v1310_v50 = vmul.f32 %v3952_v12, %v4405_v24  ;;  %v5493_v10 = vld [vmem:[#allocation97_spill] sm:$0xff] }
 0x293   : > { %5485 = vst [vmem:[#allocation20_spill] sm:$0xff] %v4598_v17  ;;  %v1682_v4 = vpop.permute.xlu0 %1681  ;;  %v1936_v44 = vpop.permute.xlu1 %1935  ;;  %v1758_v9 = vmul.f32 %v4208_v58, %v1710_v3  ;;  %v1759_v46 = vmul.f32 %v4208_v58, %v1711_v60  ;;  %v1847_v49 = vmul.f32 %v4313_v62, %v1822_v0  ;;  %v1848_v38 = vmul.f32 %v4318_v52, %v1830_v55 }
 0x294   : > { %v4626_v5 = vsel %vm1683_vm8, %v1666_v22, %v1682_v4  ;;  %v4630_v47 = vsel %vm1683_vm8, %v1682_v4, %v1666_v22  ;;  %v1311_v24 = vmul.f32 %v3943_v14, %v5490_v2  ;;  %v1312_v31 = vmul.f32 %v3952_v12, %v5491_v34 }
 0x295   : > { %v1174_v11 = vmul.f32 %v3922_v42, %v1151_v18  ;;  %v1175_v22 = vmul.f32 %v3940_v43, %v1143_v26  ;;  %v1895_v33 = vmul.f32 %v4461_v15, %v1847_v49  ;;  %v1896_v3 = vmul.f32 %v4461_v15, %v1848_v38  ;;  %v5494_v26 = vld [vmem:[#allocation65_spill] sm:$0xff] }
 0x296   : > { %v1910_v39 = vadd.f32 %v1894_v1, %v1773_v30  ;;  %v1909_v58 = vadd.f32 %v1893_v29, %v1772_v13  ;;  %v1236_v0 = vadd.f32 %v1220_v16, %v1099_v7  ;;  %v1237_v55 = vadd.f32 %v1221_v19, %v1100_v23  ;;  %v5495_v30 = vld [vmem:[#allocation35_spill] sm:$0xff] }
 0x297   : > { %v4644_v60 = vpop.permute.xlu0 %1890  ;;  %v1357_v57 = vmul.f32 %v5493_v10, %v1309_v8  ;;  %v1358_v4 = vmul.f32 %v5493_v10, %v1310_v50  ;;  %v1390_v2 = vpop.permute.xlu1 %1389  ;;  %v1774_v34 = vadd.f32 %v1758_v9, %v4496_v32  ;;  %v1775_v18 = vadd.f32 %v1759_v46, %v4510_v25  ;;  %v5496_v50 = vld [vmem:[#allocation45_spill] sm:$0xff] }
 0x298   : > { %5492 = vst [vmem:[#allocation4_spill] sm:$0xff] %v4644_v60  ;;  %v1416_v49 = vsel %vm1409_vm1, %v1390_v2, %v5494_v26  ;;  %v1424_v15 = vsel %vm1409_vm1, %v5494_v26, %v1390_v2  ;;  %v1222_v13 = vmul.f32 %v5495_v30, %v1174_v11  ;;  %v1223_v7 = vmul.f32 %v5495_v30, %v1175_v22  ;;  %v5500_v26 = vld [vmem:[#allocation69_spill] sm:$0xff] }
 0x299   : > { %v1446_v23 = vmul.f32 %v3757_v51, %v1416_v49  ;;  %v1447_v29 = vmul.f32 %v3760_v28, %v1424_v15  ;;  %v4660_v1 = vadd.f32 %v1936_v44, %v1909_v58  ;;  %v4662_v32 = vadd.f32 %v1936_v44, %v1910_v39  ;;  %v5497_v44 = vld [vmem:[#allocation128_spill] sm:$0xff] }
 0x29a   : > { %v1911_v25 = vadd.f32 %v1895_v33, %v1774_v34  ;;  %v1912_v16 = vadd.f32 %v1896_v3, %v1775_v18  ;;  %v1373_v19 = vadd.f32 %v1357_v57, %v1236_v0  ;;  %v1374_v8 = vadd.f32 %v1358_v4, %v1237_v55  ;;  %v5498_v34 = vld [vmem:[#allocation52_spill] sm:$0xff] }
 0x29b   : > { %v1494_v9 = vmul.f32 %v5496_v50, %v1446_v23  ;;  %v1495_v46 = vmul.f32 %v5496_v50, %v1447_v29  ;;  %v1392_v11 = vpop.permute.xlu1 %1391  ;;  %v1101_v22 = vadd.f32 %v1085_v54, %v4571_v61  ;;  %v1102_v10 = vadd.f32 %v1086_v21, %v4574_v59 }
 0x29c   : > { %v1941_v38 = vpop.permute.xlu0 %1940  ;;  %v1359_v39 = vmul.f32 %v5497_v44, %v1311_v24  ;;  %v1360_v33 = vmul.f32 %v5497_v44, %v1312_v31  ;;  %v1989_v55 = vmin.f32 %v4660_v1, 20.0  ;;  %v1990_v57 = vmin.f32 %v4662_v32, 20.0 }
 0x29d   : > { %v4668_v2 = vadd.f32 %v1941_v38, %v1911_v25  ;;  %v4670_v58 = vadd.f32 %v1941_v38, %v1912_v16  ;;  %v1510_v3 = vadd.f32 %v1494_v9, %v1373_v19  ;;  %v1511_v0 = vadd.f32 %v1495_v46, %v1374_v8  ;;  %v5502_v19 = vld [vmem:[#allocation113_spill] sm:$0xff] }
 0x29e   : > { %v1238_v54 = vadd.f32 %v1222_v13, %v1101_v22  ;;  %v1239_v59 = vadd.f32 %v1223_v7, %v1102_v10  ;;  %v1823_v22 = vsel %vm1820_vm2, %v4566_v6, %v4592_v36  ;;  %v1831_v10 = vsel %vm1820_vm2, %v4592_v36, %v4566_v6 }
 0x29f   : > { %v1991_v4 = vmin.f32 %v4668_v2, 20.0  ;;  %v1992_v61 = vmin.f32 %v4670_v58, 20.0  ;;  %v1408_v21 = vpop.permute.xlu1 %1407  ;;  %v4679_v18 = vadd.f32 %v5498_v34, %v1510_v3  ;;  %v4682_v24 = vadd.f32 %v5500_v26, %v1511_v0 }
 0x2a0   : > { %v1417_v15 = vsel %vm1409_vm1, %v1392_v11, %v1408_v21  ;;  %v1425_v30 = vsel %vm1409_vm1, %v1408_v21, %v1392_v11  ;;  %v1375_v25 = vadd.f32 %v1359_v39, %v1238_v54  ;;  %v1376_v16 = vadd.f32 %v1360_v33, %v1239_v59  ;;  %v5503_v59 = vld [vmem:[#allocation66_spill] sm:$0xff]  ;;  %v5504_v21 = vld [vmem:[#allocation73_spill] sm:$0xff] }
 0x2a1   : > { %5499 = vst [vmem:[#allocation60_spill] sm:$0xff] %v4679_v18  ;;  %5501 = vst [vmem:[#allocation53_spill] sm:$0xff] %v4682_v24  ;;  %v2005_v31 = vpack.c.bf16 %v1991_v4, %v1989_v55  ;;  %v2006_v49 = vpack.c.bf16 %v1992_v61, %v1990_v57  ;;  %v1448_v23 = vmul.f32 %v3757_v51, %v1417_v15 }
 0x2a2   : > { %v1449_v13 = vmul.f32 %v3760_v28, %v1425_v30  ;;  %v1849_v39 = vmul.f32 %v4313_v62, %v1823_v22  ;;  %v1850_v33 = vmul.f32 %v4318_v52, %v1831_v10  ;;  %v874_v6 = vsel %vm861_vm4, %v5504_v21, %v5503_v59 }
 0x2a3   : > { %v2014_v7 = vmul.bf16 1069105081, %v2005_v31  ;;  %v2017_v29 = vmul.bf16 1069105081, %v2006_v49  ;;  %v1496_v8 = vmul.f32 %v5502_v19, %v1448_v23  ;;  %v4692_v9 = vpop.permute.xlu1 %1616  ;;  %v5505_v31 = vld [vmem:[#allocation5_spill] sm:$0xff]  ;;  %v866_v10 = vsel %vm861_vm4, %v5503_v59, %v5504_v21  ;;  %v5512_v21 = vld [vmem:[#allocation63_spill] sm:$0xff] }
 0x2a4   : > { %v1497_v50 = vmul.f32 %v5502_v19, %v1449_v13  ;;  %v1897_v0 = vmul.f32 %v4492_v45, %v1849_v39  ;;  %v1898_v57 = vmul.f32 %v4492_v45, %v1850_v33  ;;  %v5506_v13 = vld [vmem:[#allocation3_spill] sm:$0xff]  ;;  %v894_v45 = vmul.f32 %v3844_v56, %v874_v6 }
 0x2a5   : > { %2736 = vpow.bf16 %v2014_v7  ;;  %v4694_v46 = vadd.f32 %v1496_v8, %v1375_v25  ;;  %v5507_v8 = vld [vmem:[#allocation26_spill] sm:$0xff] }
 0x2a6   : > { %2738 = vpow.bf16 %v2017_v29  ;;  %v4696_v38 = vadd.f32 %v1497_v50, %v1376_v16  ;;  %v1913_v49 = vadd.f32 %v1897_v0, %v5505_v31  ;;  %v1914_v7 = vadd.f32 %v1898_v57, %v5506_v13  ;;  %v5508_v50 = vld [vmem:[#allocation2_spill] sm:$0xff]  ;;  %v5509_v0 = vld [vmem:[#allocation75_spill] sm:$0xff] }
 0x2a7   : > { %v4698_v11 = vpop.permute.xlu1 %1659  ;;  %v819_v22 = vmul.f32 %v5508_v50, %v5507_v8  ;;  %v895_v31 = vmul.f32 %v5432_v35, %v866_v10  ;;  %v5514_v35 = vld [vmem:[#allocation88_spill] sm:$0xff] }
 0x2a8   : > { %v5515_v10 = vld [vmem:[#allocation80_spill] sm:$0xff] }
 0x2ab   : > { %v4708_v44 = vpop.permute.xlu1 %1675 }
 0x2af   : > { %v4712_v3 = vpop.permute.xlu1 %1878 }
 0x2b3   : > { %v2737_v55 = vpop.eup %2736 }
 0x2b4   : > { %v2739_v4 = vpop.eup %2738  ;;  %v2039_v61 = vunpack.c.h.bf16 %v2737_v55  ;;  %v2037_v54 = vunpack.c.l.bf16 %v2737_v55  ;;  %v1946_v15 = vpop.permute.xlu1 %1945  ;;  %v5510_v55 = vld [vmem:[#allocation76_spill] sm:$0xff] }
 0x2b5   : > { %v2040_v36 = vunpack.c.h.bf16 %v2739_v4  ;;  %v2038_v34 = vunpack.c.l.bf16 %v2739_v4  ;;  %v4723_v16 = vadd.f32 %v1946_v15, %v1913_v49  ;;  %v4731_v33 = vadd.f32 %v1946_v15, %v1914_v7  ;;  %v5513_v49 = vld [vmem:[#allocation15_spill] sm:$0xff] }
 0x2b6   : > { %v2055_v26 = vadd.f32 1.0, %v2039_v61  ;;  %v2053_v30 = vadd.f32 1.0, %v2037_v54  ;;  %v1003_v56 = vsel %vm998_vm5, %v5510_v55, %v5509_v0  ;;  %v1011_v6 = vsel %vm998_vm5, %v5509_v0, %v5510_v55 }
 0x2b7   : > { %v2056_v23 = vadd.f32 1.0, %v2040_v36  ;;  %v2054_v29 = vadd.f32 1.0, %v2038_v34  ;;  %v5511_v34 = vld [vmem:[#allocation56_spill] sm:$0xff]  ;;  %v942_v15 = vmul.f32 %v5513_v49, %v894_v45  ;;  %v1032_v8 = vmul.f32 %v5437_v37, %v1003_v56 }
 0x2b8   : > { %v2071_v25 = vmul.f32 %v2055_v26, %v2055_v26  ;;  %v2069_v19 = vmul.f32 %v2053_v30, %v2053_v30  ;;  %v1951_v4 = vpop.permute.xlu1 %1950  ;;  %v1993_v30 = vmin.f32 %v4723_v16, 20.0  ;;  %v1140_v45 = vsel %vm1135_vm6, %v5515_v10, %v5514_v35 }
 0x2b9   : > { %v2072_v39 = vmul.f32 %v2056_v23, %v2056_v23  ;;  %v2070_v61 = vmul.f32 %v2054_v29, %v2054_v29  ;;  %v4742_v59 = vadd.f32 %v1951_v4, %v5511_v34  ;;  %v4745_v26 = vadd.f32 %v1951_v4, %v5512_v21  ;;  %v5516_v34 = vld [vmem:[#allocation31_spill] sm:$0xff]  ;;  %v5517_v21 = vld [vmem:[#allocation22_spill] sm:$0xff] }
 0x2ba   : > { %v2119_v57 = vadd.f32 1.0, %v2071_v25  ;;  %v2117_v54 = vadd.f32 1.0, %v2069_v19  ;;  %v1994_v23 = vmin.f32 %v4731_v33, 20.0  ;;  %v1031_v29 = vmul.f32 %v5436_v41, %v1011_v6 }
 0x2bb   : > { %v2120_v36 = vadd.f32 1.0, %v2072_v39  ;;  %v1995_v13 = vmin.f32 %v4742_v59, 20.0  ;;  %v1996_v7 = vmin.f32 %v4745_v26, 20.0  ;;  %v2118_v55 = vadd.f32 1.0, %v2070_v61 }
 0x2bc   : > { %2740 = vrcp.f32 %v2119_v57  ;;  %v1529_v0 = vpop.permute.xlu1 %1528  ;;  %v1148_v57 = vsel %vm1135_vm6, %v5514_v35, %v5515_v10  ;;  %v820_v41 = vmul.f32 %v5508_v50, %v5516_v34  ;;  %v943_v37 = vmul.f32 %v5513_v49, %v895_v31 }
 0x2bd   : > { %2742 = vrcp.f32 %v2120_v36  ;;  %v2007_v4 = vpack.c.bf16 %v1995_v13, %v1993_v30  ;;  %v2008_v36 = vpack.c.bf16 %v1996_v7, %v1994_v23  ;;  %v958_v56 = vadd.f32 %v942_v15, %v819_v22  ;;  %v5518_v30 = vld [vmem:[#allocation82_spill] sm:$0xff]  ;;  %v5519_v23 = vld [vmem:[#allocation89_spill] sm:$0xff] }
 0x2be   : > { %2744 = vrcp.f32 %v2117_v54  ;;  %v1079_v60 = vmul.f32 %v5517_v21, %v1031_v29  ;;  %v1080_v24 = vmul.f32 %v5517_v21, %v1032_v8  ;;  %v1168_v18 = vmul.f32 %v3922_v42, %v1148_v57  ;;  %v5520_v8 = vld [vmem:[#allocation51_spill] sm:$0xff] }
 0x2bf   : > { %2746 = vrcp.f32 %v2118_v55  ;;  %v2020_v54 = vmul.bf16 1069105081, %v2007_v4  ;;  %v2023_v6 = vmul.bf16 1069105081, %v2008_v36  ;;  %v1169_v17 = vmul.f32 %v3940_v43, %v1140_v45  ;;  %v5522_v4 = vld [vmem:[#allocation32_spill] sm:$0xff] }
 0x2c0   : > { %v1545_v35 = vpop.permute.xlu1 %1544  ;;  %v1285_v50 = vsel %vm1272_vm3, %v5519_v23, %v5518_v30  ;;  %v2582_v49 = vadd.f32 -1.0, %v2071_v25  ;;  %v1277_v43 = vsel %vm1272_vm3, %v5518_v30, %v5519_v23  ;;  %v1722_v13 = vmul.f32 %v4033_v20, %v4626_v5 }
 0x2c1   : > { %2748 = vpow.bf16 %v2020_v54  ;;  %v1554_v22 = vsel %vm1546_vm7, %v1529_v0, %v1545_v35  ;;  %v1562_v31 = vsel %vm1546_vm7, %v1545_v35, %v1529_v0  ;;  %v1723_v7 = vmul.f32 %v4036_v48, %v4630_v47  ;;  %v5521_v0 = vld [vmem:[#allocation58_spill] sm:$0xff] }
 0x2c2   : > { %2750 = vpow.bf16 %v2023_v6  ;;  %v1585_v15 = vmul.f32 %v3975_v40, %v1554_v22  ;;  %v1586_v42 = vmul.f32 %v3980_v27, %v1562_v31  ;;  %v2583_v29 = vadd.f32 -1.0, %v2072_v39 }
 0x2c3   : > { %v1414_v25 = vsel %vm1409_vm1, %v5521_v0, %v5520_v8  ;;  %v2580_v57 = vadd.f32 -1.0, %v2069_v19  ;;  %v1216_v36 = vmul.f32 %v5522_v4, %v1168_v18  ;;  %v1305_v34 = vmul.f32 %v3943_v14, %v1285_v50 }
 0x2c4   : > { %v1633_v55 = vmul.f32 %v4692_v9, %v1585_v15  ;;  %v1634_v10 = vmul.f32 %v4692_v9, %v1586_v42  ;;  %v1754_v45 = vpop.permute.xlu1 %1753  ;;  %v2103_v47 = vmul.f32 %v2582_v49, %v4668_v2  ;;  %v2581_v21 = vadd.f32 -1.0, %v2070_v61 }
 0x2c5   : > { %v1770_v5 = vmul.f32 %v1754_v45, %v1722_v13  ;;  %v1771_v54 = vmul.f32 %v1754_v45, %v1723_v7  ;;  %v1306_v30 = vmul.f32 %v3952_v12, %v1277_v43  ;;  %v1422_v9 = vsel %vm1409_vm1, %v5520_v8, %v5521_v0  ;;  %v5525_v0 = vld [vmem:[#allocation39_spill] sm:$0xff] }
 0x2c6   : > { %v1649_v39 = vadd.f32 %v1633_v55, %v4694_v46  ;;  %v1650_v6 = vadd.f32 %v1634_v10, %v4696_v38  ;;  %v1442_v18 = vmul.f32 %v3757_v51, %v1414_v25  ;;  %v2104_v14 = vmul.f32 %v2583_v29, %v4670_v58  ;;  %v5523_v51 = vld [vmem:[#allocation28_spill] sm:$0xff] }
 0x2c7   : > { %v2101_v61 = vmul.f32 %v2580_v57, %v4660_v1  ;;  %v959_v50 = vadd.f32 %v943_v37, %v820_v41  ;;  %v1217_v22 = vmul.f32 %v5522_v4, %v1169_v17  ;;  %v1095_v49 = vadd.f32 %v1079_v60, %v958_v56  ;;  %v5524_v17 = vld [vmem:[#allocation37_spill] sm:$0xff]  ;;  %v5526_v4 = vld [vmem:[#allocation27_spill] sm:$0xff] }
 0x2c8   : > { %v4808_v2 = vadd.f32 %v1770_v5, %v1649_v39  ;;  %v4810_v46 = vadd.f32 %v1771_v54, %v1650_v6  ;;  %v1797_v38 = vpop.permute.xlu1 %1796  ;;  %v1353_v15 = vmul.f32 %v5523_v51, %v1305_v34  ;;  %v2102_v58 = vmul.f32 %v2581_v21, %v4662_v32  ;;  %v5527_v21 = vld [vmem:[#allocation54_spill] sm:$0xff] }
 0x2c9   : > { %v2741_v35 = vpop.eup %2740  ;;  %v1096_v13 = vadd.f32 %v1080_v24, %v959_v50  ;;  %v1354_v7 = vmul.f32 %v5523_v51, %v1306_v30  ;;  %v1443_v29 = vmul.f32 %v3760_v28, %v1422_v9  ;;  %v1232_v41 = vadd.f32 %v1216_v36, %v1095_v49 }
 0x2ca   : > { %v2743_v19 = vpop.eup %2742  ;;  %v4806_v23 = vmul.f32 %v2741_v35, %v2103_v47  ;;  %v1490_v37 = vmul.f32 %v5524_v17, %v1442_v18  ;;  %v1579_v25 = vmul.f32 %v3975_v40, %v5525_v0  ;;  %v1580_v36 = vmul.f32 %v3980_v27, %v5526_v4 }
 0x2cb   : > { %v2745_v12 = vpop.eup %2744  ;;  %v4814_v31 = vmul.f32 %v2743_v19, %v2104_v14  ;;  %v1233_v56 = vadd.f32 %v1217_v22, %v1096_v13  ;;  %v1369_v32 = vadd.f32 %v1353_v15, %v1232_v41  ;;  %v1491_v10 = vmul.f32 %v5524_v17, %v1443_v29 }
 0x2cc   : > { %v4818_v42 = vmul.f32 %v2745_v12, %v2101_v61  ;;  %v2747_v43 = vpop.eup %2746  ;;  %v1813_v8 = vpop.permute.xlu1 %1812  ;;  %v1688_v40 = vsel %vm1683_vm8, %v4698_v11, %v4708_v44  ;;  %v1696_v47 = vsel %vm1683_vm8, %v4708_v44, %v4698_v11  ;;  %v1627_v35 = vmul.f32 %v5527_v21, %v1579_v25 }
 0x2cd   : > { %v2193_v1 = vadd.f32 %v4814_v31, %v4806_v23  ;;  %v4825_v60 = vmul.f32 %v2747_v43, %v2102_v58  ;;  %v1370_v28 = vadd.f32 %v1354_v7, %v1233_v56  ;;  %v1506_v57 = vadd.f32 %v1490_v37, %v1369_v32 }
 0x2ce   : > { %v1825_v27 = vsel %vm1820_vm2, %v1797_v38, %v1813_v8  ;;  %v1833_v19 = vsel %vm1820_vm2, %v1813_v8, %v1797_v38  ;;  %v1716_v12 = vmul.f32 %v4033_v20, %v1688_v40  ;;  %v1717_v50 = vmul.f32 %v4036_v48, %v1696_v47  ;;  %v1801_v38 = vpop.permute.xlu0 %1800  ;;  %v5528_v8 = vld [vmem:[#allocation67_spill] sm:$0xff] }
 0x2cf   : > { %2194 = vadd.xlane.f32.xlu0 %v2193_v1  ;;  %v2190_v24 = vadd.f32 %v4825_v60, %v4818_v42  ;;  %v2749_v55 = vpop.eup %2748  ;;  %v1507_v18 = vadd.f32 %v1491_v10, %v1370_v28  ;;  %v1628_v49 = vmul.f32 %v5527_v21, %v1580_v36  ;;  %v1853_v15 = vmul.f32 %v4313_v62, %v1825_v27 }
 0x2d0   : > { %v2751_v45 = vpop.eup %2750  ;;  %v2043_v34 = vunpack.c.h.bf16 %v2749_v55  ;;  %v1664_v5 = vpop.permute.xlu1 %1663  ;;  %v2041_v54 = vunpack.c.l.bf16 %v2749_v55  ;;  %v1643_v43 = vadd.f32 %v1627_v35, %v1506_v57  ;;  %v1854_v29 = vmul.f32 %v4318_v52, %v1833_v19 }
 0x2d1   : > { %2191 = vadd.xlane.f32.xlu1 %v2190_v24  ;;  %v2044_v39 = vunpack.c.h.bf16 %v2751_v45  ;;  %v2042_v6 = vunpack.c.l.bf16 %v2751_v45  ;;  %v1764_v56 = vmul.f32 %v5528_v8, %v1716_v12  ;;  %v1765_v32 = vmul.f32 %v5528_v8, %v1717_v50 }
 0x2d2   : > { %v2059_v30 = vadd.f32 1.0, %v2043_v34  ;;  %v2057_v9 = vadd.f32 1.0, %v2041_v54  ;;  %v1644_v24 = vadd.f32 %v1628_v49, %v1507_v18  ;;  %v1901_v28 = vmul.f32 %v4712_v3, %v1853_v15  ;;  %v5530_v18 = vld [vmem:[#allocation20_spill] sm:$0xff] }
 0x2d3   : > { %v2060_v14 = vadd.f32 1.0, %v2044_v39  ;;  %v2058_v61 = vadd.f32 1.0, %v2042_v6  ;;  %v1902_v10 = vmul.f32 %v4712_v3, %v1854_v29  ;;  %v1780_v54 = vadd.f32 %v1764_v56, %v1643_v43 }
 0x2d4   : > { %v2075_v11 = vmul.f32 %v2059_v30, %v2059_v30  ;;  %v1680_v44 = vpop.permute.xlu1 %1679  ;;  %v2073_v22 = vmul.f32 %v2057_v9, %v2057_v9  ;;  %v1781_v40 = vadd.f32 %v1765_v32, %v1644_v24  ;;  %v5529_v30 = vld [vmem:[#allocation57_spill] sm:$0xff] }
 0x2d5   : > { %v2076_v51 = vmul.f32 %v2060_v14, %v2060_v14  ;;  %v2074_v58 = vmul.f32 %v2058_v61, %v2058_v61  ;;  %v1690_v45 = vsel %vm1683_vm8, %v1664_v5, %v1680_v44  ;;  %v1917_v6 = vadd.f32 %v1901_v28, %v1780_v54 }
 0x2d6   : > { %v2586_v13 = vadd.f32 -1.0, %v2075_v11  ;;  %v2123_v7 = vadd.f32 1.0, %v2075_v11  ;;  %v2584_v17 = vadd.f32 -1.0, %v2073_v22  ;;  %v2121_v36 = vadd.f32 1.0, %v2073_v22 }
 0x2d7   : > { %v2587_v1 = vadd.f32 -1.0, %v2076_v51  ;;  %v2124_v41 = vadd.f32 1.0, %v2076_v51  ;;  %v2585_v37 = vadd.f32 -1.0, %v2074_v58  ;;  %v2122_v34 = vadd.f32 1.0, %v2074_v58 }
 0x2d8   : > { %v2107_v0 = vmul.f32 %v2586_v13, %v4742_v59  ;;  %2752 = vrcp.f32 %v2123_v7  ;;  %v1887_v25 = vpop.permute.xlu1 %1886  ;;  %v2105_v57 = vmul.f32 %v2584_v17, %v4723_v16  ;;  %v1698_v59 = vsel %vm1683_vm8, %v1680_v44, %v1664_v5  ;;  %v5532_v7 = vld [vmem:[#allocation53_spill] sm:$0xff] }
 0x2d9   : > { %v2108_v55 = vmul.f32 %v2587_v1, %v4745_v26  ;;  %2754 = vrcp.f32 %v2124_v41  ;;  %v2106_v4 = vmul.f32 %v2585_v37, %v4731_v33  ;;  %v1817_v26 = vpop.permute.xlu0 %1816  ;;  %v1720_v47 = vmul.f32 %v4033_v20, %v1690_v45 }
 0x2da   : > { %2756 = vrcp.f32 %v2121_v36  ;;  %v1721_v3 = vmul.f32 %v4036_v48, %v1698_v59  ;;  %v1918_v21 = vadd.f32 %v1902_v10, %v1781_v40  ;;  %v1827_v16 = vsel %vm1820_vm2, %v1801_v38, %v1817_v26 }
 0x2db   : > { %2758 = vrcp.f32 %v2122_v34  ;;  %v1835_v33 = vsel %vm1820_vm2, %v1817_v26, %v1801_v38  ;;  %v1768_v27 = vmul.f32 %v5529_v30, %v1720_v47  ;;  %v1857_v19 = vmul.f32 %v4313_v62, %v1827_v16  ;;  %v5533_v34 = vld [vmem:[#allocation4_spill] sm:$0xff] }
 0x2dc   : > { %v1769_v9 = vmul.f32 %v5529_v30, %v1721_v3  ;;  %v1858_v61 = vmul.f32 %v4318_v52, %v1835_v33 }
 0x2dd   : > { %v1956_v39 = vpop.permute.xlu1 %1955  ;;  %v1905_v49 = vmul.f32 %v1887_v25, %v1857_v19  ;;  %v1966_v10 = vpop.permute.xlu0 %1965 }
 0x2de   : > { %v4870_v5 = vadd.f32 %v1956_v39, %v1917_v6  ;;  %v4872_v35 = vadd.f32 %v1956_v39, %v1918_v21  ;;  %v1906_v51 = vmul.f32 %v1887_v25, %v1858_v61  ;;  %v1785_v29 = vadd.f32 %v1769_v9, %v5532_v7 }
 0x2e0   : > { %v1997_v12 = vmin.f32 %v4870_v5, 20.0  ;;  %v1998_v50 = vmin.f32 %v4872_v35, 20.0  ;;  %v1922_v24 = vadd.f32 %v1906_v51, %v1785_v29 }
 0x2e1   : > { %v1961_v20 = vpop.permute.xlu1 %1960 }
 0x2e2   : > { %v4877_v48 = vadd.f32 %v1961_v20, %v4596_v63  ;;  %v4880_v14 = vadd.f32 %v1961_v20, %v5530_v18  ;;  %v5531_v63 = vld [vmem:[#allocation60_spill] sm:$0xff]  ;;  %v4910_v53 = vadd.f32 %v1966_v10, %v1922_v24 }
 0x2e3   : > { %v1784_v15 = vadd.f32 %v1768_v27, %v5531_v63 }
 0x2e4   : > { %v1999_v11 = vmin.f32 %v4877_v48, 20.0  ;;  %v2000_v44 = vmin.f32 %v4880_v14, 20.0  ;;  %v2002_v21 = vmin.f32 %v4910_v53, 20.0 }
 0x2e5   : > { %v2753_v22 = vpop.eup %2752  ;;  %v1803_v58 = vpop.permute.xlu1 %1802  ;;  %v1921_v8 = vadd.f32 %v1905_v49, %v1784_v15 }
 0x2e6   : > { %v2755_v43 = vpop.eup %2754  ;;  %v4889_v13 = vmul.f32 %v2753_v22, %v2107_v0  ;;  %v2009_v38 = vpack.c.bf16 %v1999_v11, %v1997_v12  ;;  %v2010_v1 = vpack.c.bf16 %v2000_v44, %v1998_v50 }
 0x2e7   : > { %v4892_v41 = vmul.f32 %v2755_v43, %v2108_v55  ;;  %v2757_v25 = vpop.eup %2756  ;;  %v4908_v47 = vadd.f32 %v1966_v10, %v1921_v8 }
 0x2e8   : > { %v2026_v17 = vmul.bf16 1069105081, %v2009_v38  ;;  %v2029_v37 = vmul.bf16 1069105081, %v2010_v1  ;;  %v4902_v59 = vmul.f32 %v2757_v25, %v2105_v57  ;;  %v2759_v36 = vpop.eup %2758 }
 0x2e9   : > { %v1819_v56 = vpop.permute.xlu1 %1818  ;;  %v2199_v32 = vadd.f32 %v4892_v41, %v4889_v13  ;;  %v4906_v26 = vmul.f32 %v2759_v36, %v2106_v4  ;;  %v2001_v4 = vmin.f32 %v4908_v47, 20.0 }
 0x2ea   : > { %2760 = vpow.bf16 %v2026_v17  ;;  %v1828_v0 = vsel %vm1820_vm2, %v1803_v58, %v1819_v56  ;;  %v1836_v28 = vsel %vm1820_vm2, %v1819_v56, %v1803_v58 }
 0x2eb   : > { %2762 = vpow.bf16 %v2029_v37  ;;  %v1859_v55 = vmul.f32 %v4313_v62, %v1828_v0  ;;  %v1860_v45 = vmul.f32 %v4318_v52, %v1836_v28  ;;  %2200 = vadd.xlane.f32.xlu1 %v2199_v32  ;;  %v2196_v39 = vadd.f32 %v4906_v26, %v4902_v59 }
 0x2ed   : > { %v1907_v54 = vmul.f32 %v5533_v34, %v1859_v55  ;;  %v1908_v40 = vmul.f32 %v5533_v34, %v1860_v45  ;;  %v1971_v57 = vpop.permute.xlu1 %1970  ;;  %2197 = vadd.xlane.f32.xlu0 %v2196_v39 }
 0x2ef   : > { %v1923_v62 = vadd.f32 %v1907_v54, %v4808_v2  ;;  %v1924_v52 = vadd.f32 %v1908_v40, %v4810_v46 }
 0x2f1   : > { %v4916_v3 = vadd.f32 %v1971_v57, %v1923_v62  ;;  %v4918_v6 = vadd.f32 %v1971_v57, %v1924_v52 }
 0x2f3   : > { %v2003_v16 = vmin.f32 %v4916_v3, 20.0  ;;  %v2004_v33 = vmin.f32 %v4918_v6, 20.0 }
 0x2f5   : > { %v2011_v30 = vpack.c.bf16 %v2003_v16, %v2001_v4  ;;  %v2012_v27 = vpack.c.bf16 %v2004_v33, %v2002_v21 }
 0x2f7   : > { %v2032_v20 = vmul.bf16 1069105081, %v2011_v30  ;;  %v2035_v2 = vmul.bf16 1069105081, %v2012_v27 }
 0x2f8   : > { %v2761_v9 = vpop.eup %2760 }
 0x2f9   : > { %v2763_v46 = vpop.eup %2762  ;;  %v2047_v18 = vunpack.c.h.bf16 %v2761_v9  ;;  %2764 = vpow.bf16 %v2032_v20  ;;  %v2045_v19 = vunpack.c.l.bf16 %v2761_v9 }
 0x2fa   : > { %v2048_v61 = vunpack.c.h.bf16 %v2763_v46  ;;  %2766 = vpow.bf16 %v2035_v2  ;;  %v2046_v12 = vunpack.c.l.bf16 %v2763_v46 }
 0x2fb   : > { %v2063_v50 = vadd.f32 1.0, %v2047_v18  ;;  %v2061_v11 = vadd.f32 1.0, %v2045_v19 }
 0x2fc   : > { %v2064_v44 = vadd.f32 1.0, %v2048_v61  ;;  %v2062_v22 = vadd.f32 1.0, %v2046_v12 }
 0x2fd   : > { %v2079_v49 = vmul.f32 %v2063_v50, %v2063_v50  ;;  %v2077_v51 = vmul.f32 %v2061_v11, %v2061_v11 }
 0x2fe   : > { %v2080_v63 = vmul.f32 %v2064_v44, %v2064_v44  ;;  %v2078_v15 = vmul.f32 %v2062_v22, %v2062_v22 }
 0x2ff   : > { %v2590_v58 = vadd.f32 -1.0, %v2079_v49  ;;  %v2127_v43 = vadd.f32 1.0, %v2079_v49  ;;  %v2588_v7 = vadd.f32 -1.0, %v2077_v51  ;;  %v2125_v29 = vadd.f32 1.0, %v2077_v51 }
 0x300   : > { %v2591_v38 = vadd.f32 -1.0, %v2080_v63  ;;  %v2128_v1 = vadd.f32 1.0, %v2080_v63  ;;  %v2589_v17 = vadd.f32 -1.0, %v2078_v15  ;;  %v2126_v37 = vadd.f32 1.0, %v2078_v15 }
 0x301   : > { %v2111_v8 = vmul.f32 %v2590_v58, %v4877_v48  ;;  %2768 = vrcp.f32 %v2127_v43  ;;  %v2109_v56 = vmul.f32 %v2588_v7, %v4870_v5 }
 0x302   : > { %v2112_v32 = vmul.f32 %v2591_v38, %v4880_v14  ;;  %2770 = vrcp.f32 %v2128_v1  ;;  %v2110_v25 = vmul.f32 %v2589_v17, %v4872_v35 }
 0x303   : > { %2772 = vrcp.f32 %v2125_v29 }
 0x304   : > { %2774 = vrcp.f32 %v2126_v37  ;;  %v2166_v37 = vld [vmem:[%s5091_s6 + $0x8] sm:$0xff] }
 0x307   : > { %v2765_v24 = vpop.eup %2764 }
 0x308   : > { %v2767_v0 = vpop.eup %2766  ;;  %v2051_v28 = vunpack.c.h.bf16 %v2765_v24  ;;  %v2049_v10 = vunpack.c.l.bf16 %v2765_v24 }
 0x309   : > { %v2052_v55 = vunpack.c.h.bf16 %v2767_v0  ;;  %v2050_v45 = vunpack.c.l.bf16 %v2767_v0 }
 0x30a   : > { %v2067_v36 = vadd.f32 1.0, %v2051_v28  ;;  %v2065_v34 = vadd.f32 1.0, %v2049_v10 }
 0x30b   : > { %v2068_v54 = vadd.f32 1.0, %v2052_v55  ;;  %v2066_v48 = vadd.f32 1.0, %v2050_v45 }
 0x30c   : > { %v2083_v40 = vmul.f32 %v2067_v36, %v2067_v36  ;;  %v2081_v39 = vmul.f32 %v2065_v34, %v2065_v34 }
 0x30d   : > { %v2084_v5 = vmul.f32 %v2068_v54, %v2068_v54  ;;  %v2082_v62 = vmul.f32 %v2066_v48, %v2066_v48  ;;  %v2168_v54 = vld [vmem:[%s5091_s6 + $0x18] sm:$0xff]  ;;  %v2169_v48 = vld [vmem:[%s5091_s6 + $0x20] sm:$0xff] }
 0x30e   : > { %v2769_v14 = vpop.eup %2768  ;;  %v2594_v52 = vadd.f32 -1.0, %v2083_v40  ;;  %v2131_v57 = vadd.f32 1.0, %v2083_v40  ;;  %v2592_v35 = vadd.f32 -1.0, %v2081_v39  ;;  %v2129_v4 = vadd.f32 1.0, %v2081_v39 }
 0x30f   : > { %v2771_v21 = vpop.eup %2770  ;;  %v4928_v16 = vmul.f32 %v2769_v14, %v2111_v8  ;;  %v2595_v33 = vadd.f32 -1.0, %v2084_v5  ;;  %v2132_v30 = vadd.f32 1.0, %v2084_v5  ;;  %v2593_v27 = vadd.f32 -1.0, %v2082_v62  ;;  %v2165_v8 = vld [vmem:[%s5091_s6] sm:$0xff] }
 0x310   : > { %v2773_v20 = vpop.eup %2772  ;;  %v4930_v2 = vmul.f32 %v2771_v21, %v2112_v32  ;;  %v2115_v9 = vmul.f32 %v2594_v52, %v4916_v3  ;;  %2776 = vrcp.f32 %v2131_v57  ;;  %v2113_v46 = vmul.f32 %v2592_v35, %v4908_v47  ;;  %v2167_v32 = vld [vmem:[%s5091_s6 + $0x10] sm:$0xff]  ;;  %v2170_v35 = vld [vmem:[%s5091_s6 + $0x28] sm:$0xff] }
 0x311   : > { %v2775_v18 = vpop.eup %2774  ;;  %v2116_v19 = vmul.f32 %v2595_v33, %v4918_v6  ;;  %2778 = vrcp.f32 %v2132_v30  ;;  %v4935_v61 = vmul.f32 %v2773_v20, %v2109_v56  ;;  %v2114_v12 = vmul.f32 %v2593_v27, %v4910_v53 }
 0x312   : > { %v4938_v50 = vmul.f32 %v2775_v18, %v2110_v25  ;;  %v2205_v11 = vadd.f32 %v4930_v2, %v4928_v16  ;;  %v2130_v44 = vadd.f32 1.0, %v2082_v62  ;;  %2780 = vrcp.f32 %v2129_v4 }
 0x314   : > { %v2202_v3 = vadd.f32 %v4938_v50, %v4935_v61  ;;  %2206 = vadd.xlane.f32.xlu1 %v2205_v11  ;;  %2782 = vrcp.f32 %v2130_v44 }
 0x316   : > { %2203 = vadd.xlane.f32.xlu0 %v2202_v3 }
 0x31d   : > { %v2777_v47 = vpop.eup %2776 }
 0x31e   : > { %v2779_v6 = vpop.eup %2778  ;;  %v4944_v22 = vmul.f32 %v2777_v47, %v2115_v9 }
 0x31f   : > { %v2781_v49 = vpop.eup %2780  ;;  %v4946_v51 = vmul.f32 %v2779_v6, %v2116_v19  ;;  %v2172_v19 = vld [vmem:[%s5091_s6 + $0x38] sm:$0xff] }
 0x320   : > { %v4948_v53 = vmul.f32 %v2781_v49, %v2113_v46  ;;  %v2171_v46 = vld [vmem:[%s5091_s6 + $0x30] sm:$0xff] }
 0x321   : > { %v2783_v63 = vpop.eup %2782  ;;  %v2211_v15 = vadd.f32 %v4946_v51, %v4944_v22 }
 0x322   : > { %v4952_v58 = vmul.f32 %v2783_v63, %v2114_v12 }
 0x323   : > { %2212 = vadd.xlane.f32.xlu1 %v2211_v15 }
 0x324   : > { %v2208_v43 = vadd.f32 %v4952_v58, %v4948_v53 }
 0x326   : > { %2209 = vadd.xlane.f32.xlu0 %v2208_v43 }
 0x358   : > { %v2195_v7 = vpop.xlane.xlu0 %2194 }
 0x359   : > { %v2215_v1 = vmul.f32 0.00390625, %v2195_v7 }
 0x35a   : > { %v2192_v29 = vpop.xlane.xlu1 %2191 }
 0x35b   : > { %v2214_v17 = vmul.f32 0.00390625, %v2192_v29  ;;  %v2223_v25 = vmul.f32 %v2215_v1, %v2166_v37 }
 0x35d   : > { %v2222_v24 = vmul.f32 %v2214_v17, %v2165_v8  ;;  %v2232_v55 = vsel %vm2230_vm9, %v2223_v25, 0.0  ;;  %v2173_v17 = vld [vmem:[%s5092_s7] sm:$0x1] }
 0x35f   : > { %v2231_v45 = vsel %vm2230_vm9, %v2222_v24, 0.0 }
 0x360   : > { %v2233_v39 = vadd.f32 %v2232_v55, %v2231_v45  ;;  %v5534_v55 = vld [vmem:[#allocation109_spill] sm:$0xff] }
 0x374   : > { %v2201_v0 = vpop.xlane.xlu1 %2200 }
 0x375   : > { %v2217_v36 = vmul.f32 0.00390625, %v2201_v0 }
 0x376   : > { %v2198_v38 = vpop.xlane.xlu0 %2197 }
 0x377   : > { %v2216_v56 = vmul.f32 0.00390625, %v2198_v38  ;;  %v2225_v62 = vmul.f32 %v2217_v36, %v2168_v54  ;;  %v2179_v36 = vld [vmem:[%s5093_s8 + $0x28] sm:$0xff] }
 0x379   : > { %v2224_v10 = vmul.f32 %v2216_v56, %v2167_v32  ;;  %v2236_v4 = vsel %vm2230_vm9, %v2225_v62, 0.0 }
 0x37b   : > { %v2234_v40 = vsel %vm2230_vm9, %v2224_v10, 0.0  ;;  %v2180_v10 = vld [vmem:[%s5093_s8 + $0x30] sm:$0xff] }
 0x37c   : > { %v2235_v52 = vadd.f32 %v2234_v40, %v2233_v39 }
 0x37e   : > { %v2237_v30 = vadd.f32 %v2236_v4, %v2235_v52  ;;  %v2176_v52 = vld [vmem:[%s5093_s8 + $0x10] sm:$0xff] }
 0x39d   : > { %v2207_v5 = vpop.xlane.xlu1 %2206 }
 0x39e   : > { %v2219_v57 = vmul.f32 0.00390625, %v2207_v5 }
 0x39f   : > { %v2204_v28 = vpop.xlane.xlu0 %2203 }
 0x3a0   : > { %v2218_v34 = vmul.f32 0.00390625, %v2204_v28  ;;  %v2227_v27 = vmul.f32 %v2219_v57, %v2170_v35  ;;  %v2181_v28 = vld [vmem:[%s5093_s8 + $0x38] sm:$0xff] }
 0x3a2   : > { %v2226_v14 = vmul.f32 %v2218_v34, %v2169_v48  ;;  %v2240_v11 = vsel %vm2230_vm9, %v2227_v27, 0.0  ;;  %v2178_v34 = vld [vmem:[%s5093_s8 + $0x20] sm:$0xff] }
 0x3a4   : > { %v2238_v21 = vsel %vm2230_vm9, %v2226_v14, 0.0  ;;  %v2177_v14 = vld [vmem:[%s5093_s8 + $0x18] sm:$0xff] }
 0x3a5   : > { %v2239_v9 = vadd.f32 %v2238_v21, %v2237_v30  ;;  %v2174_v30 = vld [vmem:[%s5093_s8] sm:$0xff] }
 0x3a7   : > { %v2241_v47 = vadd.f32 %v2240_v11, %v2239_v9  ;;  %v2188_v11 = vld [vmem:[%s5094_s9 + $0x30] sm:$0xff] }
 0x3ac   : > { %v2213_v33 = vpop.xlane.xlu1 %2212 }
 0x3ad   : > { %v2221_v20 = vmul.f32 0.00390625, %v2213_v33  ;;  %v2175_v33 = vld [vmem:[%s5093_s8 + $0x8] sm:$0xff] }
 0x3af   : > { %v2210_v18 = vpop.xlane.xlu0 %2209  ;;  %v2229_v3 = vmul.f32 %v2221_v20, %v2172_v19 }
 0x3b0   : > { %v2220_v12 = vmul.f32 0.00390625, %v2210_v18 }
 0x3b1   : > { %v2244_v63 = vsel %vm2230_vm9, %v2229_v3, 0.0 }
 0x3b2   : > { %v2228_v44 = vmul.f32 %v2220_v12, %v2171_v46  ;;  %v2189_v12 = vld [vmem:[%s5094_s9 + $0x38] sm:$0xff] }
 0x3b4   : > { %v2242_v6 = vsel %vm2230_vm9, %v2228_v44, 0.0 }
 0x3b5   : > { %v2243_v49 = vadd.f32 %v2242_v6, %v2241_v47 }
 0x3b7   : > { %v2245_v15 = vadd.f32 %v2244_v63, %v2243_v49  ;;  %v2187_v49 = vld [vmem:[%s5094_s9 + $0x28] sm:$0xff]  ;;  %v2186_v63 = vld [vmem:[%s5094_s9 + $0x20] sm:$0xff] }
 0x3b9   : > { %v2246_v43 = vrot.slane %v2245_v15, 4 }
 0x3bb   : > { %v2247_v7 = vadd.f32 %v2246_v43, %v2245_v15 }
 0x3bd   : > { %v2248_v29 = vrot.slane %v2247_v7, 2 }
 0x3bf   : > { %v2249_v38 = vadd.f32 %v2248_v29, %v2247_v7 }
 0x3c1   : > { %v2250_v1 = vrot.slane %v2249_v38, 1 }
 0x3c3   : > { %v2251_v37 = vadd.f32 %v2250_v1, %v2249_v38 }
 0x3c5   : > { %v2252_v8 = vadd.f32 %v2251_v37, %v2173_v17  ;;  %v2185_v17 = vld [vmem:[%s5094_s9 + $0x18] sm:$0xff]  ;;  %v2184_v37 = vld [vmem:[%s5094_s9 + $0x10] sm:$0xff] }
 0x3c7   : > { %v2596_v56 = vmul.f32 -1.442695, %v2252_v8 }
 0x3c9   : > { %2784 = vpow2.f32 %v2596_v56 }
 0x3d6   : > { %v2785_v32 = vpop.eup %2784 }
 0x3d7   : > { %v2256_v25 = vadd.f32 1.0, %v2785_v32 }
 0x3d9   : > { %2786 = vrcp.f32 %v2256_v25 }
 0x3e6   : > { %v2787_v24 = vpop.eup %2786 }
 0x3e7   : > { %v2259_v0 = vmul.f32 %v2787_v24, %v2252_v8 }
 0x3e9   : > { %v2263_v45 = vrot.slane %v2259_v0, %v5534_v55 }
 0x3eb   : > { %v2271_v54 = vmul.f32 %v2263_v45, %v2181_v28  ;;  %v2270_v48 = vmul.f32 %v2263_v45, %v2180_v10  ;;  %v2269_v5 = vmul.f32 %v2263_v45, %v2179_v36  ;;  %v2268_v62 = vmul.f32 %v2263_v45, %v2178_v34  ;;  %v2183_v28 = vld [vmem:[%s5094_s9 + $0x8] sm:$0xff]  ;;  %v2182_v10 = vld [vmem:[%s5094_s9] sm:$0xff] }
 0x3ec   : > { %v2267_v4 = vmul.f32 %v2263_v45, %v2177_v14  ;;  %v2266_v21 = vmul.f32 %v2263_v45, %v2176_v52  ;;  %v2265_v9 = vmul.f32 %v2263_v45, %v2175_v33  ;;  %v2264_v46 = vmul.f32 %v2263_v45, %v2174_v30 }
 0x3ed   : > { %v2293_v40 = vsel %vm2230_vm9, %v2271_v54, 0.0  ;;  %v2290_v39 = vsel %vm2230_vm9, %v2270_v48, 0.0  ;;  %v2287_v57 = vsel %vm2230_vm9, %v2269_v5, 0.0  ;;  %v2284_v35 = vsel %vm2230_vm9, %v2268_v62, 0.0 }
 0x3ee   : > { %2294 = vadd.xlane.f32.xlu1 %v2293_v40  ;;  %2291 = vadd.xlane.f32.xlu0 %v2290_v39  ;;  %v2281_v27 = vsel %vm2230_vm9, %v2267_v4, 0.0  ;;  %v2278_v20 = vsel %vm2230_vm9, %v2266_v21, 0.0  ;;  %v2275_v18 = vsel %vm2230_vm9, %v2265_v9, 0.0  ;;  %v2272_v19 = vsel %vm2230_vm9, %v2264_v46, 0.0 }
 0x3f2   : > { %2288 = vadd.xlane.f32.xlu1 %v2287_v57  ;;  %2285 = vadd.xlane.f32.xlu0 %v2284_v35 }
 0x3f6   : > { %2282 = vadd.xlane.f32.xlu1 %v2281_v27  ;;  %2279 = vadd.xlane.f32.xlu0 %v2278_v20 }
 0x3fa   : > { %2276 = vadd.xlane.f32.xlu1 %v2275_v18  ;;  %2273 = vadd.xlane.f32.xlu0 %v2272_v19 }
 0x477   : > { %v2295_v44 = vpop.xlane.xlu1 %2294  ;;  %v2292_v3 = vpop.xlane.xlu0 %2291 }
 0x478   : > { %v2303_v47 = vadd.f32 %v2295_v44, %v2189_v12  ;;  %v2302_v6 = vadd.f32 %v2292_v3, %v2188_v11 }
 0x47a   : > { %v2604_v15 = vmul.f32 -1.442695, %v2303_v47  ;;  %v2603_v43 = vmul.f32 -1.442695, %v2302_v6 }
 0x47b   : > { %v2289_v7 = vpop.xlane.xlu1 %2288  ;;  %v2286_v29 = vpop.xlane.xlu0 %2285 }
 0x47c   : > { %2788 = vpow2.f32 %v2604_v15  ;;  %v2301_v38 = vadd.f32 %v2289_v7, %v2187_v49  ;;  %v2300_v1 = vadd.f32 %v2286_v29, %v2186_v63  ;;  %v2419_v15 = vld [vmem:[%s5096_s11 + $0x8] sm:$0xff] }
 0x47d   : > { %2790 = vpow2.f32 %v2603_v43  ;;  %v2418_v43 = vld [vmem:[%s5096_s11] sm:$0xff] }
 0x47e   : > { %v2602_v8 = vmul.f32 -1.442695, %v2301_v38  ;;  %v2601_v56 = vmul.f32 -1.442695, %v2300_v1 }
 0x47f   : > { %v2283_v32 = vpop.xlane.xlu1 %2282  ;;  %v2280_v25 = vpop.xlane.xlu0 %2279 }
 0x480   : > { %2792 = vpow2.f32 %v2602_v8  ;;  %v2299_v24 = vadd.f32 %v2283_v32, %v2185_v17  ;;  %v2298_v0 = vadd.f32 %v2280_v25, %v2184_v37 }
 0x481   : > { %2794 = vpow2.f32 %v2601_v56 }
 0x482   : > { %v2600_v55 = vmul.f32 -1.442695, %v2299_v24  ;;  %v2599_v45 = vmul.f32 -1.442695, %v2298_v0 }
 0x483   : > { %v2277_v36 = vpop.xlane.xlu1 %2276  ;;  %v2274_v34 = vpop.xlane.xlu0 %2273 }
 0x484   : > { %2796 = vpow2.f32 %v2600_v55  ;;  %v2297_v54 = vadd.f32 %v2277_v36, %v2183_v28  ;;  %v2296_v48 = vadd.f32 %v2274_v34, %v2182_v10 }
 0x485   : > { %2798 = vpow2.f32 %v2599_v45 }
 0x486   : > { %v2598_v40 = vmul.f32 -1.442695, %v2297_v54  ;;  %v2597_v39 = vmul.f32 -1.442695, %v2296_v48 }
 0x488   : > { %2800 = vpow2.f32 %v2598_v40 }
 0x489   : > { %v2789_v5 = vpop.eup %2788  ;;  %2802 = vpow2.f32 %v2597_v39  ;;  %v2828_v39 = vld [vmem:[%s2947_s28] sm:$0xff] }
 0x48a   : > { %v2791_v62 = vpop.eup %2790  ;;  %v2335_v14 = vadd.f32 1.0, %v2789_v5 }
 0x48b   : > { %v2334_v52 = vadd.f32 1.0, %v2791_v62 }
 0x48c   : > { %2804 = vrcp.f32 %v2335_v14 }
 0x48d   : > { %v2793_v57 = vpop.eup %2792  ;;  %2806 = vrcp.f32 %v2334_v52 }
 0x48e   : > { %v2795_v35 = vpop.eup %2794  ;;  %v2333_v4 = vadd.f32 1.0, %v2793_v57  ;;  %v2829_v57 = vld [vmem:[%s2947_s28 + $0x8] sm:$0xff] }
 0x48f   : > { %v2332_v21 = vadd.f32 1.0, %v2795_v35 }
 0x490   : > { %2808 = vrcp.f32 %v2333_v4 }
 0x491   : > { %v2797_v33 = vpop.eup %2796  ;;  %2810 = vrcp.f32 %v2332_v21 }
 0x492   : > { %v2799_v30 = vpop.eup %2798  ;;  %v2331_v27 = vadd.f32 1.0, %v2797_v33  ;;  %v2830_v33 = vld [vmem:[%s2947_s28 + $0x10] sm:$0xff] }
 0x493   : > { %v2330_v20 = vadd.f32 1.0, %v2799_v30 }
 0x494   : > { %2812 = vrcp.f32 %v2331_v27 }
 0x495   : > { %v2801_v9 = vpop.eup %2800  ;;  %2814 = vrcp.f32 %v2330_v20  ;;  %v2831_v20 = vld [vmem:[%s2947_s28 + $0x18] sm:$0xff] }
 0x496   : > { %v2803_v46 = vpop.eup %2802  ;;  %v2329_v18 = vadd.f32 1.0, %v2801_v9 }
 0x497   : > { %v2328_v19 = vadd.f32 1.0, %v2803_v46 }
 0x498   : > { %2816 = vrcp.f32 %v2329_v18 }
 0x499   : > { %v2805_v12 = vpop.eup %2804  ;;  %2818 = vrcp.f32 %v2328_v19 }
 0x49a   : > { %v2807_v11 = vpop.eup %2806  ;;  %2389 = vperm.xlu1 %2682, %v2805_v12  }
 0x49b   : > { %2384 = vperm.xlu0 %2681, %v2807_v11  }
 0x49d   : > { %v2809_v44 = vpop.eup %2808 }
 0x49e   : > { %v2811_v3 = vpop.eup %2810 }
 0x49f   : > { %2374 = vperm.xlu1 %2682, %v2811_v3   ;;  %2379 = vperm.xlu0 %2681, %v2809_v44  }
 0x4a1   : > { %v2813_v47 = vpop.eup %2812 }
 0x4a2   : > { %v2815_v6 = vpop.eup %2814 }
 0x4a3   : > { %2364 = vperm.xlu1 %2682, %v2815_v6   ;;  %2369 = vperm.xlu0 %2681, %v2813_v47  }
 0x4a5   : > { %v2817_v49 = vpop.eup %2816 }
 0x4a6   : > { %v2819_v63 = vpop.eup %2818 }
 0x4a7   : > { %2359 = vperm.xlu0 %2681, %v2817_v49   ;;  %2354 = vperm.xlu1 %2682, %v2819_v63  }
 0x4ab   : > { %2427 = vperm.xlu0 %2681, %v2419_v15   ;;  %2422 = vperm.xlu1 %2682, %v2418_v43  }
 0x515   : > { %v2390_v7 = vpop.permute.xlu1 %2389 }
 0x516   : > { %v2406_v29 = vmul.f32 %v2390_v7, %v4944_v22  ;;  %v2407_v38 = vmul.f32 %v2390_v7, %v4946_v51  ;;  %v2385_v1 = vpop.permute.xlu0 %2384 }
 0x517   : > { %v2404_v17 = vmul.f32 %v2385_v1, %v4948_v53  ;;  %v2405_v37 = vmul.f32 %v2385_v1, %v4952_v58 }
 0x519   : > { %v2417_v8 = vpack.c.bf16 %v2407_v38, %v2405_v37  ;;  %v2416_v56 = vpack.c.bf16 %v2406_v29, %v2404_v17 }
 0x51a   : > { %v2375_v32 = vpop.permute.xlu1 %2374  ;;  %v2380_v25 = vpop.permute.xlu0 %2379 }
 0x51b   : > { %v2400_v24 = vmul.f32 %v2375_v32, %v4935_v61  ;;  %v2401_v0 = vmul.f32 %v2375_v32, %v4938_v50  ;;  %v2402_v28 = vmul.f32 %v2380_v25, %v4928_v16  ;;  %v2403_v10 = vmul.f32 %v2380_v25, %v4930_v2  ;;  %2447 = vmatprep.subr.bf16.mxu1 %v2417_v8 }
 0x51c   : > { %2448 = vmatpush1.bf16.msra.mxu1 %v2416_v56 }
 0x51d   : > { %v2414_v22 = vpack.c.bf16 %v2402_v28, %v2400_v24  ;;  %v2415_v51 = vpack.c.bf16 %v2403_v10, %v2401_v0 }
 0x51e   : > { %v2365_v55 = vpop.permute.xlu1 %2364  ;;  %v2370_v53 = vpop.permute.xlu0 %2369 }
 0x51f   : > { %v2396_v58 = vmul.f32 %v2365_v55, %v4902_v59  ;;  %v2397_v45 = vmul.f32 %v2365_v55, %v4906_v26  ;;  %v2398_v36 = vmul.f32 %v2370_v53, %v4889_v13  ;;  %v2399_v61 = vmul.f32 %v2370_v53, %v4892_v41  ;;  %2449 = vmatprep.subr.bf16.mxu1 %v2415_v51  ;;  %v2687_v26 = vld [vmem:[%s5095_s10] sm:$0xff]  }
 0x520   : > { %2450 = vmatpush1.bf16.msra.mxu1 %v2414_v22 }
 0x521   : > { %v2412_v50 = vpack.c.bf16 %v2398_v36, %v2396_v58  ;;  %v2413_v16 = vpack.c.bf16 %v2399_v61, %v2397_v45 }
 0x522   : > { %v2355_v34 = vpop.permute.xlu1 %2354  ;;  %v2360_v2 = vpop.permute.xlu0 %2359 }
 0x523   : > { %v2392_v54 = vmul.f32 %v2355_v34, %v4818_v42  ;;  %v2393_v48 = vmul.f32 %v2355_v34, %v4825_v60  ;;  %v2394_v40 = vmul.f32 %v2360_v2, %v4806_v23  ;;  %v2395_v59 = vmul.f32 %v2360_v2, %v4814_v31  ;;  %2451 = vmatprep.subr.bf16.mxu1 %v2413_v16 }
 0x524   : > { %2452 = vmatpush1.bf16.msra.mxu1 %v2412_v50 }
 0x525   : > { %v2410_v13 = vpack.c.bf16 %v2394_v40, %v2392_v54  ;;  %v2411_v41 = vpack.c.bf16 %v2395_v59, %v2393_v48 }
 0x526   : > { %v2423_v42 = vpop.permute.xlu1 %2422  ;;  %v2428_v14 = vpop.permute.xlu0 %2427 }
 0x527   : > { %2453 = vmatprep.subr.bf16.mxu1 %v2411_v41 }
 0x528   : > { %2454 = vmatpush1.bf16.msra.mxu1 %v2410_v13 }
 0x52b   : > { %2606 = vmatmul.mubr.msk.bf16.vlgmr.msra.gmra.mxu1 %vm2435_vm10, %v2687_v26 }
 0x5eb   : > { %v2473_v60 = vpop.f32.mrf.mxu1 }
 0x5ec   : > { %v2474_v23 = vadd.f32 %v2473_v60, %v2423_v42 }
 0x5ed   : > { %v2475_v31 = vpop.f32.mrf.mxu1 }
 0x5ee   : > { %v2482_v5 = vadd.f32 %v2828_v39, %v2474_v23  ;;  %v2476_v62 = vadd.f32 %v2475_v31, %v2423_v42 }
 0x5ef   : > { %v2477_v52 = vpop.f32.mrf.mxu1 }
 0x5f0   : > { %2486 = vst [vmem:[%s413_s25] sm:$0xff] %v2482_v5  ;;  %v2483_v35 = vadd.f32 %v2829_v57, %v2476_v62  ;;  %v2478_v4 = vadd.f32 %v2477_v52, %v2428_v14 }
 0x5f1   : > { %v2479_v21 = vpop.f32.mrf.mxu1 }
 0x5f2   : > { %2487 = vst [vmem:[%s413_s25 + $0x8] sm:$0xff] %v2483_v35  ;;  %v2484_v30 = vadd.f32 %v2830_v33, %v2478_v4  ;;  %v2480_v27 = vadd.f32 %v2479_v21, %v2428_v14 }
 0x5f4   : > { %2488 = vst [vmem:[%s413_s25 + $0x10] sm:$0xff] %v2484_v30  ;;  %v2485_v9 = vadd.f32 %v2831_v20, %v2480_v27 }
 0x5f6   : > { %2489 = vst [vmem:[%s413_s25 + $0x18] sm:$0xff] %v2485_v9 }
 0x5f7 PF: > { %s22_s21 = sadd.s32 1, %s2838_s21  }
 0x5f8   : > { %p19_p4 = scmp.ge.s32.totalorder %s22_s21, 4  }
 0x5fa   :  { %21 = sbr.rel (!%p19_p4) target bundleno = 1 (0x1), region = 98 }

</bundles_post_ra>
